<compile_context>
chip_gen: v6e
topology: v6e:2x2x1
jax: 0.10.0
libtpu: 0.0.40
codegen_flags: <defaults>
</compile_context>

<pallas_src>
import functools

import jax
import jax.numpy as jnp
from jax import lax
from jax.experimental import pallas as pl
from jax.experimental.pallas import tpu as pltpu


def _round_up(n, m):
    return (n + m - 1) // m * m


# ------------------------------- Pallas kernel ------------------------------- #

def make_fused_lstm_kernel(num_layers, T, Bp, Hp, unroll):
    """Fused (all LSTM layers + final Linear) kernel for static T/Bp/Hp."""

    def kernel(*refs):
        x_ref = refs[0]                                   # (T*Bp, Dp)
        w_refs = refs[1:1 + 3 * num_layers]               # per layer: wihT, whhT, bias
        wfc_ref = refs[1 + 3 * num_layers]                # (Hp, Op)
        bfc_ref = refs[2 + 3 * num_layers]                # (1, Op)
        out_ref = refs[3 + 3 * num_layers]                # (Bp, Op)
        zx_scr, y0_scr, y1_scr, h_scr, c_scr = refs[4 + 3 * num_layers:]

        bufs = (y0_scr, y1_scr)

        def run_layer(src_ref, dst_ref, wih_ref, whh_ref, b_ref, store_y):
            # Hoisted input projection: one big MXU matmul for the whole sequence.
            zx_scr[...] = (
                jnp.dot(src_ref[...], wih_ref[...],
                        preferred_element_type=jnp.float32)
                + b_ref[...])
            h_scr[...] = jnp.zeros_like(h_scr)
            c_scr[...] = jnp.zeros_like(c_scr)

            def step(t, carry):
                r = pl.multiple_of(t * Bp, Bp)            # sublane-aligned row offset
                h = h_scr[...]
                c = c_scr[...]
                z = (zx_scr[pl.ds(r, Bp), :]
                     + jnp.dot(h, whh_ref[...],
                               preferred_element_type=jnp.float32))   # (Bp, 4Hp)
                # Gate slices are lane-aligned (Hp is a multiple of 128).
                i = jax.nn.sigmoid(z[:, 0 * Hp:1 * Hp])
                f = jax.nn.sigmoid(z[:, 1 * Hp:2 * Hp])
                g = jnp.tanh(z[:, 2 * Hp:3 * Hp])
                o = jax.nn.sigmoid(z[:, 3 * Hp:4 * Hp])
                c_new = f * c + i * g
                h_new = o * jnp.tanh(c_new)
                h_scr[...] = h_new
                c_scr[...] = c_new
                if store_y:
                    # Lane-dense, sublane-aligned (Bp, Hp) store.
                    dst_ref[pl.ds(r, Bp), :] = h_new
                return carry

            lax.fori_loop(0, T, step, 0, unroll=unroll)

        for layer in range(num_layers):
            wih_ref = w_refs[3 * layer]
            whh_ref = w_refs[3 * layer + 1]
            b_ref = w_refs[3 * layer + 2]
            src = x_ref if layer == 0 else bufs[(layer - 1) % 2]
            dst = bufs[layer % 2]
            run_layer(src, dst, wih_ref, whh_ref, b_ref,
                      store_y=(layer != num_layers - 1))

        # Final Linear on the last timestep's hidden state, fused in-kernel.
        out_ref[...] = (
            jnp.dot(h_scr[...], wfc_ref[...], preferred_element_type=jnp.float32)
            + bfc_ref[...])

    return kernel


# -------------------------------- JAX wrapper -------------------------------- #

_VMEM = pl.BlockSpec(memory_space=pltpu.MemorySpace.VMEM)


def simple_lstm_forward(x, packed, *, output_dim):
    """x: (B, T, input_dim) batch_first -> (B, output_dim), like the PyTorch module."""
    B, T, Din = x.shape
    Bp = _round_up(B, 8)
    lstm_packed = packed["lstm"]
    num_layers = len(lstm_packed)
    Dp = lstm_packed[0][0].shape[0]
    Hp = lstm_packed[0][1].shape[0]
    Op = packed["fc_w_t"].shape[1]

    # Time-major, zero-padded, flattened input: row index = t * Bp + b.
    xt = jnp.transpose(x, (1, 0, 2)).astype(jnp.float32)          # (T, B, Din)
    xt = jnp.pad(xt, ((0, 0), (0, Bp - B), (0, Dp - Din)))
    x_flat = xt.reshape(T * Bp, Dp)

    flat_weights = []
    for (wih_t, whh_t, bias) in lstm_packed:
        flat_weights += [wih_t, whh_t, bias]
    inputs = [x_flat] + flat_weights + [packed["fc_w_t"], packed["fc_b"]]

    # Explicit VMEM budget (inputs + output + scratch) with headroom, capped at
    # v7x physical VMEM so the same call compiles on v5e/v6e/v7x.
    n_bytes = sum(int(a.size) * 4 for a in inputs)
    n_bytes += Bp * Op * 4
    n_bytes += (T * Bp * 4 * Hp + 2 * T * Bp * Hp + 2 * Bp * Hp) * 4
    vmem_limit = int(min(64 * 1024 * 1024, max(32 * 1024 * 1024, 2 * n_bytes)))

    unroll = True if T <= 16 else 2
    kernel = make_fused_lstm_kernel(num_layers, T, Bp, Hp, unroll)

    out_p = pl.pallas_call(
        kernel,
        out_shape=jax.ShapeDtypeStruct((Bp, Op), jnp.float32),
        in_specs=[_VMEM] * len(inputs),
        out_specs=_VMEM,
        scratch_shapes=[
            pltpu.VMEM((T * Bp, 4 * Hp), jnp.float32),   # hoisted input projection
            pltpu.VMEM((T * Bp, Hp), jnp.float32),       # inter-layer ping
            pltpu.VMEM((T * Bp, Hp), jnp.float32),       # inter-layer pong
            pltpu.VMEM((Bp, Hp), jnp.float32),           # h state
            pltpu.VMEM((Bp, Hp), jnp.float32),           # c state
        ],
        compiler_params=pltpu.CompilerParams(vmem_limit_bytes=vmem_limit),
    )(*inputs)
    return out_p[:B, :output_dim]


# --------------------------- parameter construction -------------------------- #

def init_params(key, input_dim, hidden_dim, layer_dim, output_dim):
    """Deterministic init mirroring PyTorch shapes: U(-1/sqrt(H), 1/sqrt(H))."""
    k = 1.0 / jnp.sqrt(jnp.float32(hidden_dim))
    lstm_params = []
    for layer in range(layer_dim):
        d_in = input_dim if layer == 0 else hidden_dim
        key, k1, k2, k3, k4 = jax.random.split(key, 5)
        w_ih = jax.random.uniform(k1, (4 * hidden_dim, d_in), jnp.float32, -k, k)
        w_hh = jax.random.uniform(k2, (4 * hidden_dim, hidden_dim), jnp.float32, -k, k)
        b_ih = jax.random.uniform(k3, (4 * hidden_dim,), jnp.float32, -k, k)
        b_hh = jax.random.uniform(k4, (4 * hidden_dim,), jnp.float32, -k, k)
        lstm_params.append((w_ih, w_hh, b_ih, b_hh))
    key, k5, k6 = jax.random.split(key, 3)
    fc_w = jax.random.uniform(k5, (output_dim, hidden_dim), jnp.float32, -k, k)
    fc_b = jax.random.uniform(k6, (output_dim,), jnp.float32, -k, k)
    return {"lstm": lstm_params, "fc_w": fc_w, "fc_b": fc_b}


def pack_params(params, input_dim, hidden_dim, output_dim):
    """One-time packing: pre-transpose and pad each [i,f,g,o] gate block H->Hp (128-aligned).

    Zero padding is exact: padded hidden lanes stay identically 0 through the
    recurrence (g=tanh(0)=0, c starts at 0), so real lanes are unaffected.
    """
    Hp = _round_up(hidden_dim, 128)
    Dp = _round_up(input_dim, 128)
    Op = _round_up(output_dim, 128)
    packed_layers = []
    for li, (w_ih, w_hh, b_ih, b_hh) in enumerate(params["lstm"]):
        d_in = input_dim if li == 0 else hidden_dim
        d_in_p = Dp if li == 0 else Hp

        wih_g = w_ih.reshape(4, hidden_dim, d_in)
        wih_p = jnp.zeros((4, Hp, d_in_p), jnp.float32).at[:, :hidden_dim, :d_in].set(wih_g)
        wih_t = wih_p.reshape(4 * Hp, d_in_p).T                   # (d_in_p, 4Hp)

        whh_g = w_hh.reshape(4, hidden_dim, hidden_dim)
        whh_p = jnp.zeros((4, Hp, Hp), jnp.float32).at[:, :hidden_dim, :hidden_dim].set(whh_g)
        whh_t = whh_p.reshape(4 * Hp, Hp).T                       # (Hp, 4Hp)

        b_g = (b_ih + b_hh).reshape(4, hidden_dim)
        bias = jnp.zeros((4, Hp), jnp.float32).at[:, :hidden_dim].set(b_g).reshape(1, 4 * Hp)

        packed_layers.append((wih_t, whh_t, bias))

    fc_w_p = jnp.zeros((Op, Hp), jnp.float32).at[:output_dim, :hidden_dim].set(params["fc_w"])
    fc_b_p = jnp.zeros((1, Op), jnp.float32).at[0, :output_dim].set(params["fc_b"])
    return {"lstm": packed_layers, "fc_w_t": fc_w_p.T, "fc_b": fc_b_p}


# ------------------------------ pure-JAX reference ---------------------------- #

def reference_forward(x, params):
    xt = jnp.transpose(x, (1, 0, 2))
    for (w_ih, w_hh, b_ih, b_hh) in params["lstm"]:
        T, B, _ = xt.shape
        H = w_hh.shape[1]
        h = jnp.zeros((B, H), jnp.float32)
        c = jnp.zeros((B, H), jnp.float32)
        ys = []
        for t in range(T):
            z = xt[t] @ w_ih.T + h @ w_hh.T + b_ih + b_hh
            i = jax.nn.sigmoid(z[:, 0 * H:1 * H])
            f = jax.nn.sigmoid(z[:, 1 * H:2 * H])
            g = jnp.tanh(z[:, 2 * H:3 * H])
            o = jax.nn.sigmoid(z[:, 3 * H:4 * H])
            c = f * c + i * g
            h = o * jnp.tanh(c)
            ys.append(h)
        xt = jnp.stack(ys, axis=0)
    return xt[-1] @ params["fc_w"].T + params["fc_b"]


# ----------------------------------- main ------------------------------------ #

if __name__ == "__main__":
    batch, seq, input_dim = 2, 8, 16
    hidden_dim, layer_dim, output_dim = 32, 2, 4

    key = jax.random.PRNGKey(0)
    key, kx = jax.random.split(key)
    x = jax.random.normal(kx, (batch, seq, input_dim), jnp.float32)

    params = init_params(key, input_dim, hidden_dim, layer_dim, output_dim)
    packed = pack_params(params, input_dim, hidden_dim, output_dim)   # one-time packing

    fwd = jax.jit(functools.partial(simple_lstm_forward, output_dim=output_dim))
    out = fwd(x, packed)
    out = jax.block_until_ready(out)
    assert out.shape == (batch, output_dim)

    ref = reference_forward(x, params)
    assert jnp.allclose(out, ref, rtol=1e-4, atol=1e-4), "mismatch vs pure-JAX reference"

    print("KERNEL_OK")
</pallas_src>

<mosaic_0001>
module attributes {stable_mosaic.version = 11 : i64} {
  func.func @kernel(%arg0: memref<64x128xf32, #tpu.memory_space<vmem>>, %arg1: memref<128x512xf32, #tpu.memory_space<vmem>>, %arg2: memref<128x512xf32, #tpu.memory_space<vmem>>, %arg3: memref<1x512xf32, #tpu.memory_space<vmem>>, %arg4: memref<128x512xf32, #tpu.memory_space<vmem>>, %arg5: memref<128x512xf32, #tpu.memory_space<vmem>>, %arg6: memref<1x512xf32, #tpu.memory_space<vmem>>, %arg7: memref<128x128xf32, #tpu.memory_space<vmem>>, %arg8: memref<1x128xf32, #tpu.memory_space<vmem>>, %arg9: memref<8x128xf32, #tpu.memory_space<vmem>>, %arg10: memref<64x512xf32, #tpu.memory_space<vmem>>, %arg11: memref<64x128xf32, #tpu.memory_space<vmem>>, %arg12: memref<64x128xf32, #tpu.memory_space<vmem>>, %arg13: memref<8x128xf32, #tpu.memory_space<vmem>>, %arg14: memref<8x128xf32, #tpu.memory_space<vmem>>) attributes {dimension_semantics = [], scalar_prefetch = 0 : i64, scratch_operands = 5 : i64, tpu.core_type = #tpu.core_type<tc>} {
    %c0 = arith.constant 0 : index
    %c0_0 = arith.constant 0 : index
    %0 = vector.load %arg0[%c0, %c0_0] : memref<64x128xf32, #tpu.memory_space<vmem>>, vector<64x128xf32>
    %c0_1 = arith.constant 0 : index
    %c0_2 = arith.constant 0 : index
    %1 = vector.load %arg1[%c0_1, %c0_2] : memref<128x512xf32, #tpu.memory_space<vmem>>, vector<128x512xf32>
    %cst = arith.constant dense<0.000000e+00> : vector<64x512xf32>
    %2 = tpu.matmul %0, %1, %cst {dimension_numbers = #tpu.dot_dimension_numbers<[1], [0], [0], [1], [0, 0, 1, 1], [], []>} : vector<64x128xf32>, vector<128x512xf32>, vector<64x512xf32> -> vector<64x512xf32>
    %c0_3 = arith.constant 0 : index
    %c0_4 = arith.constant 0 : index
    %3 = vector.load %arg3[%c0_3, %c0_4] : memref<1x512xf32, #tpu.memory_space<vmem>>, vector<1x512xf32>
    %4 = vector.broadcast %3 : vector<1x512xf32> to vector<64x512xf32>
    %5 = arith.addf %2, %4 : vector<64x512xf32>
    %c0_5 = arith.constant 0 : index
    %c0_6 = arith.constant 0 : index
    %6 = vector.load %arg10[%c0_5, %c0_6] : memref<64x512xf32, #tpu.memory_space<vmem>>, vector<64x512xf32>
    tpu.vector_store %arg10[%c0_5, %c0_6], %5 {strides = array<i32>} : memref<64x512xf32, #tpu.memory_space<vmem>>, vector<64x512xf32>,
    %cst_7 = arith.constant 0.000000e+00 : f32
    %7 = vector.broadcast %cst_7 : f32 to vector<8x128xf32>
    %c0_8 = arith.constant 0 : index
    %c0_9 = arith.constant 0 : index
    %8 = vector.load %arg13[%c0_8, %c0_9] : memref<8x128xf32, #tpu.memory_space<vmem>>, vector<8x128xf32>
    tpu.vector_store %arg13[%c0_8, %c0_9], %7 {strides = array<i32>} : memref<8x128xf32, #tpu.memory_space<vmem>>, vector<8x128xf32>,
    %cst_10 = arith.constant 0.000000e+00 : f32
    %9 = vector.broadcast %cst_10 : f32 to vector<8x128xf32>
    %c0_11 = arith.constant 0 : index
    %c0_12 = arith.constant 0 : index
    %10 = vector.load %arg14[%c0_11, %c0_12] : memref<8x128xf32, #tpu.memory_space<vmem>>, vector<8x128xf32>
    tpu.vector_store %arg14[%c0_11, %c0_12], %9 {strides = array<i32>} : memref<8x128xf32, #tpu.memory_space<vmem>>, vector<8x128xf32>,
    %c0_i32 = arith.constant 0 : i32
    %c8_i32 = arith.constant 8 : i32
    %11 = arith.muli %c0_i32, %c8_i32 : i32
    %12 = tpu.assume_multiple %11, 8 : i32
    %c0_13 = arith.constant 0 : index
    %c0_14 = arith.constant 0 : index
    %13 = vector.load %arg13[%c0_13, %c0_14] : memref<8x128xf32, #tpu.memory_space<vmem>>, vector<8x128xf32>
    %c0_15 = arith.constant 0 : index
    %c0_16 = arith.constant 0 : index
    %14 = vector.load %arg14[%c0_15, %c0_16] : memref<8x128xf32, #tpu.memory_space<vmem>>, vector<8x128xf32>
    %15 = arith.index_cast %12 : i32 to index
    %c0_17 = arith.constant 0 : index
    %16 = vector.load %arg10[%15, %c0_17] : memref<64x512xf32, #tpu.memory_space<vmem>>, vector<8x512xf32>
    %c0_18 = arith.constant 0 : index
    %c0_19 = arith.constant 0 : index
    %17 = vector.load %arg2[%c0_18, %c0_19] : memref<128x512xf32, #tpu.memory_space<vmem>>, vector<128x512xf32>
    %cst_20 = arith.constant dense<0.000000e+00> : vector<8x512xf32>
    %18 = tpu.matmul %13, %17, %cst_20 {dimension_numbers = #tpu.dot_dimension_numbers<[1], [0], [0], [1], [0, 0, 1, 1], [], []>} : vector<8x128xf32>, vector<128x512xf32>, vector<8x512xf32> -> vector<8x512xf32>
    %19 = arith.addf %16, %18 : vector<8x512xf32>
    %20 = vector.extract_strided_slice %19 {offsets = [0, 0], sizes = [8, 128], strides = [1, 1]} : vector<8x512xf32> to vector<8x128xf32>
    %21 = arith.negf %20 : vector<8x128xf32>
    %22 = math.exp %21 : vector<8x128xf32>
    %cst_21 = arith.constant 1.000000e+00 : f32
    %23 = vector.broadcast %cst_21 : f32 to vector<8x128xf32>
    %24 = arith.addf %23, %22 : vector<8x128xf32>
    %25 = arith.divf %23, %24 : vector<8x128xf32>
    %26 = vector.extract_strided_slice %19 {offsets = [0, 128], sizes = [8, 128], strides = [1, 1]} : vector<8x512xf32> to vector<8x128xf32>
    %27 = arith.negf %26 : vector<8x128xf32>
    %28 = math.exp %27 : vector<8x128xf32>
    %cst_22 = arith.constant 1.000000e+00 : f32
    %29 = vector.broadcast %cst_22 : f32 to vector<8x128xf32>
    %30 = arith.addf %29, %28 : vector<8x128xf32>
    %31 = arith.divf %29, %30 : vector<8x128xf32>
    %32 = vector.extract_strided_slice %19 {offsets = [0, 256], sizes = [8, 128], strides = [1, 1]} : vector<8x512xf32> to vector<8x128xf32>
    %33 = math.tanh %32 : vector<8x128xf32>
    %34 = vector.extract_strided_slice %19 {offsets = [0, 384], sizes = [8, 128], strides = [1, 1]} : vector<8x512xf32> to vector<8x128xf32>
    %35 = arith.negf %34 : vector<8x128xf32>
    %36 = math.exp %35 : vector<8x128xf32>
    %cst_23 = arith.constant 1.000000e+00 : f32
    %37 = vector.broadcast %cst_23 : f32 to vector<8x128xf32>
    %38 = arith.addf %37, %36 : vector<8x128xf32>
    %39 = arith.divf %37, %38 : vector<8x128xf32>
    %40 = arith.mulf %31, %14 : vector<8x128xf32>
    %41 = arith.mulf %25, %33 : vector<8x128xf32>
    %42 = arith.addf %40, %41 : vector<8x128xf32>
    %43 = math.tanh %42 : vector<8x128xf32>
    %44 = arith.mulf %39, %43 : vector<8x128xf32>
    %c0_24 = arith.constant 0 : index
    %c0_25 = arith.constant 0 : index
    %45 = vector.load %arg13[%c0_24, %c0_25] : memref<8x128xf32, #tpu.memory_space<vmem>>, vector<8x128xf32>
    tpu.vector_store %arg13[%c0_24, %c0_25], %44 {strides = array<i32>} : memref<8x128xf32, #tpu.memory_space<vmem>>, vector<8x128xf32>,
    %c0_26 = arith.constant 0 : index
    %c0_27 = arith.constant 0 : index
    %46 = vector.load %arg14[%c0_26, %c0_27] : memref<8x128xf32, #tpu.memory_space<vmem>>, vector<8x128xf32>
    tpu.vector_store %arg14[%c0_26, %c0_27], %42 {strides = array<i32>} : memref<8x128xf32, #tpu.memory_space<vmem>>, vector<8x128xf32>,
    %47 = arith.index_cast %12 : i32 to index
    %c0_28 = arith.constant 0 : index
    %48 = vector.load %arg11[%47, %c0_28] : memref<64x128xf32, #tpu.memory_space<vmem>>, vector<8x128xf32>
    tpu.vector_store %arg11[%47, %c0_28], %44 {strides = array<i32>} : memref<64x128xf32, #tpu.memory_space<vmem>>, vector<8x128xf32>,
    %c1_i32 = arith.constant 1 : i32
    %c8_i32_29 = arith.constant 8 : i32
    %49 = arith.muli %c1_i32, %c8_i32_29 : i32
    %50 = tpu.assume_multiple %49, 8 : i32
    %c0_30 = arith.constant 0 : index
    %c0_31 = arith.constant 0 : index
    %51 = vector.load %arg13[%c0_30, %c0_31] : memref<8x128xf32, #tpu.memory_space<vmem>>, vector<8x128xf32>
    %c0_32 = arith.constant 0 : index
    %c0_33 = arith.constant 0 : index
    %52 = vector.load %arg14[%c0_32, %c0_33] : memref<8x128xf32, #tpu.memory_space<vmem>>, vector<8x128xf32>
    %53 = arith.index_cast %50 : i32 to index
    %c0_34 = arith.constant 0 : index
    %54 = vector.load %arg10[%53, %c0_34] : memref<64x512xf32, #tpu.memory_space<vmem>>, vector<8x512xf32>
    %c0_35 = arith.constant 0 : index
    %c0_36 = arith.constant 0 : index
    %55 = vector.load %arg2[%c0_35, %c0_36] : memref<128x512xf32, #tpu.memory_space<vmem>>, vector<128x512xf32>
    %cst_37 = arith.constant dense<0.000000e+00> : vector<8x512xf32>
    %56 = tpu.matmul %51, %55, %cst_37 {dimension_numbers = #tpu.dot_dimension_numbers<[1], [0], [0], [1], [0, 0, 1, 1], [], []>} : vector<8x128xf32>, vector<128x512xf32>, vector<8x512xf32> -> vector<8x512xf32>
    %57 = arith.addf %54, %56 : vector<8x512xf32>
    %58 = vector.extract_strided_slice %57 {offsets = [0, 0], sizes = [8, 128], strides = [1, 1]} : vector<8x512xf32> to vector<8x128xf32>
    %59 = arith.negf %58 : vector<8x128xf32>
    %60 = math.exp %59 : vector<8x128xf32>
    %cst_38 = arith.constant 1.000000e+00 : f32
    %61 = vector.broadcast %cst_38 : f32 to vector<8x128xf32>
    %62 = arith.addf %61, %60 : vector<8x128xf32>
    %63 = arith.divf %61, %62 : vector<8x128xf32>
    %64 = vector.extract_strided_slice %57 {offsets = [0, 128], sizes = [8, 128], strides = [1, 1]} : vector<8x512xf32> to vector<8x128xf32>
    %65 = arith.negf %64 : vector<8x128xf32>
    %66 = math.exp %65 : vector<8x128xf32>
    %cst_39 = arith.constant 1.000000e+00 : f32
    %67 = vector.broadcast %cst_39 : f32 to vector<8x128xf32>
    %68 = arith.addf %67, %66 : vector<8x128xf32>
    %69 = arith.divf %67, %68 : vector<8x128xf32>
    %70 = vector.extract_strided_slice %57 {offsets = [0, 256], sizes = [8, 128], strides = [1, 1]} : vector<8x512xf32> to vector<8x128xf32>
    %71 = math.tanh %70 : vector<8x128xf32>
    %72 = vector.extract_strided_slice %57 {offsets = [0, 384], sizes = [8, 128], strides = [1, 1]} : vector<8x512xf32> to vector<8x128xf32>
    %73 = arith.negf %72 : vector<8x128xf32>
    %74 = math.exp %73 : vector<8x128xf32>
    %cst_40 = arith.constant 1.000000e+00 : f32
    %75 = vector.broadcast %cst_40 : f32 to vector<8x128xf32>
    %76 = arith.addf %75, %74 : vector<8x128xf32>
    %77 = arith.divf %75, %76 : vector<8x128xf32>
    %78 = arith.mulf %69, %52 : vector<8x128xf32>
    %79 = arith.mulf %63, %71 : vector<8x128xf32>
    %80 = arith.addf %78, %79 : vector<8x128xf32>
    %81 = math.tanh %80 : vector<8x128xf32>
    %82 = arith.mulf %77, %81 : vector<8x128xf32>
    %c0_41 = arith.constant 0 : index
    %c0_42 = arith.constant 0 : index
    %83 = vector.load %arg13[%c0_41, %c0_42] : memref<8x128xf32, #tpu.memory_space<vmem>>, vector<8x128xf32>
    tpu.vector_store %arg13[%c0_41, %c0_42], %82 {strides = array<i32>} : memref<8x128xf32, #tpu.memory_space<vmem>>, vector<8x128xf32>,
    %c0_43 = arith.constant 0 : index
    %c0_44 = arith.constant 0 : index
    %84 = vector.load %arg14[%c0_43, %c0_44] : memref<8x128xf32, #tpu.memory_space<vmem>>, vector<8x128xf32>
    tpu.vector_store %arg14[%c0_43, %c0_44], %80 {strides = array<i32>} : memref<8x128xf32, #tpu.memory_space<vmem>>, vector<8x128xf32>,
    %85 = arith.index_cast %50 : i32 to index
    %c0_45 = arith.constant 0 : index
    %86 = vector.load %arg11[%85, %c0_45] : memref<64x128xf32, #tpu.memory_space<vmem>>, vector<8x128xf32>
    tpu.vector_store %arg11[%85, %c0_45], %82 {strides = array<i32>} : memref<64x128xf32, #tpu.memory_space<vmem>>, vector<8x128xf32>,
    %c2_i32 = arith.constant 2 : i32
    %c8_i32_46 = arith.constant 8 : i32
    %87 = arith.muli %c2_i32, %c8_i32_46 : i32
    %88 = tpu.assume_multiple %87, 8 : i32
    %c0_47 = arith.constant 0 : index
    %c0_48 = arith.constant 0 : index
    %89 = vector.load %arg13[%c0_47, %c0_48] : memref<8x128xf32, #tpu.memory_space<vmem>>, vector<8x128xf32>
    %c0_49 = arith.constant 0 : index
    %c0_50 = arith.constant 0 : index
    %90 = vector.load %arg14[%c0_49, %c0_50] : memref<8x128xf32, #tpu.memory_space<vmem>>, vector<8x128xf32>
    %91 = arith.index_cast %88 : i32 to index
    %c0_51 = arith.constant 0 : index
    %92 = vector.load %arg10[%91, %c0_51] : memref<64x512xf32, #tpu.memory_space<vmem>>, vector<8x512xf32>
    %c0_52 = arith.constant 0 : index
    %c0_53 = arith.constant 0 : index
    %93 = vector.load %arg2[%c0_52, %c0_53] : memref<128x512xf32, #tpu.memory_space<vmem>>, vector<128x512xf32>
    %cst_54 = arith.constant dense<0.000000e+00> : vector<8x512xf32>
    %94 = tpu.matmul %89, %93, %cst_54 {dimension_numbers = #tpu.dot_dimension_numbers<[1], [0], [0], [1], [0, 0, 1, 1], [], []>} : vector<8x128xf32>, vector<128x512xf32>, vector<8x512xf32> -> vector<8x512xf32>
    %95 = arith.addf %92, %94 : vector<8x512xf32>
    %96 = vector.extract_strided_slice %95 {offsets = [0, 0], sizes = [8, 128], strides = [1, 1]} : vector<8x512xf32> to vector<8x128xf32>
    %97 = arith.negf %96 : vector<8x128xf32>
    %98 = math.exp %97 : vector<8x128xf32>
    %cst_55 = arith.constant 1.000000e+00 : f32
    %99 = vector.broadcast %cst_55 : f32 to vector<8x128xf32>
    %100 = arith.addf %99, %98 : vector<8x128xf32>
    %101 = arith.divf %99, %100 : vector<8x128xf32>
    %102 = vector.extract_strided_slice %95 {offsets = [0, 128], sizes = [8, 128], strides = [1, 1]} : vector<8x512xf32> to vector<8x128xf32>
    %103 = arith.negf %102 : vector<8x128xf32>
    %104 = math.exp %103 : vector<8x128xf32>
    %cst_56 = arith.constant 1.000000e+00 : f32
    %105 = vector.broadcast %cst_56 : f32 to vector<8x128xf32>
    %106 = arith.addf %105, %104 : vector<8x128xf32>
    %107 = arith.divf %105, %106 : vector<8x128xf32>
    %108 = vector.extract_strided_slice %95 {offsets = [0, 256], sizes = [8, 128], strides = [1, 1]} : vector<8x512xf32> to vector<8x128xf32>
    %109 = math.tanh %108 : vector<8x128xf32>
    %110 = vector.extract_strided_slice %95 {offsets = [0, 384], sizes = [8, 128], strides = [1, 1]} : vector<8x512xf32> to vector<8x128xf32>
    %111 = arith.negf %110 : vector<8x128xf32>
    %112 = math.exp %111 : vector<8x128xf32>
    %cst_57 = arith.constant 1.000000e+00 : f32
    %113 = vector.broadcast %cst_57 : f32 to vector<8x128xf32>
    %114 = arith.addf %113, %112 : vector<8x128xf32>
    %115 = arith.divf %113, %114 : vector<8x128xf32>
    %116 = arith.mulf %107, %90 : vector<8x128xf32>
    %117 = arith.mulf %101, %109 : vector<8x128xf32>
    %118 = arith.addf %116, %117 : vector<8x128xf32>
    %119 = math.tanh %118 : vector<8x128xf32>
    %120 = arith.mulf %115, %119 : vector<8x128xf32>
    %c0_58 = arith.constant 0 : index
    %c0_59 = arith.constant 0 : index
    %121 = vector.load %arg13[%c0_58, %c0_59] : memref<8x128xf32, #tpu.memory_space<vmem>>, vector<8x128xf32>
    tpu.vector_store %arg13[%c0_58, %c0_59], %120 {strides = array<i32>} : memref<8x128xf32, #tpu.memory_space<vmem>>, vector<8x128xf32>,
    %c0_60 = arith.constant 0 : index
    %c0_61 = arith.constant 0 : index
    %122 = vector.load %arg14[%c0_60, %c0_61] : memref<8x128xf32, #tpu.memory_space<vmem>>, vector<8x128xf32>
    tpu.vector_store %arg14[%c0_60, %c0_61], %118 {strides = array<i32>} : memref<8x128xf32, #tpu.memory_space<vmem>>, vector<8x128xf32>,
    %123 = arith.index_cast %88 : i32 to index
    %c0_62 = arith.constant 0 : index
    %124 = vector.load %arg11[%123, %c0_62] : memref<64x128xf32, #tpu.memory_space<vmem>>, vector<8x128xf32>
    tpu.vector_store %arg11[%123, %c0_62], %120 {strides = array<i32>} : memref<64x128xf32, #tpu.memory_space<vmem>>, vector<8x128xf32>,
    %c3_i32 = arith.constant 3 : i32
    %c8_i32_63 = arith.constant 8 : i32
    %125 = arith.muli %c3_i32, %c8_i32_63 : i32
    %126 = tpu.assume_multiple %125, 8 : i32
    %c0_64 = arith.constant 0 : index
    %c0_65 = arith.constant 0 : index
    %127 = vector.load %arg13[%c0_64, %c0_65] : memref<8x128xf32, #tpu.memory_space<vmem>>, vector<8x128xf32>
    %c0_66 = arith.constant 0 : index
    %c0_67 = arith.constant 0 : index
    %128 = vector.load %arg14[%c0_66, %c0_67] : memref<8x128xf32, #tpu.memory_space<vmem>>, vector<8x128xf32>
    %129 = arith.index_cast %126 : i32 to index
    %c0_68 = arith.constant 0 : index
    %130 = vector.load %arg10[%129, %c0_68] : memref<64x512xf32, #tpu.memory_space<vmem>>, vector<8x512xf32>
    %c0_69 = arith.constant 0 : index
    %c0_70 = arith.constant 0 : index
    %131 = vector.load %arg2[%c0_69, %c0_70] : memref<128x512xf32, #tpu.memory_space<vmem>>, vector<128x512xf32>
    %cst_71 = arith.constant dense<0.000000e+00> : vector<8x512xf32>
    %132 = tpu.matmul %127, %131, %cst_71 {dimension_numbers = #tpu.dot_dimension_numbers<[1], [0], [0], [1], [0, 0, 1, 1], [], []>} : vector<8x128xf32>, vector<128x512xf32>, vector<8x512xf32> -> vector<8x512xf32>
    %133 = arith.addf %130, %132 : vector<8x512xf32>
    %134 = vector.extract_strided_slice %133 {offsets = [0, 0], sizes = [8, 128], strides = [1, 1]} : vector<8x512xf32> to vector<8x128xf32>
    %135 = arith.negf %134 : vector<8x128xf32>
    %136 = math.exp %135 : vector<8x128xf32>
    %cst_72 = arith.constant 1.000000e+00 : f32
    %137 = vector.broadcast %cst_72 : f32 to vector<8x128xf32>
    %138 = arith.addf %137, %136 : vector<8x128xf32>
    %139 = arith.divf %137, %138 : vector<8x128xf32>
    %140 = vector.extract_strided_slice %133 {offsets = [0, 128], sizes = [8, 128], strides = [1, 1]} : vector<8x512xf32> to vector<8x128xf32>
    %141 = arith.negf %140 : vector<8x128xf32>
    %142 = math.exp %141 : vector<8x128xf32>
    %cst_73 = arith.constant 1.000000e+00 : f32
    %143 = vector.broadcast %cst_73 : f32 to vector<8x128xf32>
    %144 = arith.addf %143, %142 : vector<8x128xf32>
    %145 = arith.divf %143, %144 : vector<8x128xf32>
    %146 = vector.extract_strided_slice %133 {offsets = [0, 256], sizes = [8, 128], strides = [1, 1]} : vector<8x512xf32> to vector<8x128xf32>
    %147 = math.tanh %146 : vector<8x128xf32>
    %148 = vector.extract_strided_slice %133 {offsets = [0, 384], sizes = [8, 128], strides = [1, 1]} : vector<8x512xf32> to vector<8x128xf32>
    %149 = arith.negf %148 : vector<8x128xf32>
    %150 = math.exp %149 : vector<8x128xf32>
    %cst_74 = arith.constant 1.000000e+00 : f32
    %151 = vector.broadcast %cst_74 : f32 to vector<8x128xf32>
    %152 = arith.addf %151, %150 : vector<8x128xf32>
    %153 = arith.divf %151, %152 : vector<8x128xf32>
    %154 = arith.mulf %145, %128 : vector<8x128xf32>
    %155 = arith.mulf %139, %147 : vector<8x128xf32>
    %156 = arith.addf %154, %155 : vector<8x128xf32>
    %157 = math.tanh %156 : vector<8x128xf32>
    %158 = arith.mulf %153, %157 : vector<8x128xf32>
    %c0_75 = arith.constant 0 : index
    %c0_76 = arith.constant 0 : index
    %159 = vector.load %arg13[%c0_75, %c0_76] : memref<8x128xf32, #tpu.memory_space<vmem>>, vector<8x128xf32>
    tpu.vector_store %arg13[%c0_75, %c0_76], %158 {strides = array<i32>} : memref<8x128xf32, #tpu.memory_space<vmem>>, vector<8x128xf32>,
    %c0_77 = arith.constant 0 : index
    %c0_78 = arith.constant 0 : index
    %160 = vector.load %arg14[%c0_77, %c0_78] : memref<8x128xf32, #tpu.memory_space<vmem>>, vector<8x128xf32>
    tpu.vector_store %arg14[%c0_77, %c0_78], %156 {strides = array<i32>} : memref<8x128xf32, #tpu.memory_space<vmem>>, vector<8x128xf32>,
    %161 = arith.index_cast %126 : i32 to index
    %c0_79 = arith.constant 0 : index
    %162 = vector.load %arg11[%161, %c0_79] : memref<64x128xf32, #tpu.memory_space<vmem>>, vector<8x128xf32>
    tpu.vector_store %arg11[%161, %c0_79], %158 {strides = array<i32>} : memref<64x128xf32, #tpu.memory_space<vmem>>, vector<8x128xf32>,
    %c4_i32 = arith.constant 4 : i32
    %c8_i32_80 = arith.constant 8 : i32
    %163 = arith.muli %c4_i32, %c8_i32_80 : i32
    %164 = tpu.assume_multiple %163, 8 : i32
    %c0_81 = arith.constant 0 : index
    %c0_82 = arith.constant 0 : index
    %165 = vector.load %arg13[%c0_81, %c0_82] : memref<8x128xf32, #tpu.memory_space<vmem>>, vector<8x128xf32>
    %c0_83 = arith.constant 0 : index
    %c0_84 = arith.constant 0 : index
    %166 = vector.load %arg14[%c0_83, %c0_84] : memref<8x128xf32, #tpu.memory_space<vmem>>, vector<8x128xf32>
    %167 = arith.index_cast %164 : i32 to index
    %c0_85 = arith.constant 0 : index
    %168 = vector.load %arg10[%167, %c0_85] : memref<64x512xf32, #tpu.memory_space<vmem>>, vector<8x512xf32>
    %c0_86 = arith.constant 0 : index
    %c0_87 = arith.constant 0 : index
    %169 = vector.load %arg2[%c0_86, %c0_87] : memref<128x512xf32, #tpu.memory_space<vmem>>, vector<128x512xf32>
    %cst_88 = arith.constant dense<0.000000e+00> : vector<8x512xf32>
    %170 = tpu.matmul %165, %169, %cst_88 {dimension_numbers = #tpu.dot_dimension_numbers<[1], [0], [0], [1], [0, 0, 1, 1], [], []>} : vector<8x128xf32>, vector<128x512xf32>, vector<8x512xf32> -> vector<8x512xf32>
    %171 = arith.addf %168, %170 : vector<8x512xf32>
    %172 = vector.extract_strided_slice %171 {offsets = [0, 0], sizes = [8, 128], strides = [1, 1]} : vector<8x512xf32> to vector<8x128xf32>
    %173 = arith.negf %172 : vector<8x128xf32>
    %174 = math.exp %173 : vector<8x128xf32>
    %cst_89 = arith.constant 1.000000e+00 : f32
    %175 = vector.broadcast %cst_89 : f32 to vector<8x128xf32>
    %176 = arith.addf %175, %174 : vector<8x128xf32>
    %177 = arith.divf %175, %176 : vector<8x128xf32>
    %178 = vector.extract_strided_slice %171 {offsets = [0, 128], sizes = [8, 128], strides = [1, 1]} : vector<8x512xf32> to vector<8x128xf32>
    %179 = arith.negf %178 : vector<8x128xf32>
    %180 = math.exp %179 : vector<8x128xf32>
    %cst_90 = arith.constant 1.000000e+00 : f32
    %181 = vector.broadcast %cst_90 : f32 to vector<8x128xf32>
    %182 = arith.addf %181, %180 : vector<8x128xf32>
    %183 = arith.divf %181, %182 : vector<8x128xf32>
    %184 = vector.extract_strided_slice %171 {offsets = [0, 256], sizes = [8, 128], strides = [1, 1]} : vector<8x512xf32> to vector<8x128xf32>
    %185 = math.tanh %184 : vector<8x128xf32>
    %186 = vector.extract_strided_slice %171 {offsets = [0, 384], sizes = [8, 128], strides = [1, 1]} : vector<8x512xf32> to vector<8x128xf32>
    %187 = arith.negf %186 : vector<8x128xf32>
    %188 = math.exp %187 : vector<8x128xf32>
    %cst_91 = arith.constant 1.000000e+00 : f32
    %189 = vector.broadcast %cst_91 : f32 to vector<8x128xf32>
    %190 = arith.addf %189, %188 : vector<8x128xf32>
    %191 = arith.divf %189, %190 : vector<8x128xf32>
    %192 = arith.mulf %183, %166 : vector<8x128xf32>
    %193 = arith.mulf %177, %185 : vector<8x128xf32>
    %194 = arith.addf %192, %193 : vector<8x128xf32>
    %195 = math.tanh %194 : vector<8x128xf32>
    %196 = arith.mulf %191, %195 : vector<8x128xf32>
    %c0_92 = arith.constant 0 : index
    %c0_93 = arith.constant 0 : index
    %197 = vector.load %arg13[%c0_92, %c0_93] : memref<8x128xf32, #tpu.memory_space<vmem>>, vector<8x128xf32>
    tpu.vector_store %arg13[%c0_92, %c0_93], %196 {strides = array<i32>} : memref<8x128xf32, #tpu.memory_space<vmem>>, vector<8x128xf32>,
    %c0_94 = arith.constant 0 : index
    %c0_95 = arith.constant 0 : index
    %198 = vector.load %arg14[%c0_94, %c0_95] : memref<8x128xf32, #tpu.memory_space<vmem>>, vector<8x128xf32>
    tpu.vector_store %arg14[%c0_94, %c0_95], %194 {strides = array<i32>} : memref<8x128xf32, #tpu.memory_space<vmem>>, vector<8x128xf32>,
    %199 = arith.index_cast %164 : i32 to index
    %c0_96 = arith.constant 0 : index
    %200 = vector.load %arg11[%199, %c0_96] : memref<64x128xf32, #tpu.memory_space<vmem>>, vector<8x128xf32>
    tpu.vector_store %arg11[%199, %c0_96], %196 {strides = array<i32>} : memref<64x128xf32, #tpu.memory_space<vmem>>, vector<8x128xf32>,
    %c5_i32 = arith.constant 5 : i32
    %c8_i32_97 = arith.constant 8 : i32
    %201 = arith.muli %c5_i32, %c8_i32_97 : i32
    %202 = tpu.assume_multiple %201, 8 : i32
    %c0_98 = arith.constant 0 : index
    %c0_99 = arith.constant 0 : index
    %203 = vector.load %arg13[%c0_98, %c0_99] : memref<8x128xf32, #tpu.memory_space<vmem>>, vector<8x128xf32>
    %c0_100 = arith.constant 0 : index
    %c0_101 = arith.constant 0 : index
    %204 = vector.load %arg14[%c0_100, %c0_101] : memref<8x128xf32, #tpu.memory_space<vmem>>, vector<8x128xf32>
    %205 = arith.index_cast %202 : i32 to index
    %c0_102 = arith.constant 0 : index
    %206 = vector.load %arg10[%205, %c0_102] : memref<64x512xf32, #tpu.memory_space<vmem>>, vector<8x512xf32>
    %c0_103 = arith.constant 0 : index
    %c0_104 = arith.constant 0 : index
    %207 = vector.load %arg2[%c0_103, %c0_104] : memref<128x512xf32, #tpu.memory_space<vmem>>, vector<128x512xf32>
    %cst_105 = arith.constant dense<0.000000e+00> : vector<8x512xf32>
    %208 = tpu.matmul %203, %207, %cst_105 {dimension_numbers = #tpu.dot_dimension_numbers<[1], [0], [0], [1], [0, 0, 1, 1], [], []>} : vector<8x128xf32>, vector<128x512xf32>, vector<8x512xf32> -> vector<8x512xf32>
    %209 = arith.addf %206, %208 : vector<8x512xf32>
    %210 = vector.extract_strided_slice %209 {offsets = [0, 0], sizes = [8, 128], strides = [1, 1]} : vector<8x512xf32> to vector<8x128xf32>
    %211 = arith.negf %210 : vector<8x128xf32>
    %212 = math.exp %211 : vector<8x128xf32>
    %cst_106 = arith.constant 1.000000e+00 : f32
    %213 = vector.broadcast %cst_106 : f32 to vector<8x128xf32>
    %214 = arith.addf %213, %212 : vector<8x128xf32>
    %215 = arith.divf %213, %214 : vector<8x128xf32>
    %216 = vector.extract_strided_slice %209 {offsets = [0, 128], sizes = [8, 128], strides = [1, 1]} : vector<8x512xf32> to vector<8x128xf32>
    %217 = arith.negf %216 : vector<8x128xf32>
    %218 = math.exp %217 : vector<8x128xf32>
    %cst_107 = arith.constant 1.000000e+00 : f32
    %219 = vector.broadcast %cst_107 : f32 to vector<8x128xf32>
    %220 = arith.addf %219, %218 : vector<8x128xf32>
    %221 = arith.divf %219, %220 : vector<8x128xf32>
    %222 = vector.extract_strided_slice %209 {offsets = [0, 256], sizes = [8, 128], strides = [1, 1]} : vector<8x512xf32> to vector<8x128xf32>
    %223 = math.tanh %222 : vector<8x128xf32>
    %224 = vector.extract_strided_slice %209 {offsets = [0, 384], sizes = [8, 128], strides = [1, 1]} : vector<8x512xf32> to vector<8x128xf32>
    %225 = arith.negf %224 : vector<8x128xf32>
    %226 = math.exp %225 : vector<8x128xf32>
    %cst_108 = arith.constant 1.000000e+00 : f32
    %227 = vector.broadcast %cst_108 : f32 to vector<8x128xf32>
    %228 = arith.addf %227, %226 : vector<8x128xf32>
    %229 = arith.divf %227, %228 : vector<8x128xf32>
    %230 = arith.mulf %221, %204 : vector<8x128xf32>
    %231 = arith.mulf %215, %223 : vector<8x128xf32>
    %232 = arith.addf %230, %231 : vector<8x128xf32>
    %233 = math.tanh %232 : vector<8x128xf32>
    %234 = arith.mulf %229, %233 : vector<8x128xf32>
    %c0_109 = arith.constant 0 : index
    %c0_110 = arith.constant 0 : index
    %235 = vector.load %arg13[%c0_109, %c0_110] : memref<8x128xf32, #tpu.memory_space<vmem>>, vector<8x128xf32>
    tpu.vector_store %arg13[%c0_109, %c0_110], %234 {strides = array<i32>} : memref<8x128xf32, #tpu.memory_space<vmem>>, vector<8x128xf32>,
    %c0_111 = arith.constant 0 : index
    %c0_112 = arith.constant 0 : index
    %236 = vector.load %arg14[%c0_111, %c0_112] : memref<8x128xf32, #tpu.memory_space<vmem>>, vector<8x128xf32>
    tpu.vector_store %arg14[%c0_111, %c0_112], %232 {strides = array<i32>} : memref<8x128xf32, #tpu.memory_space<vmem>>, vector<8x128xf32>,
    %237 = arith.index_cast %202 : i32 to index
    %c0_113 = arith.constant 0 : index
    %238 = vector.load %arg11[%237, %c0_113] : memref<64x128xf32, #tpu.memory_space<vmem>>, vector<8x128xf32>
    tpu.vector_store %arg11[%237, %c0_113], %234 {strides = array<i32>} : memref<64x128xf32, #tpu.memory_space<vmem>>, vector<8x128xf32>,
    %c6_i32 = arith.constant 6 : i32
    %c8_i32_114 = arith.constant 8 : i32
    %239 = arith.muli %c6_i32, %c8_i32_114 : i32
    %240 = tpu.assume_multiple %239, 8 : i32
    %c0_115 = arith.constant 0 : index
    %c0_116 = arith.constant 0 : index
    %241 = vector.load %arg13[%c0_115, %c0_116] : memref<8x128xf32, #tpu.memory_space<vmem>>, vector<8x128xf32>
    %c0_117 = arith.constant 0 : index
    %c0_118 = arith.constant 0 : index
    %242 = vector.load %arg14[%c0_117, %c0_118] : memref<8x128xf32, #tpu.memory_space<vmem>>, vector<8x128xf32>
    %243 = arith.index_cast %240 : i32 to index
    %c0_119 = arith.constant 0 : index
    %244 = vector.load %arg10[%243, %c0_119] : memref<64x512xf32, #tpu.memory_space<vmem>>, vector<8x512xf32>
    %c0_120 = arith.constant 0 : index
    %c0_121 = arith.constant 0 : index
    %245 = vector.load %arg2[%c0_120, %c0_121] : memref<128x512xf32, #tpu.memory_space<vmem>>, vector<128x512xf32>
    %cst_122 = arith.constant dense<0.000000e+00> : vector<8x512xf32>
    %246 = tpu.matmul %241, %245, %cst_122 {dimension_numbers = #tpu.dot_dimension_numbers<[1], [0], [0], [1], [0, 0, 1, 1], [], []>} : vector<8x128xf32>, vector<128x512xf32>, vector<8x512xf32> -> vector<8x512xf32>
    %247 = arith.addf %244, %246 : vector<8x512xf32>
    %248 = vector.extract_strided_slice %247 {offsets = [0, 0], sizes = [8, 128], strides = [1, 1]} : vector<8x512xf32> to vector<8x128xf32>
    %249 = arith.negf %248 : vector<8x128xf32>
    %250 = math.exp %249 : vector<8x128xf32>
    %cst_123 = arith.constant 1.000000e+00 : f32
    %251 = vector.broadcast %cst_123 : f32 to vector<8x128xf32>
    %252 = arith.addf %251, %250 : vector<8x128xf32>
    %253 = arith.divf %251, %252 : vector<8x128xf32>
    %254 = vector.extract_strided_slice %247 {offsets = [0, 128], sizes = [8, 128], strides = [1, 1]} : vector<8x512xf32> to vector<8x128xf32>
    %255 = arith.negf %254 : vector<8x128xf32>
    %256 = math.exp %255 : vector<8x128xf32>
    %cst_124 = arith.constant 1.000000e+00 : f32
    %257 = vector.broadcast %cst_124 : f32 to vector<8x128xf32>
    %258 = arith.addf %257, %256 : vector<8x128xf32>
    %259 = arith.divf %257, %258 : vector<8x128xf32>
    %260 = vector.extract_strided_slice %247 {offsets = [0, 256], sizes = [8, 128], strides = [1, 1]} : vector<8x512xf32> to vector<8x128xf32>
    %261 = math.tanh %260 : vector<8x128xf32>
    %262 = vector.extract_strided_slice %247 {offsets = [0, 384], sizes = [8, 128], strides = [1, 1]} : vector<8x512xf32> to vector<8x128xf32>
    %263 = arith.negf %262 : vector<8x128xf32>
    %264 = math.exp %263 : vector<8x128xf32>
    %cst_125 = arith.constant 1.000000e+00 : f32
    %265 = vector.broadcast %cst_125 : f32 to vector<8x128xf32>
    %266 = arith.addf %265, %264 : vector<8x128xf32>
    %267 = arith.divf %265, %266 : vector<8x128xf32>
    %268 = arith.mulf %259, %242 : vector<8x128xf32>
    %269 = arith.mulf %253, %261 : vector<8x128xf32>
    %270 = arith.addf %268, %269 : vector<8x128xf32>
    %271 = math.tanh %270 : vector<8x128xf32>
    %272 = arith.mulf %267, %271 : vector<8x128xf32>
    %c0_126 = arith.constant 0 : index
    %c0_127 = arith.constant 0 : index
    %273 = vector.load %arg13[%c0_126, %c0_127] : memref<8x128xf32, #tpu.memory_space<vmem>>, vector<8x128xf32>
    tpu.vector_store %arg13[%c0_126, %c0_127], %272 {strides = array<i32>} : memref<8x128xf32, #tpu.memory_space<vmem>>, vector<8x128xf32>,
    %c0_128 = arith.constant 0 : index
    %c0_129 = arith.constant 0 : index
    %274 = vector.load %arg14[%c0_128, %c0_129] : memref<8x128xf32, #tpu.memory_space<vmem>>, vector<8x128xf32>
    tpu.vector_store %arg14[%c0_128, %c0_129], %270 {strides = array<i32>} : memref<8x128xf32, #tpu.memory_space<vmem>>, vector<8x128xf32>,
    %275 = arith.index_cast %240 : i32 to index
    %c0_130 = arith.constant 0 : index
    %276 = vector.load %arg11[%275, %c0_130] : memref<64x128xf32, #tpu.memory_space<vmem>>, vector<8x128xf32>
    tpu.vector_store %arg11[%275, %c0_130], %272 {strides = array<i32>} : memref<64x128xf32, #tpu.memory_space<vmem>>, vector<8x128xf32>,
    %c7_i32 = arith.constant 7 : i32
    %c8_i32_131 = arith.constant 8 : i32
    %277 = arith.muli %c7_i32, %c8_i32_131 : i32
    %278 = tpu.assume_multiple %277, 8 : i32
    %c0_132 = arith.constant 0 : index
    %c0_133 = arith.constant 0 : index
    %279 = vector.load %arg13[%c0_132, %c0_133] : memref<8x128xf32, #tpu.memory_space<vmem>>, vector<8x128xf32>
    %c0_134 = arith.constant 0 : index
    %c0_135 = arith.constant 0 : index
    %280 = vector.load %arg14[%c0_134, %c0_135] : memref<8x128xf32, #tpu.memory_space<vmem>>, vector<8x128xf32>
    %281 = arith.index_cast %278 : i32 to index
    %c0_136 = arith.constant 0 : index
    %282 = vector.load %arg10[%281, %c0_136] : memref<64x512xf32, #tpu.memory_space<vmem>>, vector<8x512xf32>
    %c0_137 = arith.constant 0 : index
    %c0_138 = arith.constant 0 : index
    %283 = vector.load %arg2[%c0_137, %c0_138] : memref<128x512xf32, #tpu.memory_space<vmem>>, vector<128x512xf32>
    %cst_139 = arith.constant dense<0.000000e+00> : vector<8x512xf32>
    %284 = tpu.matmul %279, %283, %cst_139 {dimension_numbers = #tpu.dot_dimension_numbers<[1], [0], [0], [1], [0, 0, 1, 1], [], []>} : vector<8x128xf32>, vector<128x512xf32>, vector<8x512xf32> -> vector<8x512xf32>
    %285 = arith.addf %282, %284 : vector<8x512xf32>
    %286 = vector.extract_strided_slice %285 {offsets = [0, 0], sizes = [8, 128], strides = [1, 1]} : vector<8x512xf32> to vector<8x128xf32>
    %287 = arith.negf %286 : vector<8x128xf32>
    %288 = math.exp %287 : vector<8x128xf32>
    %cst_140 = arith.constant 1.000000e+00 : f32
    %289 = vector.broadcast %cst_140 : f32 to vector<8x128xf32>
    %290 = arith.addf %289, %288 : vector<8x128xf32>
    %291 = arith.divf %289, %290 : vector<8x128xf32>
    %292 = vector.extract_strided_slice %285 {offsets = [0, 128], sizes = [8, 128], strides = [1, 1]} : vector<8x512xf32> to vector<8x128xf32>
    %293 = arith.negf %292 : vector<8x128xf32>
    %294 = math.exp %293 : vector<8x128xf32>
    %cst_141 = arith.constant 1.000000e+00 : f32
    %295 = vector.broadcast %cst_141 : f32 to vector<8x128xf32>
    %296 = arith.addf %295, %294 : vector<8x128xf32>
    %297 = arith.divf %295, %296 : vector<8x128xf32>
    %298 = vector.extract_strided_slice %285 {offsets = [0, 256], sizes = [8, 128], strides = [1, 1]} : vector<8x512xf32> to vector<8x128xf32>
    %299 = math.tanh %298 : vector<8x128xf32>
    %300 = vector.extract_strided_slice %285 {offsets = [0, 384], sizes = [8, 128], strides = [1, 1]} : vector<8x512xf32> to vector<8x128xf32>
    %301 = arith.negf %300 : vector<8x128xf32>
    %302 = math.exp %301 : vector<8x128xf32>
    %cst_142 = arith.constant 1.000000e+00 : f32
    %303 = vector.broadcast %cst_142 : f32 to vector<8x128xf32>
    %304 = arith.addf %303, %302 : vector<8x128xf32>
    %305 = arith.divf %303, %304 : vector<8x128xf32>
    %306 = arith.mulf %297, %280 : vector<8x128xf32>
    %307 = arith.mulf %291, %299 : vector<8x128xf32>
    %308 = arith.addf %306, %307 : vector<8x128xf32>
    %309 = math.tanh %308 : vector<8x128xf32>
    %310 = arith.mulf %305, %309 : vector<8x128xf32>
    %c0_143 = arith.constant 0 : index
    %c0_144 = arith.constant 0 : index
    %311 = vector.load %arg13[%c0_143, %c0_144] : memref<8x128xf32, #tpu.memory_space<vmem>>, vector<8x128xf32>
    tpu.vector_store %arg13[%c0_143, %c0_144], %310 {strides = array<i32>} : memref<8x128xf32, #tpu.memory_space<vmem>>, vector<8x128xf32>,
    %c0_145 = arith.constant 0 : index
    %c0_146 = arith.constant 0 : index
    %312 = vector.load %arg14[%c0_145, %c0_146] : memref<8x128xf32, #tpu.memory_space<vmem>>, vector<8x128xf32>
    tpu.vector_store %arg14[%c0_145, %c0_146], %308 {strides = array<i32>} : memref<8x128xf32, #tpu.memory_space<vmem>>, vector<8x128xf32>,
    %313 = arith.index_cast %278 : i32 to index
    %c0_147 = arith.constant 0 : index
    %314 = vector.load %arg11[%313, %c0_147] : memref<64x128xf32, #tpu.memory_space<vmem>>, vector<8x128xf32>
    tpu.vector_store %arg11[%313, %c0_147], %310 {strides = array<i32>} : memref<64x128xf32, #tpu.memory_space<vmem>>, vector<8x128xf32>,
    %c8_i32_148 = arith.constant 8 : i32
    %c0_149 = arith.constant 0 : index
    %c0_150 = arith.constant 0 : index
    %315 = vector.load %arg11[%c0_149, %c0_150] : memref<64x128xf32, #tpu.memory_space<vmem>>, vector<64x128xf32>
    %c0_151 = arith.constant 0 : index
    %c0_152 = arith.constant 0 : index
    %316 = vector.load %arg4[%c0_151, %c0_152] : memref<128x512xf32, #tpu.memory_space<vmem>>, vector<128x512xf32>
    %cst_153 = arith.constant dense<0.000000e+00> : vector<64x512xf32>
    %317 = tpu.matmul %315, %316, %cst_153 {dimension_numbers = #tpu.dot_dimension_numbers<[1], [0], [0], [1], [0, 0, 1, 1], [], []>} : vector<64x128xf32>, vector<128x512xf32>, vector<64x512xf32> -> vector<64x512xf32>
    %c0_154 = arith.constant 0 : index
    %c0_155 = arith.constant 0 : index
    %318 = vector.load %arg6[%c0_154, %c0_155] : memref<1x512xf32, #tpu.memory_space<vmem>>, vector<1x512xf32>
    %319 = vector.broadcast %318 : vector<1x512xf32> to vector<64x512xf32>
    %320 = arith.addf %317, %319 : vector<64x512xf32>
    %c0_156 = arith.constant 0 : index
    %c0_157 = arith.constant 0 : index
    %321 = vector.load %arg10[%c0_156, %c0_157] : memref<64x512xf32, #tpu.memory_space<vmem>>, vector<64x512xf32>
    tpu.vector_store %arg10[%c0_156, %c0_157], %320 {strides = array<i32>} : memref<64x512xf32, #tpu.memory_space<vmem>>, vector<64x512xf32>,
    %cst_158 = arith.constant 0.000000e+00 : f32
    %322 = vector.broadcast %cst_158 : f32 to vector<8x128xf32>
    %c0_159 = arith.constant 0 : index
    %c0_160 = arith.constant 0 : index
    %323 = vector.load %arg13[%c0_159, %c0_160] : memref<8x128xf32, #tpu.memory_space<vmem>>, vector<8x128xf32>
    tpu.vector_store %arg13[%c0_159, %c0_160], %322 {strides = array<i32>} : memref<8x128xf32, #tpu.memory_space<vmem>>, vector<8x128xf32>,
    %cst_161 = arith.constant 0.000000e+00 : f32
    %324 = vector.broadcast %cst_161 : f32 to vector<8x128xf32>
    %c0_162 = arith.constant 0 : index
    %c0_163 = arith.constant 0 : index
    %325 = vector.load %arg14[%c0_162, %c0_163] : memref<8x128xf32, #tpu.memory_space<vmem>>, vector<8x128xf32>
    tpu.vector_store %arg14[%c0_162, %c0_163], %324 {strides = array<i32>} : memref<8x128xf32, #tpu.memory_space<vmem>>, vector<8x128xf32>,
    %c0_i32_164 = arith.constant 0 : i32
    %c8_i32_165 = arith.constant 8 : i32
    %326 = arith.muli %c0_i32_164, %c8_i32_165 : i32
    %327 = tpu.assume_multiple %326, 8 : i32
    %c0_166 = arith.constant 0 : index
    %c0_167 = arith.constant 0 : index
    %328 = vector.load %arg13[%c0_166, %c0_167] : memref<8x128xf32, #tpu.memory_space<vmem>>, vector<8x128xf32>
    %c0_168 = arith.constant 0 : index
    %c0_169 = arith.constant 0 : index
    %329 = vector.load %arg14[%c0_168, %c0_169] : memref<8x128xf32, #tpu.memory_space<vmem>>, vector<8x128xf32>
    %330 = arith.index_cast %327 : i32 to index
    %c0_170 = arith.constant 0 : index
    %331 = vector.load %arg10[%330, %c0_170] : memref<64x512xf32, #tpu.memory_space<vmem>>, vector<8x512xf32>
    %c0_171 = arith.constant 0 : index
    %c0_172 = arith.constant 0 : index
    %332 = vector.load %arg5[%c0_171, %c0_172] : memref<128x512xf32, #tpu.memory_space<vmem>>, vector<128x512xf32>
    %cst_173 = arith.constant dense<0.000000e+00> : vector<8x512xf32>
    %333 = tpu.matmul %328, %332, %cst_173 {dimension_numbers = #tpu.dot_dimension_numbers<[1], [0], [0], [1], [0, 0, 1, 1], [], []>} : vector<8x128xf32>, vector<128x512xf32>, vector<8x512xf32> -> vector<8x512xf32>
    %334 = arith.addf %331, %333 : vector<8x512xf32>
    %335 = vector.extract_strided_slice %334 {offsets = [0, 0], sizes = [8, 128], strides = [1, 1]} : vector<8x512xf32> to vector<8x128xf32>
    %336 = arith.negf %335 : vector<8x128xf32>
    %337 = math.exp %336 : vector<8x128xf32>
    %cst_174 = arith.constant 1.000000e+00 : f32
    %338 = vector.broadcast %cst_174 : f32 to vector<8x128xf32>
    %339 = arith.addf %338, %337 : vector<8x128xf32>
    %340 = arith.divf %338, %339 : vector<8x128xf32>
    %341 = vector.extract_strided_slice %334 {offsets = [0, 128], sizes = [8, 128], strides = [1, 1]} : vector<8x512xf32> to vector<8x128xf32>
    %342 = arith.negf %341 : vector<8x128xf32>
    %343 = math.exp %342 : vector<8x128xf32>
    %cst_175 = arith.constant 1.000000e+00 : f32
    %344 = vector.broadcast %cst_175 : f32 to vector<8x128xf32>
    %345 = arith.addf %344, %343 : vector<8x128xf32>
    %346 = arith.divf %344, %345 : vector<8x128xf32>
    %347 = vector.extract_strided_slice %334 {offsets = [0, 256], sizes = [8, 128], strides = [1, 1]} : vector<8x512xf32> to vector<8x128xf32>
    %348 = math.tanh %347 : vector<8x128xf32>
    %349 = vector.extract_strided_slice %334 {offsets = [0, 384], sizes = [8, 128], strides = [1, 1]} : vector<8x512xf32> to vector<8x128xf32>
    %350 = arith.negf %349 : vector<8x128xf32>
    %351 = math.exp %350 : vector<8x128xf32>
    %cst_176 = arith.constant 1.000000e+00 : f32
    %352 = vector.broadcast %cst_176 : f32 to vector<8x128xf32>
    %353 = arith.addf %352, %351 : vector<8x128xf32>
    %354 = arith.divf %352, %353 : vector<8x128xf32>
    %355 = arith.mulf %346, %329 : vector<8x128xf32>
    %356 = arith.mulf %340, %348 : vector<8x128xf32>
    %357 = arith.addf %355, %356 : vector<8x128xf32>
    %358 = math.tanh %357 : vector<8x128xf32>
    %359 = arith.mulf %354, %358 : vector<8x128xf32>
    %c0_177 = arith.constant 0 : index
    %c0_178 = arith.constant 0 : index
    %360 = vector.load %arg13[%c0_177, %c0_178] : memref<8x128xf32, #tpu.memory_space<vmem>>, vector<8x128xf32>
    tpu.vector_store %arg13[%c0_177, %c0_178], %359 {strides = array<i32>} : memref<8x128xf32, #tpu.memory_space<vmem>>, vector<8x128xf32>,
    %c0_179 = arith.constant 0 : index
    %c0_180 = arith.constant 0 : index
    %361 = vector.load %arg14[%c0_179, %c0_180] : memref<8x128xf32, #tpu.memory_space<vmem>>, vector<8x128xf32>
    tpu.vector_store %arg14[%c0_179, %c0_180], %357 {strides = array<i32>} : memref<8x128xf32, #tpu.memory_space<vmem>>, vector<8x128xf32>,
    %c1_i32_181 = arith.constant 1 : i32
    %c8_i32_182 = arith.constant 8 : i32
    %362 = arith.muli %c1_i32_181, %c8_i32_182 : i32
    %363 = tpu.assume_multiple %362, 8 : i32
    %c0_183 = arith.constant 0 : index
    %c0_184 = arith.constant 0 : index
    %364 = vector.load %arg13[%c0_183, %c0_184] : memref<8x128xf32, #tpu.memory_space<vmem>>, vector<8x128xf32>
    %c0_185 = arith.constant 0 : index
    %c0_186 = arith.constant 0 : index
    %365 = vector.load %arg14[%c0_185, %c0_186] : memref<8x128xf32, #tpu.memory_space<vmem>>, vector<8x128xf32>
    %366 = arith.index_cast %363 : i32 to index
    %c0_187 = arith.constant 0 : index
    %367 = vector.load %arg10[%366, %c0_187] : memref<64x512xf32, #tpu.memory_space<vmem>>, vector<8x512xf32>
    %c0_188 = arith.constant 0 : index
    %c0_189 = arith.constant 0 : index
    %368 = vector.load %arg5[%c0_188, %c0_189] : memref<128x512xf32, #tpu.memory_space<vmem>>, vector<128x512xf32>
    %cst_190 = arith.constant dense<0.000000e+00> : vector<8x512xf32>
    %369 = tpu.matmul %364, %368, %cst_190 {dimension_numbers = #tpu.dot_dimension_numbers<[1], [0], [0], [1], [0, 0, 1, 1], [], []>} : vector<8x128xf32>, vector<128x512xf32>, vector<8x512xf32> -> vector<8x512xf32>
    %370 = arith.addf %367, %369 : vector<8x512xf32>
    %371 = vector.extract_strided_slice %370 {offsets = [0, 0], sizes = [8, 128], strides = [1, 1]} : vector<8x512xf32> to vector<8x128xf32>
    %372 = arith.negf %371 : vector<8x128xf32>
    %373 = math.exp %372 : vector<8x128xf32>
    %cst_191 = arith.constant 1.000000e+00 : f32
    %374 = vector.broadcast %cst_191 : f32 to vector<8x128xf32>
    %375 = arith.addf %374, %373 : vector<8x128xf32>
    %376 = arith.divf %374, %375 : vector<8x128xf32>
    %377 = vector.extract_strided_slice %370 {offsets = [0, 128], sizes = [8, 128], strides = [1, 1]} : vector<8x512xf32> to vector<8x128xf32>
    %378 = arith.negf %377 : vector<8x128xf32>
    %379 = math.exp %378 : vector<8x128xf32>
    %cst_192 = arith.constant 1.000000e+00 : f32
    %380 = vector.broadcast %cst_192 : f32 to vector<8x128xf32>
    %381 = arith.addf %380, %379 : vector<8x128xf32>
    %382 = arith.divf %380, %381 : vector<8x128xf32>
    %383 = vector.extract_strided_slice %370 {offsets = [0, 256], sizes = [8, 128], strides = [1, 1]} : vector<8x512xf32> to vector<8x128xf32>
    %384 = math.tanh %383 : vector<8x128xf32>
    %385 = vector.extract_strided_slice %370 {offsets = [0, 384], sizes = [8, 128], strides = [1, 1]} : vector<8x512xf32> to vector<8x128xf32>
    %386 = arith.negf %385 : vector<8x128xf32>
    %387 = math.exp %386 : vector<8x128xf32>
    %cst_193 = arith.constant 1.000000e+00 : f32
    %388 = vector.broadcast %cst_193 : f32 to vector<8x128xf32>
    %389 = arith.addf %388, %387 : vector<8x128xf32>
    %390 = arith.divf %388, %389 : vector<8x128xf32>
    %391 = arith.mulf %382, %365 : vector<8x128xf32>
    %392 = arith.mulf %376, %384 : vector<8x128xf32>
    %393 = arith.addf %391, %392 : vector<8x128xf32>
    %394 = math.tanh %393 : vector<8x128xf32>
    %395 = arith.mulf %390, %394 : vector<8x128xf32>
    %c0_194 = arith.constant 0 : index
    %c0_195 = arith.constant 0 : index
    %396 = vector.load %arg13[%c0_194, %c0_195] : memref<8x128xf32, #tpu.memory_space<vmem>>, vector<8x128xf32>
    tpu.vector_store %arg13[%c0_194, %c0_195], %395 {strides = array<i32>} : memref<8x128xf32, #tpu.memory_space<vmem>>, vector<8x128xf32>,
    %c0_196 = arith.constant 0 : index
    %c0_197 = arith.constant 0 : index
    %397 = vector.load %arg14[%c0_196, %c0_197] : memref<8x128xf32, #tpu.memory_space<vmem>>, vector<8x128xf32>
    tpu.vector_store %arg14[%c0_196, %c0_197], %393 {strides = array<i32>} : memref<8x128xf32, #tpu.memory_space<vmem>>, vector<8x128xf32>,
    %c2_i32_198 = arith.constant 2 : i32
    %c8_i32_199 = arith.constant 8 : i32
    %398 = arith.muli %c2_i32_198, %c8_i32_199 : i32
    %399 = tpu.assume_multiple %398, 8 : i32
    %c0_200 = arith.constant 0 : index
    %c0_201 = arith.constant 0 : index
    %400 = vector.load %arg13[%c0_200, %c0_201] : memref<8x128xf32, #tpu.memory_space<vmem>>, vector<8x128xf32>
    %c0_202 = arith.constant 0 : index
    %c0_203 = arith.constant 0 : index
    %401 = vector.load %arg14[%c0_202, %c0_203] : memref<8x128xf32, #tpu.memory_space<vmem>>, vector<8x128xf32>
    %402 = arith.index_cast %399 : i32 to index
    %c0_204 = arith.constant 0 : index
    %403 = vector.load %arg10[%402, %c0_204] : memref<64x512xf32, #tpu.memory_space<vmem>>, vector<8x512xf32>
    %c0_205 = arith.constant 0 : index
    %c0_206 = arith.constant 0 : index
    %404 = vector.load %arg5[%c0_205, %c0_206] : memref<128x512xf32, #tpu.memory_space<vmem>>, vector<128x512xf32>
    %cst_207 = arith.constant dense<0.000000e+00> : vector<8x512xf32>
    %405 = tpu.matmul %400, %404, %cst_207 {dimension_numbers = #tpu.dot_dimension_numbers<[1], [0], [0], [1], [0, 0, 1, 1], [], []>} : vector<8x128xf32>, vector<128x512xf32>, vector<8x512xf32> -> vector<8x512xf32>
    %406 = arith.addf %403, %405 : vector<8x512xf32>
    %407 = vector.extract_strided_slice %406 {offsets = [0, 0], sizes = [8, 128], strides = [1, 1]} : vector<8x512xf32> to vector<8x128xf32>
    %408 = arith.negf %407 : vector<8x128xf32>
    %409 = math.exp %408 : vector<8x128xf32>
    %cst_208 = arith.constant 1.000000e+00 : f32
    %410 = vector.broadcast %cst_208 : f32 to vector<8x128xf32>
    %411 = arith.addf %410, %409 : vector<8x128xf32>
    %412 = arith.divf %410, %411 : vector<8x128xf32>
    %413 = vector.extract_strided_slice %406 {offsets = [0, 128], sizes = [8, 128], strides = [1, 1]} : vector<8x512xf32> to vector<8x128xf32>
    %414 = arith.negf %413 : vector<8x128xf32>
    %415 = math.exp %414 : vector<8x128xf32>
    %cst_209 = arith.constant 1.000000e+00 : f32
    %416 = vector.broadcast %cst_209 : f32 to vector<8x128xf32>
    %417 = arith.addf %416, %415 : vector<8x128xf32>
    %418 = arith.divf %416, %417 : vector<8x128xf32>
    %419 = vector.extract_strided_slice %406 {offsets = [0, 256], sizes = [8, 128], strides = [1, 1]} : vector<8x512xf32> to vector<8x128xf32>
    %420 = math.tanh %419 : vector<8x128xf32>
    %421 = vector.extract_strided_slice %406 {offsets = [0, 384], sizes = [8, 128], strides = [1, 1]} : vector<8x512xf32> to vector<8x128xf32>
    %422 = arith.negf %421 : vector<8x128xf32>
    %423 = math.exp %422 : vector<8x128xf32>
    %cst_210 = arith.constant 1.000000e+00 : f32
    %424 = vector.broadcast %cst_210 : f32 to vector<8x128xf32>
    %425 = arith.addf %424, %423 : vector<8x128xf32>
    %426 = arith.divf %424, %425 : vector<8x128xf32>
    %427 = arith.mulf %418, %401 : vector<8x128xf32>
    %428 = arith.mulf %412, %420 : vector<8x128xf32>
    %429 = arith.addf %427, %428 : vector<8x128xf32>
    %430 = math.tanh %429 : vector<8x128xf32>
    %431 = arith.mulf %426, %430 : vector<8x128xf32>
    %c0_211 = arith.constant 0 : index
    %c0_212 = arith.constant 0 : index
    %432 = vector.load %arg13[%c0_211, %c0_212] : memref<8x128xf32, #tpu.memory_space<vmem>>, vector<8x128xf32>
    tpu.vector_store %arg13[%c0_211, %c0_212], %431 {strides = array<i32>} : memref<8x128xf32, #tpu.memory_space<vmem>>, vector<8x128xf32>,
    %c0_213 = arith.constant 0 : index
    %c0_214 = arith.constant 0 : index
    %433 = vector.load %arg14[%c0_213, %c0_214] : memref<8x128xf32, #tpu.memory_space<vmem>>, vector<8x128xf32>
    tpu.vector_store %arg14[%c0_213, %c0_214], %429 {strides = array<i32>} : memref<8x128xf32, #tpu.memory_space<vmem>>, vector<8x128xf32>,
    %c3_i32_215 = arith.constant 3 : i32
    %c8_i32_216 = arith.constant 8 : i32
    %434 = arith.muli %c3_i32_215, %c8_i32_216 : i32
    %435 = tpu.assume_multiple %434, 8 : i32
    %c0_217 = arith.constant 0 : index
    %c0_218 = arith.constant 0 : index
    %436 = vector.load %arg13[%c0_217, %c0_218] : memref<8x128xf32, #tpu.memory_space<vmem>>, vector<8x128xf32>
    %c0_219 = arith.constant 0 : index
    %c0_220 = arith.constant 0 : index
    %437 = vector.load %arg14[%c0_219, %c0_220] : memref<8x128xf32, #tpu.memory_space<vmem>>, vector<8x128xf32>
    %438 = arith.index_cast %435 : i32 to index
    %c0_221 = arith.constant 0 : index
    %439 = vector.load %arg10[%438, %c0_221] : memref<64x512xf32, #tpu.memory_space<vmem>>, vector<8x512xf32>
    %c0_222 = arith.constant 0 : index
    %c0_223 = arith.constant 0 : index
    %440 = vector.load %arg5[%c0_222, %c0_223] : memref<128x512xf32, #tpu.memory_space<vmem>>, vector<128x512xf32>
    %cst_224 = arith.constant dense<0.000000e+00> : vector<8x512xf32>
    %441 = tpu.matmul %436, %440, %cst_224 {dimension_numbers = #tpu.dot_dimension_numbers<[1], [0], [0], [1], [0, 0, 1, 1], [], []>} : vector<8x128xf32>, vector<128x512xf32>, vector<8x512xf32> -> vector<8x512xf32>
    %442 = arith.addf %439, %441 : vector<8x512xf32>
    %443 = vector.extract_strided_slice %442 {offsets = [0, 0], sizes = [8, 128], strides = [1, 1]} : vector<8x512xf32> to vector<8x128xf32>
    %444 = arith.negf %443 : vector<8x128xf32>
    %445 = math.exp %444 : vector<8x128xf32>
    %cst_225 = arith.constant 1.000000e+00 : f32
    %446 = vector.broadcast %cst_225 : f32 to vector<8x128xf32>
    %447 = arith.addf %446, %445 : vector<8x128xf32>
    %448 = arith.divf %446, %447 : vector<8x128xf32>
    %449 = vector.extract_strided_slice %442 {offsets = [0, 128], sizes = [8, 128], strides = [1, 1]} : vector<8x512xf32> to vector<8x128xf32>
    %450 = arith.negf %449 : vector<8x128xf32>
    %451 = math.exp %450 : vector<8x128xf32>
    %cst_226 = arith.constant 1.000000e+00 : f32
    %452 = vector.broadcast %cst_226 : f32 to vector<8x128xf32>
    %453 = arith.addf %452, %451 : vector<8x128xf32>
    %454 = arith.divf %452, %453 : vector<8x128xf32>
    %455 = vector.extract_strided_slice %442 {offsets = [0, 256], sizes = [8, 128], strides = [1, 1]} : vector<8x512xf32> to vector<8x128xf32>
    %456 = math.tanh %455 : vector<8x128xf32>
    %457 = vector.extract_strided_slice %442 {offsets = [0, 384], sizes = [8, 128], strides = [1, 1]} : vector<8x512xf32> to vector<8x128xf32>
    %458 = arith.negf %457 : vector<8x128xf32>
    %459 = math.exp %458 : vector<8x128xf32>
    %cst_227 = arith.constant 1.000000e+00 : f32
    %460 = vector.broadcast %cst_227 : f32 to vector<8x128xf32>
    %461 = arith.addf %460, %459 : vector<8x128xf32>
    %462 = arith.divf %460, %461 : vector<8x128xf32>
    %463 = arith.mulf %454, %437 : vector<8x128xf32>
    %464 = arith.mulf %448, %456 : vector<8x128xf32>
    %465 = arith.addf %463, %464 : vector<8x128xf32>
    %466 = math.tanh %465 : vector<8x128xf32>
    %467 = arith.mulf %462, %466 : vector<8x128xf32>
    %c0_228 = arith.constant 0 : index
    %c0_229 = arith.constant 0 : index
    %468 = vector.load %arg13[%c0_228, %c0_229] : memref<8x128xf32, #tpu.memory_space<vmem>>, vector<8x128xf32>
    tpu.vector_store %arg13[%c0_228, %c0_229], %467 {strides = array<i32>} : memref<8x128xf32, #tpu.memory_space<vmem>>, vector<8x128xf32>,
    %c0_230 = arith.constant 0 : index
    %c0_231 = arith.constant 0 : index
    %469 = vector.load %arg14[%c0_230, %c0_231] : memref<8x128xf32, #tpu.memory_space<vmem>>, vector<8x128xf32>
    tpu.vector_store %arg14[%c0_230, %c0_231], %465 {strides = array<i32>} : memref<8x128xf32, #tpu.memory_space<vmem>>, vector<8x128xf32>,
    %c4_i32_232 = arith.constant 4 : i32
    %c8_i32_233 = arith.constant 8 : i32
    %470 = arith.muli %c4_i32_232, %c8_i32_233 : i32
    %471 = tpu.assume_multiple %470, 8 : i32
    %c0_234 = arith.constant 0 : index
    %c0_235 = arith.constant 0 : index
    %472 = vector.load %arg13[%c0_234, %c0_235] : memref<8x128xf32, #tpu.memory_space<vmem>>, vector<8x128xf32>
    %c0_236 = arith.constant 0 : index
    %c0_237 = arith.constant 0 : index
    %473 = vector.load %arg14[%c0_236, %c0_237] : memref<8x128xf32, #tpu.memory_space<vmem>>, vector<8x128xf32>
    %474 = arith.index_cast %471 : i32 to index
    %c0_238 = arith.constant 0 : index
    %475 = vector.load %arg10[%474, %c0_238] : memref<64x512xf32, #tpu.memory_space<vmem>>, vector<8x512xf32>
    %c0_239 = arith.constant 0 : index
    %c0_240 = arith.constant 0 : index
    %476 = vector.load %arg5[%c0_239, %c0_240] : memref<128x512xf32, #tpu.memory_space<vmem>>, vector<128x512xf32>
    %cst_241 = arith.constant dense<0.000000e+00> : vector<8x512xf32>
    %477 = tpu.matmul %472, %476, %cst_241 {dimension_numbers = #tpu.dot_dimension_numbers<[1], [0], [0], [1], [0, 0, 1, 1], [], []>} : vector<8x128xf32>, vector<128x512xf32>, vector<8x512xf32> -> vector<8x512xf32>
    %478 = arith.addf %475, %477 : vector<8x512xf32>
    %479 = vector.extract_strided_slice %478 {offsets = [0, 0], sizes = [8, 128], strides = [1, 1]} : vector<8x512xf32> to vector<8x128xf32>
    %480 = arith.negf %479 : vector<8x128xf32>
    %481 = math.exp %480 : vector<8x128xf32>
    %cst_242 = arith.constant 1.000000e+00 : f32
    %482 = vector.broadcast %cst_242 : f32 to vector<8x128xf32>
    %483 = arith.addf %482, %481 : vector<8x128xf32>
    %484 = arith.divf %482, %483 : vector<8x128xf32>
    %485 = vector.extract_strided_slice %478 {offsets = [0, 128], sizes = [8, 128], strides = [1, 1]} : vector<8x512xf32> to vector<8x128xf32>
    %486 = arith.negf %485 : vector<8x128xf32>
    %487 = math.exp %486 : vector<8x128xf32>
    %cst_243 = arith.constant 1.000000e+00 : f32
    %488 = vector.broadcast %cst_243 : f32 to vector<8x128xf32>
    %489 = arith.addf %488, %487 : vector<8x128xf32>
    %490 = arith.divf %488, %489 : vector<8x128xf32>
    %491 = vector.extract_strided_slice %478 {offsets = [0, 256], sizes = [8, 128], strides = [1, 1]} : vector<8x512xf32> to vector<8x128xf32>
    %492 = math.tanh %491 : vector<8x128xf32>
    %493 = vector.extract_strided_slice %478 {offsets = [0, 384], sizes = [8, 128], strides = [1, 1]} : vector<8x512xf32> to vector<8x128xf32>
    %494 = arith.negf %493 : vector<8x128xf32>
    %495 = math.exp %494 : vector<8x128xf32>
    %cst_244 = arith.constant 1.000000e+00 : f32
    %496 = vector.broadcast %cst_244 : f32 to vector<8x128xf32>
    %497 = arith.addf %496, %495 : vector<8x128xf32>
    %498 = arith.divf %496, %497 : vector<8x128xf32>
    %499 = arith.mulf %490, %473 : vector<8x128xf32>
    %500 = arith.mulf %484, %492 : vector<8x128xf32>
    %501 = arith.addf %499, %500 : vector<8x128xf32>
    %502 = math.tanh %501 : vector<8x128xf32>
    %503 = arith.mulf %498, %502 : vector<8x128xf32>
    %c0_245 = arith.constant 0 : index
    %c0_246 = arith.constant 0 : index
    %504 = vector.load %arg13[%c0_245, %c0_246] : memref<8x128xf32, #tpu.memory_space<vmem>>, vector<8x128xf32>
    tpu.vector_store %arg13[%c0_245, %c0_246], %503 {strides = array<i32>} : memref<8x128xf32, #tpu.memory_space<vmem>>, vector<8x128xf32>,
    %c0_247 = arith.constant 0 : index
    %c0_248 = arith.constant 0 : index
    %505 = vector.load %arg14[%c0_247, %c0_248] : memref<8x128xf32, #tpu.memory_space<vmem>>, vector<8x128xf32>
    tpu.vector_store %arg14[%c0_247, %c0_248], %501 {strides = array<i32>} : memref<8x128xf32, #tpu.memory_space<vmem>>, vector<8x128xf32>,
    %c5_i32_249 = arith.constant 5 : i32
    %c8_i32_250 = arith.constant 8 : i32
    %506 = arith.muli %c5_i32_249, %c8_i32_250 : i32
    %507 = tpu.assume_multiple %506, 8 : i32
    %c0_251 = arith.constant 0 : index
    %c0_252 = arith.constant 0 : index
    %508 = vector.load %arg13[%c0_251, %c0_252] : memref<8x128xf32, #tpu.memory_space<vmem>>, vector<8x128xf32>
    %c0_253 = arith.constant 0 : index
    %c0_254 = arith.constant 0 : index
    %509 = vector.load %arg14[%c0_253, %c0_254] : memref<8x128xf32, #tpu.memory_space<vmem>>, vector<8x128xf32>
    %510 = arith.index_cast %507 : i32 to index
    %c0_255 = arith.constant 0 : index
    %511 = vector.load %arg10[%510, %c0_255] : memref<64x512xf32, #tpu.memory_space<vmem>>, vector<8x512xf32>
    %c0_256 = arith.constant 0 : index
    %c0_257 = arith.constant 0 : index
    %512 = vector.load %arg5[%c0_256, %c0_257] : memref<128x512xf32, #tpu.memory_space<vmem>>, vector<128x512xf32>
    %cst_258 = arith.constant dense<0.000000e+00> : vector<8x512xf32>
    %513 = tpu.matmul %508, %512, %cst_258 {dimension_numbers = #tpu.dot_dimension_numbers<[1], [0], [0], [1], [0, 0, 1, 1], [], []>} : vector<8x128xf32>, vector<128x512xf32>, vector<8x512xf32> -> vector<8x512xf32>
    %514 = arith.addf %511, %513 : vector<8x512xf32>
    %515 = vector.extract_strided_slice %514 {offsets = [0, 0], sizes = [8, 128], strides = [1, 1]} : vector<8x512xf32> to vector<8x128xf32>
    %516 = arith.negf %515 : vector<8x128xf32>
    %517 = math.exp %516 : vector<8x128xf32>
    %cst_259 = arith.constant 1.000000e+00 : f32
    %518 = vector.broadcast %cst_259 : f32 to vector<8x128xf32>
    %519 = arith.addf %518, %517 : vector<8x128xf32>
    %520 = arith.divf %518, %519 : vector<8x128xf32>
    %521 = vector.extract_strided_slice %514 {offsets = [0, 128], sizes = [8, 128], strides = [1, 1]} : vector<8x512xf32> to vector<8x128xf32>
    %522 = arith.negf %521 : vector<8x128xf32>
    %523 = math.exp %522 : vector<8x128xf32>
    %cst_260 = arith.constant 1.000000e+00 : f32
    %524 = vector.broadcast %cst_260 : f32 to vector<8x128xf32>
    %525 = arith.addf %524, %523 : vector<8x128xf32>
    %526 = arith.divf %524, %525 : vector<8x128xf32>
    %527 = vector.extract_strided_slice %514 {offsets = [0, 256], sizes = [8, 128], strides = [1, 1]} : vector<8x512xf32> to vector<8x128xf32>
    %528 = math.tanh %527 : vector<8x128xf32>
    %529 = vector.extract_strided_slice %514 {offsets = [0, 384], sizes = [8, 128], strides = [1, 1]} : vector<8x512xf32> to vector<8x128xf32>
    %530 = arith.negf %529 : vector<8x128xf32>
    %531 = math.exp %530 : vector<8x128xf32>
    %cst_261 = arith.constant 1.000000e+00 : f32
    %532 = vector.broadcast %cst_261 : f32 to vector<8x128xf32>
    %533 = arith.addf %532, %531 : vector<8x128xf32>
    %534 = arith.divf %532, %533 : vector<8x128xf32>
    %535 = arith.mulf %526, %509 : vector<8x128xf32>
    %536 = arith.mulf %520, %528 : vector<8x128xf32>
    %537 = arith.addf %535, %536 : vector<8x128xf32>
    %538 = math.tanh %537 : vector<8x128xf32>
    %539 = arith.mulf %534, %538 : vector<8x128xf32>
    %c0_262 = arith.constant 0 : index
    %c0_263 = arith.constant 0 : index
    %540 = vector.load %arg13[%c0_262, %c0_263] : memref<8x128xf32, #tpu.memory_space<vmem>>, vector<8x128xf32>
    tpu.vector_store %arg13[%c0_262, %c0_263], %539 {strides = array<i32>} : memref<8x128xf32, #tpu.memory_space<vmem>>, vector<8x128xf32>,
    %c0_264 = arith.constant 0 : index
    %c0_265 = arith.constant 0 : index
    %541 = vector.load %arg14[%c0_264, %c0_265] : memref<8x128xf32, #tpu.memory_space<vmem>>, vector<8x128xf32>
    tpu.vector_store %arg14[%c0_264, %c0_265], %537 {strides = array<i32>} : memref<8x128xf32, #tpu.memory_space<vmem>>, vector<8x128xf32>,
    %c6_i32_266 = arith.constant 6 : i32
    %c8_i32_267 = arith.constant 8 : i32
    %542 = arith.muli %c6_i32_266, %c8_i32_267 : i32
    %543 = tpu.assume_multiple %542, 8 : i32
    %c0_268 = arith.constant 0 : index
    %c0_269 = arith.constant 0 : index
    %544 = vector.load %arg13[%c0_268, %c0_269] : memref<8x128xf32, #tpu.memory_space<vmem>>, vector<8x128xf32>
    %c0_270 = arith.constant 0 : index
    %c0_271 = arith.constant 0 : index
    %545 = vector.load %arg14[%c0_270, %c0_271] : memref<8x128xf32, #tpu.memory_space<vmem>>, vector<8x128xf32>
    %546 = arith.index_cast %543 : i32 to index
    %c0_272 = arith.constant 0 : index
    %547 = vector.load %arg10[%546, %c0_272] : memref<64x512xf32, #tpu.memory_space<vmem>>, vector<8x512xf32>
    %c0_273 = arith.constant 0 : index
    %c0_274 = arith.constant 0 : index
    %548 = vector.load %arg5[%c0_273, %c0_274] : memref<128x512xf32, #tpu.memory_space<vmem>>, vector<128x512xf32>
    %cst_275 = arith.constant dense<0.000000e+00> : vector<8x512xf32>
    %549 = tpu.matmul %544, %548, %cst_275 {dimension_numbers = #tpu.dot_dimension_numbers<[1], [0], [0], [1], [0, 0, 1, 1], [], []>} : vector<8x128xf32>, vector<128x512xf32>, vector<8x512xf32> -> vector<8x512xf32>
    %550 = arith.addf %547, %549 : vector<8x512xf32>
    %551 = vector.extract_strided_slice %550 {offsets = [0, 0], sizes = [8, 128], strides = [1, 1]} : vector<8x512xf32> to vector<8x128xf32>
    %552 = arith.negf %551 : vector<8x128xf32>
    %553 = math.exp %552 : vector<8x128xf32>
    %cst_276 = arith.constant 1.000000e+00 : f32
    %554 = vector.broadcast %cst_276 : f32 to vector<8x128xf32>
    %555 = arith.addf %554, %553 : vector<8x128xf32>
    %556 = arith.divf %554, %555 : vector<8x128xf32>
    %557 = vector.extract_strided_slice %550 {offsets = [0, 128], sizes = [8, 128], strides = [1, 1]} : vector<8x512xf32> to vector<8x128xf32>
    %558 = arith.negf %557 : vector<8x128xf32>
    %559 = math.exp %558 : vector<8x128xf32>
    %cst_277 = arith.constant 1.000000e+00 : f32
    %560 = vector.broadcast %cst_277 : f32 to vector<8x128xf32>
    %561 = arith.addf %560, %559 : vector<8x128xf32>
    %562 = arith.divf %560, %561 : vector<8x128xf32>
    %563 = vector.extract_strided_slice %550 {offsets = [0, 256], sizes = [8, 128], strides = [1, 1]} : vector<8x512xf32> to vector<8x128xf32>
    %564 = math.tanh %563 : vector<8x128xf32>
    %565 = vector.extract_strided_slice %550 {offsets = [0, 384], sizes = [8, 128], strides = [1, 1]} : vector<8x512xf32> to vector<8x128xf32>
    %566 = arith.negf %565 : vector<8x128xf32>
    %567 = math.exp %566 : vector<8x128xf32>
    %cst_278 = arith.constant 1.000000e+00 : f32
    %568 = vector.broadcast %cst_278 : f32 to vector<8x128xf32>
    %569 = arith.addf %568, %567 : vector<8x128xf32>
    %570 = arith.divf %568, %569 : vector<8x128xf32>
    %571 = arith.mulf %562, %545 : vector<8x128xf32>
    %572 = arith.mulf %556, %564 : vector<8x128xf32>
    %573 = arith.addf %571, %572 : vector<8x128xf32>
    %574 = math.tanh %573 : vector<8x128xf32>
    %575 = arith.mulf %570, %574 : vector<8x128xf32>
    %c0_279 = arith.constant 0 : index
    %c0_280 = arith.constant 0 : index
    %576 = vector.load %arg13[%c0_279, %c0_280] : memref<8x128xf32, #tpu.memory_space<vmem>>, vector<8x128xf32>
    tpu.vector_store %arg13[%c0_279, %c0_280], %575 {strides = array<i32>} : memref<8x128xf32, #tpu.memory_space<vmem>>, vector<8x128xf32>,
    %c0_281 = arith.constant 0 : index
    %c0_282 = arith.constant 0 : index
    %577 = vector.load %arg14[%c0_281, %c0_282] : memref<8x128xf32, #tpu.memory_space<vmem>>, vector<8x128xf32>
    tpu.vector_store %arg14[%c0_281, %c0_282], %573 {strides = array<i32>} : memref<8x128xf32, #tpu.memory_space<vmem>>, vector<8x128xf32>,
    %c7_i32_283 = arith.constant 7 : i32
    %c8_i32_284 = arith.constant 8 : i32
    %578 = arith.muli %c7_i32_283, %c8_i32_284 : i32
    %579 = tpu.assume_multiple %578, 8 : i32
    %c0_285 = arith.constant 0 : index
    %c0_286 = arith.constant 0 : index
    %580 = vector.load %arg13[%c0_285, %c0_286] : memref<8x128xf32, #tpu.memory_space<vmem>>, vector<8x128xf32>
    %c0_287 = arith.constant 0 : index
    %c0_288 = arith.constant 0 : index
    %581 = vector.load %arg14[%c0_287, %c0_288] : memref<8x128xf32, #tpu.memory_space<vmem>>, vector<8x128xf32>
    %582 = arith.index_cast %579 : i32 to index
    %c0_289 = arith.constant 0 : index
    %583 = vector.load %arg10[%582, %c0_289] : memref<64x512xf32, #tpu.memory_space<vmem>>, vector<8x512xf32>
    %c0_290 = arith.constant 0 : index
    %c0_291 = arith.constant 0 : index
    %584 = vector.load %arg5[%c0_290, %c0_291] : memref<128x512xf32, #tpu.memory_space<vmem>>, vector<128x512xf32>
    %cst_292 = arith.constant dense<0.000000e+00> : vector<8x512xf32>
    %585 = tpu.matmul %580, %584, %cst_292 {dimension_numbers = #tpu.dot_dimension_numbers<[1], [0], [0], [1], [0, 0, 1, 1], [], []>} : vector<8x128xf32>, vector<128x512xf32>, vector<8x512xf32> -> vector<8x512xf32>
    %586 = arith.addf %583, %585 : vector<8x512xf32>
    %587 = vector.extract_strided_slice %586 {offsets = [0, 0], sizes = [8, 128], strides = [1, 1]} : vector<8x512xf32> to vector<8x128xf32>
    %588 = arith.negf %587 : vector<8x128xf32>
    %589 = math.exp %588 : vector<8x128xf32>
    %cst_293 = arith.constant 1.000000e+00 : f32
    %590 = vector.broadcast %cst_293 : f32 to vector<8x128xf32>
    %591 = arith.addf %590, %589 : vector<8x128xf32>
    %592 = arith.divf %590, %591 : vector<8x128xf32>
    %593 = vector.extract_strided_slice %586 {offsets = [0, 128], sizes = [8, 128], strides = [1, 1]} : vector<8x512xf32> to vector<8x128xf32>
    %594 = arith.negf %593 : vector<8x128xf32>
    %595 = math.exp %594 : vector<8x128xf32>
    %cst_294 = arith.constant 1.000000e+00 : f32
    %596 = vector.broadcast %cst_294 : f32 to vector<8x128xf32>
    %597 = arith.addf %596, %595 : vector<8x128xf32>
    %598 = arith.divf %596, %597 : vector<8x128xf32>
    %599 = vector.extract_strided_slice %586 {offsets = [0, 256], sizes = [8, 128], strides = [1, 1]} : vector<8x512xf32> to vector<8x128xf32>
    %600 = math.tanh %599 : vector<8x128xf32>
    %601 = vector.extract_strided_slice %586 {offsets = [0, 384], sizes = [8, 128], strides = [1, 1]} : vector<8x512xf32> to vector<8x128xf32>
    %602 = arith.negf %601 : vector<8x128xf32>
    %603 = math.exp %602 : vector<8x128xf32>
    %cst_295 = arith.constant 1.000000e+00 : f32
    %604 = vector.broadcast %cst_295 : f32 to vector<8x128xf32>
    %605 = arith.addf %604, %603 : vector<8x128xf32>
    %606 = arith.divf %604, %605 : vector<8x128xf32>
    %607 = arith.mulf %598, %581 : vector<8x128xf32>
    %608 = arith.mulf %592, %600 : vector<8x128xf32>
    %609 = arith.addf %607, %608 : vector<8x128xf32>
    %610 = math.tanh %609 : vector<8x128xf32>
    %611 = arith.mulf %606, %610 : vector<8x128xf32>
    %c0_296 = arith.constant 0 : index
    %c0_297 = arith.constant 0 : index
    %612 = vector.load %arg13[%c0_296, %c0_297] : memref<8x128xf32, #tpu.memory_space<vmem>>, vector<8x128xf32>
    tpu.vector_store %arg13[%c0_296, %c0_297], %611 {strides = array<i32>} : memref<8x128xf32, #tpu.memory_space<vmem>>, vector<8x128xf32>,
    %c0_298 = arith.constant 0 : index
    %c0_299 = arith.constant 0 : index
    %613 = vector.load %arg14[%c0_298, %c0_299] : memref<8x128xf32, #tpu.memory_space<vmem>>, vector<8x128xf32>
    tpu.vector_store %arg14[%c0_298, %c0_299], %609 {strides = array<i32>} : memref<8x128xf32, #tpu.memory_space<vmem>>, vector<8x128xf32>,
    %c8_i32_300 = arith.constant 8 : i32
    %c0_301 = arith.constant 0 : index
    %c0_302 = arith.constant 0 : index
    %614 = vector.load %arg13[%c0_301, %c0_302] : memref<8x128xf32, #tpu.memory_space<vmem>>, vector<8x128xf32>
    %c0_303 = arith.constant 0 : index
    %c0_304 = arith.constant 0 : index
    %615 = vector.load %arg7[%c0_303, %c0_304] : memref<128x128xf32, #tpu.memory_space<vmem>>, vector<128x128xf32>
    %cst_305 = arith.constant dense<0.000000e+00> : vector<8x128xf32>
    %616 = tpu.matmul %614, %615, %cst_305 {dimension_numbers = #tpu.dot_dimension_numbers<[1], [0], [0], [1], [0, 0, 1, 1], [], []>} : vector<8x128xf32>, vector<128x128xf32>, vector<8x128xf32> -> vector<8x128xf32>
    %c0_306 = arith.constant 0 : index
    %c0_307 = arith.constant 0 : index
    %617 = vector.load %arg8[%c0_306, %c0_307] : memref<1x128xf32, #tpu.memory_space<vmem>>, vector<1x128xf32>
    %618 = vector.broadcast %617 : vector<1x128xf32> to vector<8x128xf32>
    %619 = arith.addf %616, %618 : vector<8x128xf32>
    %c0_308 = arith.constant 0 : index
    %c0_309 = arith.constant 0 : index
    %620 = vector.load %arg9[%c0_308, %c0_309] : memref<8x128xf32, #tpu.memory_space<vmem>>, vector<8x128xf32>
    tpu.vector_store %arg9[%c0_308, %c0_309], %619 {strides = array<i32>} : memref<8x128xf32, #tpu.memory_space<vmem>>, vector<8x128xf32>,
    return
  }
}

</mosaic_0001>

<bundles_post_ra>
// kernel: simple_lstm_forward.1
= control target key start
LH: loop header
LB: loop body
LE: loop exit
PB: predicated region body
PF: predicated region fallthrough
CT: control target
= control target key end

     0   :  { %14 = vsyncpa [#allocation8], 0  ;;  %s7311_s0 = inlined_call_operand.vmem [shape: f32[64,128], index: 0, kind: input, shape index: {}]   ;;  %s7312_s1 = inlined_call_operand.hbm [shape: f32[128,512], index: 1, kind: input, shape index: {}]   ;;  %s7313_s2 = inlined_call_operand.hbm [shape: f32[128,512], index: 2, kind: input, shape index: {}]   ;;  %s7314_s3 = inlined_call_operand.vmem [shape: f32[1,512], index: 3, kind: input, shape index: {}]   ;;  %s7315_s4 = inlined_call_operand.hbm [shape: f32[128,512], index: 4, kind: input, shape index: {}]   ;;  %s7316_s5 = inlined_call_operand.hbm [shape: f32[128,512], index: 5, kind: input, shape index: {}]   ;;  %s7317_s6 = inlined_call_operand.vmem [shape: f32[1,512], index: 6, kind: input, shape index: {}]   ;;  %s7318_s7 = inlined_call_operand.hbm [shape: f32[128,128], index: 7, kind: input, shape index: {}]   ;;  %s7319_s8 = inlined_call_operand.vmem [shape: f32[1,128], index: 8, kind: input, shape index: {}]   ;;  %s7320_s9 = inlined_call_operand.vmem [shape: f32[8,128], index: 9, kind: output, shape index: {}]  }
   0x1   :  { %15 = vsyncpa [#allocation10], 0 }
   0x2   :  { %16 = vsyncpa [#allocation13], 0  ;;  %s5302_s30 = smov [#allocation9]   ;;  %s5303_s11 = smov [#allocation12]  }
   0x3   :  { %s36_s10 = sshll.u32 %s5302_s30, 4  ;;  %s62_s12 = sshll.u32 %s5303_s11, 4  ;;  %s37_s10 = int_to_ptr.vmem [resolvable:$true] %s36_s10  ;;  %s63_s12 = int_to_ptr.vmem [resolvable:$true] %s62_s12 }
   0x4   :  { %s5204_s13 = scalar_lea.vmem %s37_s10, 8192  ;;  %p5209_p1 = scmp.lt.s32.totalorder %s37_s10, %s37_s10 }
   0x5   :  { %p5205_p0 = scmp.ne.s32.totalorder %s37_s10, %s5204_s13  ;;  %p5210_p2 = scmp.lt.s32.totalorder %s5204_s13, %s5204_s13 }
   0x7   :  { %p5211_p3 = por %p5210_p2, %p5209_p1 }
   0x9   :  { %p5212_p4 = pnand %p5211_p3, %p5205_p0 }
   0xb   :  { %5215 = shalt.err (!%p5212_p4)
}
   0xc   :  { %s5304_s14 = smov 512   ;;  %s5305_s15 = smov 32  }
   0xd   :  { %42 = dma.hbm_to_vmem [thread:$0]  %s7313_s2, 8192, %s37_s10, [#allocation10], %s5304_s14, %s5304_s14, %s5305_s15  }
   0xe   :  { %s5224_s18 = scalar_lea.vmem %s63_s12, 8192  ;;  %p5229_p6 = scmp.lt.s32.totalorder %s63_s12, %s63_s12 }
   0xf   :  { %p5225_p5 = scmp.ne.s32.totalorder %s63_s12, %s5224_s18  ;;  %p5230_p7 = scmp.lt.s32.totalorder %s5224_s18, %s5224_s18 }
  0x11   :  { %p5231_p8 = por %p5230_p7, %p5229_p6 }
  0x13   :  { %p5232_p9 = pnand %p5231_p8, %p5225_p5 }
  0x15   :  { %5235 = shalt.err (!%p5232_p9)
}
  0x16   :  { %68 = dma.hbm_to_vmem [thread:$0]  %s7316_s5, 8192, %s63_s12, [#allocation13], %s5304_s14, %s5304_s14, %s5305_s15  }
  0x17   :  { %s5306_s21 = smov [#allocation7]   ;;  %s5307_s23 = smov [#allocation11]  }
  0x18   :  { %s24_s22 = sshll.u32 %s5306_s21, 4  ;;  %s50_s24 = sshll.u32 %s5307_s23, 4  ;;  %s25_s22 = int_to_ptr.vmem [resolvable:$true] %s24_s22  ;;  %s51_s24 = int_to_ptr.vmem [resolvable:$true] %s50_s24 }
  0x19   :  { %s5244_s2 = scalar_lea.vmem %s25_s22, 8192  ;;  %p5249_p11 = scmp.lt.s32.totalorder %s25_s22, %s25_s22 }
  0x1a   :  { %p5245_p10 = scmp.ne.s32.totalorder %s25_s22, %s5244_s2  ;;  %p5250_p12 = scmp.lt.s32.totalorder %s5244_s2, %s5244_s2 }
  0x1c   :  { %p5251_p13 = por %p5250_p12, %p5249_p11 }
  0x1e   :  { %p5252_p0 = pnand %p5251_p13, %p5245_p10 }
  0x20   :  { %5255 = shalt.err (!%p5252_p0)
}
  0x21   :  { %30 = dma.hbm_to_vmem [thread:$0]  %s7312_s1, 8192, %s25_s22, [#allocation8], %s5304_s14, %s5304_s14, %s5305_s15  }
  0x22   :  { %s5264_s5 = scalar_lea.vmem %s51_s24, 8192  ;;  %p5269_p2 = scmp.lt.s32.totalorder %s51_s24, %s51_s24 }
  0x23   :  { %p5265_p1 = scmp.ne.s32.totalorder %s51_s24, %s5264_s5  ;;  %p5270_p3 = scmp.lt.s32.totalorder %s5264_s5, %s5264_s5 }
  0x25   :  { %p5271_p4 = por %p5270_p3, %p5269_p2 }
  0x27   :  { %p5272_p5 = pnand %p5271_p4, %p5265_p1 }
  0x29   :  { %5275 = shalt.err (!%p5272_p5)
}
  0x2a   :  { %56 = dma.hbm_to_vmem [thread:$0]  %s7315_s4, 8192, %s51_s24, [#allocation10], %s5304_s14, %s5304_s14, %s5305_s15  }
  0x2b   :  { %s5308_s29 = smov [#allocation14]  }
  0x2c   :  { %s76_s30 = sshll.u32 %s5308_s29, 4  ;;  %s77_s30 = int_to_ptr.vmem [resolvable:$true] %s76_s30 }
  0x2d   :  { %s5284_s10 = scalar_lea.vmem %s77_s30, 2048  ;;  %p5289_p7 = scmp.lt.s32.totalorder %s77_s30, %s77_s30 }
  0x2e   :  { %p5285_p6 = scmp.ne.s32.totalorder %s77_s30, %s5284_s10  ;;  %p5290_p8 = scmp.lt.s32.totalorder %s5284_s10, %s5284_s10 }
  0x30   :  { %p5291_p9 = por %p5290_p8, %p5289_p7 }
  0x32   :  { %p5292_p10 = pnand %p5291_p9, %p5285_p6 }
  0x34   :  { %5295 = shalt.err (!%p5292_p10)
}
  0x35   :  { %s5309_s1 = smov 128   ;;  %s5310_s11 = smov 8  }
  0x36   :  { %82 = dma.hbm_to_vmem [thread:$0]  %s7318_s7, 2048, %s77_s30, [#allocation13], %s5309_s1, %s5309_s1, %s5310_s11  }
  0x37   :  { %5296 = dma.done.wait [#allocation8], 8192  }
  0x38   :  { %5297 = vsyncadd [#allocation8], 4294959104 }
  0x39   :  { %5298 = dma.done.wait [#allocation10], 16384  }
  0x3a   :  { %5299 = vsyncadd [#allocation10], 4294950912 }
  0x3b   :  { %5300 = dma.done.wait [#allocation13], 10240  }
  0x3c   :  { %5301 = vsyncadd [#allocation13], 4294957056  ;;  %v7321_v0 = vmov 0.0   ;;  %v169_v1 = vld [vmem:[#allocation7 + $0x1e8] sm:$0xff]  ;;  %v171_v2 = vld [vmem:[#allocation7 + $0x1f8] sm:$0xff]  ;;  %vm5312_vm0 = vmmov 0  }
  0x3d   :  { %258 = vmatprep.mubr.f32.mxu0 %v7321_v0  ;;  %371 = vmatprep.mubr.f32.mxu1 %v7321_v0  ;;  %v168_v3 = vld [vmem:[#allocation7 + $0x1e0] sm:$0xff]  ;;  %v170_v4 = vld [vmem:[#allocation7 + $0x1f0] sm:$0xff]  ;;  %v165_v5 = vld [vmem:[#allocation7 + $0x1c8] sm:$0xff] }
  0x3e   :  { %194 = vmatprep.subr.mxu0 %v169_v1  ;;  %307 = vmatprep.subr.mxu1 %v171_v2  ;;  %v167_v6 = vld [vmem:[#allocation7 + $0x1d8] sm:$0xff]  ;;  %v164_v7 = vld [vmem:[#allocation7 + $0x1c0] sm:$0xff]  ;;  %v166_v8 = vld [vmem:[#allocation7 + $0x1d0] sm:$0xff] }
  0x3f   :  { %195 = vmatpush1.msra.mxu0 %v168_v3  ;;  %308 = vmatpush1.msra.mxu1 %v170_v4  ;;  %v161_v9 = vld [vmem:[#allocation7 + $0x1a8] sm:$0xff]  ;;  %v163_v10 = vld [vmem:[#allocation7 + $0x1b8] sm:$0xff]  ;;  %v160_v11 = vld [vmem:[#allocation7 + $0x1a0] sm:$0xff] }
  0x40   :  { %196 = vmatprep.subr.mxu0 %v165_v5  ;;  %309 = vmatprep.subr.mxu1 %v167_v6  ;;  %v162_v12 = vld [vmem:[#allocation7 + $0x1b0] sm:$0xff]  ;;  %v157_v13 = vld [vmem:[#allocation7 + $0x188] sm:$0xff]  ;;  %v159_v14 = vld [vmem:[#allocation7 + $0x198] sm:$0xff] }
  0x41   :  { %197 = vmatpush1.msra.mxu0 %v164_v7  ;;  %310 = vmatpush1.msra.mxu1 %v166_v8  ;;  %v156_v15 = vld [vmem:[#allocation7 + $0x180] sm:$0xff]  ;;  %v158_v16 = vld [vmem:[#allocation7 + $0x190] sm:$0xff]  ;;  %v153_v17 = vld [vmem:[#allocation7 + $0x168] sm:$0xff] }
  0x42   :  { %198 = vmatprep.subr.mxu0 %v161_v9  ;;  %311 = vmatprep.subr.mxu1 %v163_v10  ;;  %v155_v18 = vld [vmem:[#allocation7 + $0x178] sm:$0xff]  ;;  %v152_v19 = vld [vmem:[#allocation7 + $0x160] sm:$0xff]  ;;  %v154_v20 = vld [vmem:[#allocation7 + $0x170] sm:$0xff] }
  0x43   :  { %199 = vmatpush1.msra.mxu0 %v160_v11  ;;  %312 = vmatpush1.msra.mxu1 %v162_v12  ;;  %v149_v21 = vld [vmem:[#allocation7 + $0x148] sm:$0xff]  ;;  %v151_v22 = vld [vmem:[#allocation7 + $0x158] sm:$0xff]  ;;  %v148_v23 = vld [vmem:[#allocation7 + $0x140] sm:$0xff] }
  0x44   :  { %200 = vmatprep.subr.mxu0 %v157_v13  ;;  %313 = vmatprep.subr.mxu1 %v159_v14  ;;  %v150_v24 = vld [vmem:[#allocation7 + $0x150] sm:$0xff]  ;;  %v145_v25 = vld [vmem:[#allocation7 + $0x128] sm:$0xff]  ;;  %v147_v26 = vld [vmem:[#allocation7 + $0x138] sm:$0xff] }
  0x45   :  { %201 = vmatpush1.msra.mxu0 %v156_v15  ;;  %314 = vmatpush1.msra.mxu1 %v158_v16  ;;  %v144_v27 = vld [vmem:[#allocation7 + $0x120] sm:$0xff]  ;;  %v146_v28 = vld [vmem:[#allocation7 + $0x130] sm:$0xff]  ;;  %v141_v29 = vld [vmem:[#allocation7 + $0x108] sm:$0xff] }
  0x46   :  { %202 = vmatprep.subr.mxu0 %v153_v17  ;;  %315 = vmatprep.subr.mxu1 %v155_v18  ;;  %v143_v30 = vld [vmem:[#allocation7 + $0x118] sm:$0xff]  ;;  %v140_v31 = vld [vmem:[#allocation7 + $0x100] sm:$0xff]  ;;  %v142_v32 = vld [vmem:[#allocation7 + $0x110] sm:$0xff] }
  0x47   :  { %203 = vmatpush1.msra.mxu0 %v152_v19  ;;  %316 = vmatpush1.msra.mxu1 %v154_v20  ;;  %v137_v33 = vld [vmem:[#allocation7 + $0xe8] sm:$0xff]  ;;  %v139_v34 = vld [vmem:[#allocation7 + $0xf8] sm:$0xff]  ;;  %v136_v35 = vld [vmem:[#allocation7 + $0xe0] sm:$0xff] }
  0x48   :  { %204 = vmatprep.subr.mxu0 %v149_v21  ;;  %317 = vmatprep.subr.mxu1 %v151_v22  ;;  %v138_v36 = vld [vmem:[#allocation7 + $0xf0] sm:$0xff]  ;;  %v133_v37 = vld [vmem:[#allocation7 + $0xc8] sm:$0xff]  ;;  %v135_v38 = vld [vmem:[#allocation7 + $0xd8] sm:$0xff] }
  0x49   :  { %205 = vmatpush1.msra.mxu0 %v148_v23  ;;  %318 = vmatpush1.msra.mxu1 %v150_v24  ;;  %v132_v39 = vld [vmem:[#allocation7 + $0xc0] sm:$0xff]  ;;  %v134_v40 = vld [vmem:[#allocation7 + $0xd0] sm:$0xff]  ;;  %v129_v41 = vld [vmem:[#allocation7 + $0xa8] sm:$0xff] }
  0x4a   :  { %206 = vmatprep.subr.mxu0 %v145_v25  ;;  %319 = vmatprep.subr.mxu1 %v147_v26  ;;  %v131_v42 = vld [vmem:[#allocation7 + $0xb8] sm:$0xff]  ;;  %v128_v43 = vld [vmem:[#allocation7 + $0xa0] sm:$0xff]  ;;  %v130_v44 = vld [vmem:[#allocation7 + $0xb0] sm:$0xff] }
  0x4b   :  { %207 = vmatpush1.msra.mxu0 %v144_v27  ;;  %320 = vmatpush1.msra.mxu1 %v146_v28  ;;  %v125_v45 = vld [vmem:[#allocation7 + $0x88] sm:$0xff]  ;;  %v127_v46 = vld [vmem:[#allocation7 + $0x98] sm:$0xff]  ;;  %v124_v47 = vld [vmem:[#allocation7 + $0x80] sm:$0xff] }
  0x4c   :  { %208 = vmatprep.subr.mxu0 %v141_v29  ;;  %321 = vmatprep.subr.mxu1 %v143_v30  ;;  %v126_v48 = vld [vmem:[#allocation7 + $0x90] sm:$0xff]  ;;  %v121_v49 = vld [vmem:[#allocation7 + $0x68] sm:$0xff]  ;;  %v123_v50 = vld [vmem:[#allocation7 + $0x78] sm:$0xff] }
  0x4d   :  { %209 = vmatpush1.msra.mxu0 %v140_v31  ;;  %322 = vmatpush1.msra.mxu1 %v142_v32  ;;  %v120_v51 = vld [vmem:[#allocation7 + $0x60] sm:$0xff]  ;;  %v122_v52 = vld [vmem:[#allocation7 + $0x70] sm:$0xff]  ;;  %v117_v53 = vld [vmem:[#allocation7 + $0x48] sm:$0xff] }
  0x4e   :  { %210 = vmatprep.subr.mxu0 %v137_v33  ;;  %323 = vmatprep.subr.mxu1 %v139_v34  ;;  %v119_v54 = vld [vmem:[#allocation7 + $0x58] sm:$0xff]  ;;  %v116_v55 = vld [vmem:[#allocation7 + $0x40] sm:$0xff]  ;;  %v118_v56 = vld [vmem:[#allocation7 + $0x50] sm:$0xff] }
  0x4f   :  { %211 = vmatpush1.msra.mxu0 %v136_v35  ;;  %324 = vmatpush1.msra.mxu1 %v138_v36  ;;  %v113_v57 = vld [vmem:[#allocation7 + $0x28] sm:$0xff]  ;;  %v115_v58 = vld [vmem:[#allocation7 + $0x38] sm:$0xff]  ;;  %v112_v59 = vld [vmem:[#allocation7 + $0x20] sm:$0xff] }
  0x50   :  { %212 = vmatprep.subr.mxu0 %v133_v37  ;;  %325 = vmatprep.subr.mxu1 %v135_v38  ;;  %v114_v60 = vld [vmem:[#allocation7 + $0x30] sm:$0xff]  ;;  %v109_v61 = vld [vmem:[#allocation7 + $0x8] sm:$0xff]  ;;  %v111_v62 = vld [vmem:[#allocation7 + $0x18] sm:$0xff] }
  0x51   :  { %213 = vmatpush1.msra.mxu0 %v132_v39  ;;  %326 = vmatpush1.msra.mxu1 %v134_v40  ;;  %v108_v63 = vld [vmem:[#allocation7] sm:$0xff]  ;;  %v110_v1 = vld [vmem:[#allocation7 + $0x10] sm:$0xff]  ;;  %v5395_v3 = vld [vmem:[#allocation9 + $0x1e8] sm:$0xff] }
  0x52   :  { %214 = vmatprep.subr.mxu0 %v129_v41  ;;  %327 = vmatprep.subr.mxu1 %v131_v42  ;;  %v100_v2 = vld [vmem:[%s7311_s0] sm:$0xff]  ;;  %v5397_v4 = vld [vmem:[#allocation9 + $0x1f8] sm:$0xff]  ;;  %v5401_v6 = vld [vmem:[#allocation9 + $0x1f0] sm:$0xff] }
  0x53   :  { %215 = vmatpush1.msra.mxu0 %v128_v43  ;;  %328 = vmatpush1.msra.mxu1 %v130_v44  ;;  %v5399_v5 = vld [vmem:[#allocation9 + $0x1e0] sm:$0xff]  ;;  %v5403_v7 = vld [vmem:[#allocation9 + $0x1c8] sm:$0xff]  ;;  %v5405_v8 = vld [vmem:[#allocation9 + $0x1d8] sm:$0xff] }
  0x54   :  { %216 = vmatprep.subr.mxu0 %v125_v45  ;;  %329 = vmatprep.subr.mxu1 %v127_v46  ;;  %v5411_v9 = vld [vmem:[#allocation9 + $0x1c0] sm:$0xff]  ;;  %v5413_v10 = vld [vmem:[#allocation9 + $0x1d0] sm:$0xff]  ;;  %v101_v11 = vld [vmem:[%s7311_s0 + $0x8] sm:$0xff] }
  0x55   :  { %217 = vmatpush1.msra.mxu0 %v124_v47  ;;  %330 = vmatpush1.msra.mxu1 %v126_v48  ;;  %v5422_v12 = vld [vmem:[#allocation9 + $0x1a8] sm:$0xff]  ;;  %v5424_v13 = vld [vmem:[#allocation9 + $0x1b8] sm:$0xff]  ;;  %v5428_v14 = vld [vmem:[#allocation9 + $0x1a0] sm:$0xff] }
  0x56   :  { %218 = vmatprep.subr.mxu0 %v121_v49  ;;  %331 = vmatprep.subr.mxu1 %v123_v50  ;;  %v5430_v15 = vld [vmem:[#allocation9 + $0x1b0] sm:$0xff]  ;;  %v5432_v16 = vld [vmem:[#allocation9 + $0x188] sm:$0xff]  ;;  %v5434_v17 = vld [vmem:[#allocation9 + $0x198] sm:$0xff] }
  0x57   :  { %219 = vmatpush1.msra.mxu0 %v120_v51  ;;  %332 = vmatpush1.msra.mxu1 %v122_v52  ;;  %v5440_v18 = vld [vmem:[#allocation9 + $0x180] sm:$0xff]  ;;  %v5442_v19 = vld [vmem:[#allocation9 + $0x190] sm:$0xff]  ;;  %v5451_v21 = vld [vmem:[#allocation9 + $0x168] sm:$0xff] }
  0x58   :  { %220 = vmatprep.subr.mxu0 %v117_v53  ;;  %333 = vmatprep.subr.mxu1 %v119_v54  ;;  %v102_v20 = vld [vmem:[%s7311_s0 + $0x10] sm:$0xff]  ;;  %v5453_v22 = vld [vmem:[#allocation9 + $0x178] sm:$0xff]  ;;  %v5457_v23 = vld [vmem:[#allocation9 + $0x160] sm:$0xff] }
  0x59   :  { %221 = vmatpush1.msra.mxu0 %v116_v55  ;;  %334 = vmatpush1.msra.mxu1 %v118_v56  ;;  %v5459_v24 = vld [vmem:[#allocation9 + $0x170] sm:$0xff]  ;;  %v5461_v25 = vld [vmem:[#allocation9 + $0x148] sm:$0xff]  ;;  %v5463_v26 = vld [vmem:[#allocation9 + $0x158] sm:$0xff] }
  0x5a   :  { %222 = vmatprep.subr.mxu0 %v113_v57  ;;  %335 = vmatprep.subr.mxu1 %v115_v58  ;;  %v5469_v27 = vld [vmem:[#allocation9 + $0x140] sm:$0xff]  ;;  %v5471_v28 = vld [vmem:[#allocation9 + $0x150] sm:$0xff]  ;;  %v103_v29 = vld [vmem:[%s7311_s0 + $0x18] sm:$0xff] }
  0x5b   :  { %223 = vmatpush1.msra.mxu0 %v112_v59  ;;  %336 = vmatpush1.msra.mxu1 %v114_v60  ;;  %v5480_v30 = vld [vmem:[#allocation9 + $0x128] sm:$0xff]  ;;  %v5482_v31 = vld [vmem:[#allocation9 + $0x138] sm:$0xff]  ;;  %v5486_v32 = vld [vmem:[#allocation9 + $0x120] sm:$0xff] }
  0x5c   :  { %224 = vmatprep.subr.mxu0 %v109_v61  ;;  %337 = vmatprep.subr.mxu1 %v111_v62  ;;  %v5488_v33 = vld [vmem:[#allocation9 + $0x130] sm:$0xff]  ;;  %v5490_v34 = vld [vmem:[#allocation9 + $0x108] sm:$0xff]  ;;  %v5492_v35 = vld [vmem:[#allocation9 + $0x118] sm:$0xff] }
  0x5d   :  { %225 = vmatpush1.msra.mxu0 %v108_v63  ;;  %338 = vmatpush1.msra.mxu1 %v110_v1  ;;  %v5498_v36 = vld [vmem:[#allocation9 + $0x100] sm:$0xff]  ;;  %v5500_v37 = vld [vmem:[#allocation9 + $0x110] sm:$0xff]  ;;  %v5509_v39 = vld [vmem:[#allocation9 + $0xe8] sm:$0xff] }
  0x5e   :  { %259 = vmatmul.mubr.f32.vlgmr.msra.gmra.mxu0 %v100_v2  ;;  %372 = vmatmul.mubr.f32.vlgmr.msra.gmra.mxu1 %v100_v2  ;;  %v104_v38 = vld [vmem:[%s7311_s0 + $0x20] sm:$0xff]  ;;  %v5511_v40 = vld [vmem:[#allocation9 + $0xf8] sm:$0xff]  ;;  %v5517_v42 = vld [vmem:[#allocation9 + $0xf0] sm:$0xff] }
  0x5f   :  { %527 = vmatprep.subr.mxu0 %v5395_v3  ;;  %598 = vmatprep.subr.mxu1 %v5397_v4  ;;  %v5515_v41 = vld [vmem:[#allocation9 + $0xe0] sm:$0xff]  ;;  %v5519_v43 = vld [vmem:[#allocation9 + $0xc8] sm:$0xff]  ;;  %v5521_v44 = vld [vmem:[#allocation9 + $0xd8] sm:$0xff] }
  0x60   :  { %528 = vmatpush1.msra.mxu0 %v5399_v5  ;;  %599 = vmatpush1.msra.mxu1 %v5401_v6  ;;  %v5527_v45 = vld [vmem:[#allocation9 + $0xc0] sm:$0xff]  ;;  %v5529_v46 = vld [vmem:[#allocation9 + $0xd0] sm:$0xff]  ;;  %v105_v47 = vld [vmem:[%s7311_s0 + $0x28] sm:$0xff] }
  0x61   :  { %529 = vmatprep.subr.mxu0 %v5403_v7  ;;  %600 = vmatprep.subr.mxu1 %v5405_v8  ;;  %v5538_v48 = vld [vmem:[#allocation9 + $0xa8] sm:$0xff]  ;;  %v5540_v49 = vld [vmem:[#allocation9 + $0xb8] sm:$0xff]  ;;  %v5544_v50 = vld [vmem:[#allocation9 + $0xa0] sm:$0xff] }
  0x62   :  { %264 = vmatprep.mubr.f32.mxu0 %v7321_v0  ;;  %377 = vmatprep.mubr.f32.mxu1 %v7321_v0  ;;  %v5546_v51 = vld [vmem:[#allocation9 + $0xb0] sm:$0xff]  ;;  %v5548_v52 = vld [vmem:[#allocation9 + $0x88] sm:$0xff]  ;;  %v5550_v53 = vld [vmem:[#allocation9 + $0x98] sm:$0xff] }
  0x63   :  { %530 = vmatpush1.msra.mxu0 %v5411_v9  ;;  %601 = vmatpush1.msra.mxu1 %v5413_v10  ;;  %7505 = vst [vmem:[#allocation18_spill] sm:$0xff] %v5546_v51  ;;  %7506 = vst [vmem:[#allocation19_spill] sm:$0xff] %v5548_v52  ;;  %v5556_v54 = vld [vmem:[#allocation9 + $0x80] sm:$0xff]  ;;  %v5558_v55 = vld [vmem:[#allocation9 + $0x90] sm:$0xff] }
  0x64   :  { %265 = vmatmul.mubr.f32.gmra.mxu0 %v101_v11  ;;  %378 = vmatmul.mubr.f32.gmra.mxu1 %v101_v11  ;;  %7507 = vst [vmem:[#allocation20_spill] sm:$0xff] %v5550_v53  ;;  %7508 = vst [vmem:[#allocation21_spill] sm:$0xff] %v5556_v54  ;;  %v106_v56 = vld [vmem:[%s7311_s0 + $0x30] sm:$0xff]  ;;  %v5567_v57 = vld [vmem:[#allocation9 + $0x68] sm:$0xff] }
  0x65   :  { %531 = vmatprep.subr.mxu0 %v5422_v12  ;;  %602 = vmatprep.subr.mxu1 %v5424_v13  ;;  %7509 = vst [vmem:[#allocation22_spill] sm:$0xff] %v5558_v55  ;;  %7510 = vst [vmem:[#allocation23_spill] sm:$0xff] %v5567_v57  ;;  %v5569_v58 = vld [vmem:[#allocation9 + $0x78] sm:$0xff]  ;;  %v5573_v59 = vld [vmem:[#allocation9 + $0x60] sm:$0xff] }
  0x66   :  { %532 = vmatpush1.msra.mxu0 %v5428_v14  ;;  %603 = vmatpush1.msra.mxu1 %v5430_v15  ;;  %7511 = vst [vmem:[#allocation24_spill] sm:$0xff] %v5569_v58  ;;  %7512 = vst [vmem:[#allocation25_spill] sm:$0xff] %v5573_v59  ;;  %v5575_v60 = vld [vmem:[#allocation9 + $0x70] sm:$0xff]  ;;  %v5577_v61 = vld [vmem:[#allocation9 + $0x48] sm:$0xff] }
  0x67   :  { %533 = vmatprep.subr.mxu0 %v5432_v16  ;;  %604 = vmatprep.subr.mxu1 %v5434_v17  ;;  %7513 = vst [vmem:[#allocation26_spill] sm:$0xff] %v5575_v60  ;;  %7514 = vst [vmem:[#allocation27_spill] sm:$0xff] %v5577_v61  ;;  %v5579_v62 = vld [vmem:[#allocation9 + $0x58] sm:$0xff]  ;;  %v5585_v63 = vld [vmem:[#allocation9 + $0x40] sm:$0xff] }
  0x68   :  { %270 = vmatprep.mubr.f32.mxu0 %v7321_v0  ;;  %383 = vmatprep.mubr.f32.mxu1 %v7321_v0  ;;  %7515 = vst [vmem:[#allocation28_spill] sm:$0xff] %v5579_v62  ;;  %7516 = vst [vmem:[#allocation29_spill] sm:$0xff] %v5585_v63  ;;  %v5587_v1 = vld [vmem:[#allocation9 + $0x50] sm:$0xff]  ;;  %v107_v2 = vld [vmem:[%s7311_s0 + $0x38] sm:$0xff] }
  0x69   :  { %534 = vmatpush1.msra.mxu0 %v5440_v18  ;;  %605 = vmatpush1.msra.mxu1 %v5442_v19  ;;  %7517 = vst [vmem:[#allocation30_spill] sm:$0xff] %v5587_v1  ;;  %v5596_v11 = vld [vmem:[#allocation9 + $0x28] sm:$0xff] }
  0x6a   :  { %271 = vmatmul.mubr.f32.gmra.mxu0 %v102_v20  ;;  %384 = vmatmul.mubr.f32.gmra.mxu1 %v102_v20  ;;  %7518 = vst [vmem:[#allocation31_spill] sm:$0xff] %v5596_v11  ;;  %v5598_v20 = vld [vmem:[#allocation9 + $0x38] sm:$0xff] }
  0x6b   :  { %535 = vmatprep.subr.mxu0 %v5451_v21  ;;  %606 = vmatprep.subr.mxu1 %v5453_v22  ;;  %7519 = vst [vmem:[#allocation32_spill] sm:$0xff] %v5598_v20 }
  0x6c   :  { %536 = vmatpush1.msra.mxu0 %v5457_v23  ;;  %607 = vmatpush1.msra.mxu1 %v5459_v24 }
  0x6d   :  { %537 = vmatprep.subr.mxu0 %v5461_v25  ;;  %608 = vmatprep.subr.mxu1 %v5463_v26 }
  0x6e   :  { %276 = vmatprep.mubr.f32.mxu0 %v7321_v0  ;;  %389 = vmatprep.mubr.f32.mxu1 %v7321_v0 }
  0x6f   :  { %538 = vmatpush1.msra.mxu0 %v5469_v27  ;;  %609 = vmatpush1.msra.mxu1 %v5471_v28 }
  0x70   :  { %277 = vmatmul.mubr.f32.gmra.mxu0 %v103_v29  ;;  %390 = vmatmul.mubr.f32.gmra.mxu1 %v103_v29  ;;  %v5602_v29 = vld [vmem:[#allocation9 + $0x20] sm:$0xff] }
  0x71   :  { %539 = vmatprep.subr.mxu0 %v5480_v30  ;;  %610 = vmatprep.subr.mxu1 %v5482_v31  ;;  %7520 = vst [vmem:[#allocation33_spill] sm:$0xff] %v5602_v29 }
  0x72   :  { %540 = vmatpush1.msra.mxu0 %v5486_v32  ;;  %611 = vmatpush1.msra.mxu1 %v5488_v33 }
  0x73   :  { %541 = vmatprep.subr.mxu0 %v5490_v34  ;;  %612 = vmatprep.subr.mxu1 %v5492_v35 }
  0x74   :  { %282 = vmatprep.mubr.f32.mxu0 %v7321_v0  ;;  %395 = vmatprep.mubr.f32.mxu1 %v7321_v0 }
  0x75   :  { %542 = vmatpush1.msra.mxu0 %v5498_v36  ;;  %613 = vmatpush1.msra.mxu1 %v5500_v37 }
  0x76   :  { %283 = vmatmul.mubr.f32.gmra.mxu0 %v104_v38  ;;  %396 = vmatmul.mubr.f32.gmra.mxu1 %v104_v38  ;;  %v5604_v38 = vld [vmem:[#allocation9 + $0x30] sm:$0xff] }
  0x77   :  { %543 = vmatprep.subr.mxu0 %v5509_v39  ;;  %614 = vmatprep.subr.mxu1 %v5511_v40  ;;  %7521 = vst [vmem:[#allocation34_spill] sm:$0xff] %v5604_v38 }
  0x78   :  { %544 = vmatpush1.msra.mxu0 %v5515_v41  ;;  %615 = vmatpush1.msra.mxu1 %v5517_v42 }
  0x79   :  { %545 = vmatprep.subr.mxu0 %v5519_v43  ;;  %616 = vmatprep.subr.mxu1 %v5521_v44 }
  0x7a   :  { %288 = vmatprep.mubr.f32.mxu0 %v7321_v0  ;;  %401 = vmatprep.mubr.f32.mxu1 %v7321_v0 }
  0x7b   :  { %546 = vmatpush1.msra.mxu0 %v5527_v45  ;;  %617 = vmatpush1.msra.mxu1 %v5529_v46 }
  0x7c   :  { %289 = vmatmul.mubr.f32.gmra.mxu0 %v105_v47  ;;  %402 = vmatmul.mubr.f32.gmra.mxu1 %v105_v47  ;;  %v5606_v47 = vld [vmem:[#allocation9 + $0x8] sm:$0xff] }
  0x7d   :  { %547 = vmatprep.subr.mxu0 %v5538_v48  ;;  %618 = vmatprep.subr.mxu1 %v5540_v49  ;;  %7522 = vst [vmem:[#allocation35_spill] sm:$0xff] %v5606_v47 }
  0x7e   :  { %548 = vmatpush1.msra.mxu0 %v5544_v50  ;;  %619 = vmatpush1.msra.mxu1 %v5546_v51 }
  0x7f   :  { %549 = vmatprep.subr.mxu0 %v5548_v52  ;;  %620 = vmatprep.subr.mxu1 %v5550_v53 }
  0x80   :  { %294 = vmatprep.mubr.f32.mxu0 %v7321_v0  ;;  %407 = vmatprep.mubr.f32.mxu1 %v7321_v0 }
  0x81   :  { %550 = vmatpush1.msra.mxu0 %v5556_v54  ;;  %621 = vmatpush1.msra.mxu1 %v5558_v55 }
  0x82   :  { %295 = vmatmul.mubr.f32.gmra.mxu0 %v106_v56  ;;  %408 = vmatmul.mubr.f32.gmra.mxu1 %v106_v56  ;;  %v5608_v56 = vld [vmem:[#allocation9 + $0x18] sm:$0xff] }
  0x83   :  { %551 = vmatprep.subr.mxu0 %v5567_v57  ;;  %622 = vmatprep.subr.mxu1 %v5569_v58  ;;  %7523 = vst [vmem:[#allocation36_spill] sm:$0xff] %v5608_v56 }
  0x84   :  { %552 = vmatpush1.msra.mxu0 %v5573_v59  ;;  %623 = vmatpush1.msra.mxu1 %v5575_v60 }
  0x85   :  { %553 = vmatprep.subr.mxu0 %v5577_v61  ;;  %624 = vmatprep.subr.mxu1 %v5579_v62 }
  0x86   :  { %300 = vmatprep.mubr.f32.mxu0 %v7321_v0  ;;  %413 = vmatprep.mubr.f32.mxu1 %v7321_v0  ;;  %v5612_v0 = vld [vmem:[#allocation9] sm:$0xff] }
  0x87   :  { %554 = vmatpush1.msra.mxu0 %v5585_v63  ;;  %625 = vmatpush1.msra.mxu1 %v5587_v1  ;;  %7524 = vst [vmem:[#allocation37_spill] sm:$0xff] %v5612_v0  ;;  %v5616_v1 = vld [vmem:[#allocation9 + $0x10] sm:$0xff] }
  0x88   :  { %301 = vmatmul.mubr.f32.gmra.mxu0 %v107_v2  ;;  %414 = vmatmul.mubr.f32.gmra.mxu1 %v107_v2  ;;  %7525 = vst [vmem:[#allocation38_spill] sm:$0xff] %v5616_v1  ;;  %v7526_v2 = vmov 0.0  }
  0x89   :  { %555 = vmatprep.subr.mxu0 %v5596_v11  ;;  %626 = vmatprep.subr.mxu1 %v5598_v20 }
  0x8a   :  { %556 = vmatpush1.msra.mxu0 %v5602_v29  ;;  %627 = vmatpush1.msra.mxu1 %v5604_v38 }
  0x8b   :  { %557 = vmatprep.subr.mxu0 %v5606_v47  ;;  %628 = vmatprep.subr.mxu1 %v5608_v56 }
  0x8c   :  { %558 = vmatpush1.msra.mxu0 %v5612_v0  ;;  %591 = vmatprep.mubr.f32.mxu0 %v7526_v2 }
  0x8d   :  { %629 = vmatpush1.msra.mxu1 %v5616_v1  ;;  %662 = vmatprep.mubr.f32.mxu1 %v7526_v2 }
  0x8e   :  { %592 = vmatmul.mubr.f32.vlgmr.msra.gmra.mxu0 %v7526_v2  ;;  %663 = vmatmul.mubr.f32.vlgmr.msra.gmra.mxu1 %v7526_v2 }
  0x8f   :  { %773 = vmatprep.subr.mxu0 %v5395_v3  ;;  %844 = vmatprep.subr.mxu1 %v5397_v4 }
  0x90   :  { %774 = vmatpush1.msra.mxu0 %v5399_v5  ;;  %845 = vmatpush1.msra.mxu1 %v5401_v6 }
  0x91   :  { %775 = vmatprep.subr.mxu0 %v5403_v7  ;;  %846 = vmatprep.subr.mxu1 %v5405_v8 }
  0x92   :  { %776 = vmatpush1.msra.mxu0 %v5411_v9  ;;  %847 = vmatpush1.msra.mxu1 %v5413_v10 }
  0x93   :  { %777 = vmatprep.subr.mxu0 %v5422_v12  ;;  %848 = vmatprep.subr.mxu1 %v5424_v13 }
  0x94   :  { %778 = vmatpush1.msra.mxu0 %v5428_v14  ;;  %849 = vmatpush1.msra.mxu1 %v5430_v15 }
  0x95   :  { %779 = vmatprep.subr.mxu0 %v5432_v16  ;;  %850 = vmatprep.subr.mxu1 %v5434_v17 }
  0x96   :  { %780 = vmatpush1.msra.mxu0 %v5440_v18  ;;  %851 = vmatpush1.msra.mxu1 %v5442_v19 }
  0x97   :  { %781 = vmatprep.subr.mxu0 %v5451_v21  ;;  %852 = vmatprep.subr.mxu1 %v5453_v22 }
  0x98   :  { %782 = vmatpush1.msra.mxu0 %v5457_v23  ;;  %853 = vmatpush1.msra.mxu1 %v5459_v24 }
  0x99   :  { %783 = vmatprep.subr.mxu0 %v5461_v25  ;;  %854 = vmatprep.subr.mxu1 %v5463_v26 }
  0x9a   :  { %784 = vmatpush1.msra.mxu0 %v5469_v27  ;;  %855 = vmatpush1.msra.mxu1 %v5471_v28 }
  0x9b   :  { %785 = vmatprep.subr.mxu0 %v5480_v30  ;;  %856 = vmatprep.subr.mxu1 %v5482_v31 }
  0x9c   :  { %786 = vmatpush1.msra.mxu0 %v5486_v32  ;;  %857 = vmatpush1.msra.mxu1 %v5488_v33 }
  0x9d   :  { %787 = vmatprep.subr.mxu0 %v5490_v34  ;;  %858 = vmatprep.subr.mxu1 %v5492_v35 }
  0x9e   :  { %788 = vmatpush1.msra.mxu0 %v5498_v36  ;;  %859 = vmatpush1.msra.mxu1 %v5500_v37 }
  0x9f   :  { %789 = vmatprep.subr.mxu0 %v5509_v39  ;;  %860 = vmatprep.subr.mxu1 %v5511_v40 }
  0xa0   :  { %790 = vmatpush1.msra.mxu0 %v5515_v41  ;;  %861 = vmatpush1.msra.mxu1 %v5517_v42 }
  0xa1   :  { %791 = vmatprep.subr.mxu0 %v5519_v43  ;;  %862 = vmatprep.subr.mxu1 %v5521_v44 }
  0xa2   :  { %792 = vmatpush1.msra.mxu0 %v5527_v45  ;;  %863 = vmatpush1.msra.mxu1 %v5529_v46 }
  0xa3   :  { %793 = vmatprep.subr.mxu0 %v5538_v48  ;;  %864 = vmatprep.subr.mxu1 %v5540_v49 }
  0xa4   :  { %794 = vmatpush1.msra.mxu0 %v5544_v50  ;;  %865 = vmatpush1.msra.mxu1 %v5546_v51 }
  0xa5   :  { %795 = vmatprep.subr.mxu0 %v5548_v52  ;;  %866 = vmatprep.subr.mxu1 %v5550_v53  ;;  %v7527_v52 = vld [vmem:[#allocation30_spill] sm:$0xff] }
  0xa6   :  { %796 = vmatpush1.msra.mxu0 %v5556_v54  ;;  %867 = vmatpush1.msra.mxu1 %v5558_v55 }
  0xa7   :  { %797 = vmatprep.subr.mxu0 %v5567_v57  ;;  %868 = vmatprep.subr.mxu1 %v5569_v58 }
  0xa8   :  { %798 = vmatpush1.msra.mxu0 %v5573_v59  ;;  %869 = vmatpush1.msra.mxu1 %v5575_v60 }
  0xa9   :  { %799 = vmatprep.subr.mxu0 %v5577_v61  ;;  %870 = vmatprep.subr.mxu1 %v5579_v62 }
  0xaa   :  { %800 = vmatpush1.msra.mxu0 %v5585_v63  ;;  %871 = vmatpush1.msra.mxu1 %v7527_v52 }
  0xab   :  { %801 = vmatprep.subr.mxu0 %v5596_v11  ;;  %872 = vmatprep.subr.mxu1 %v5598_v20  ;;  %v174_v20 = vlaneseq }
  0xac   :  { %802 = vmatpush1.msra.mxu0 %v5602_v29  ;;  %873 = vmatpush1.msra.mxu1 %v5604_v38 }
  0xad   :  { %803 = vmatprep.subr.mxu0 %v5606_v47  ;;  %874 = vmatprep.subr.mxu1 %v5608_v56  ;;  %v5694_v29 = vshrl.u32 %v174_v20, 7 }
  0xae   :  { %804 = vmatpush1.msra.mxu0 %v5612_v0  ;;  %837 = vmatprep.mubr.f32.mxu0 %v7526_v2 }
  0xaf   :  { %875 = vmatpush1.msra.mxu1 %v5616_v1  ;;  %908 = vmatprep.mubr.f32.mxu1 %v7526_v2  ;;  %7528 = vst [vmem:[#allocation39_spill] sm:$0xff] %v5694_v29  ;;  %v7342_v56 = vsub.s32 0, %v5694_v29  ;;  %v7344_v0 = vsub.s32 2, %v5694_v29  ;;  %v172_v1 = vld [vmem:[%s7314_s3] sm:$0xf]  ;;  %v7349_v20 = vsub.s32 3, %v5694_v29 }
  0xb0   :  { %1020 = vmatprep.subr.mxu0 %v5395_v3  ;;  %1091 = vmatprep.subr.mxu1 %v5397_v4  ;;  %v7348_v4 = vsub.s32 1, %v5694_v29 }
  0xb1   :  { %v177_v11 = vrot.slane %v172_v1, %v7342_v56  ;;  %v5715_v52 = vrot.slane %v172_v1, %v7344_v0  ;;  %v5721_v60 = vrot.slane %v172_v1, %v7349_v20 }
  0xb2   :  { %v181_v61 = vrot.slane %v172_v1, %v7348_v4 }
 0x11e   :  { %v5696_v38 = vpop.f32.mrf.mxu0  ;;  %v5698_v47 = vpop.f32.mrf.mxu1 }
 0x120   :  { %v5705_v2 = vpop.f32.mrf.mxu0  ;;  %v5707_v3 = vpop.f32.mrf.mxu1 }
 0x124   :  { %v266_v63 = vpop.f32.mrf.mxu0  ;;  %v379_v62 = vpop.f32.mrf.mxu1 }
 0x125   :  { %v5723_v59 = vadd.f32 %v266_v63, %v177_v11  ;;  %v5726_v58 = vadd.f32 %v379_v62, %v5715_v52 }
 0x126   :  { %v268_v57 = vpop.f32.mrf.mxu0  ;;  %v381_v56 = vpop.f32.mrf.mxu1 }
 0x127   :  { %7529 = vst [vmem:[#allocation40_spill] sm:$0xff] %v5726_v58  ;;  %v5728_v55 = vadd.f32 %v268_v57, %v181_v61  ;;  %v5731_v0 = vadd.f32 %v381_v56, %v5721_v60 }
 0x129   :  { %7530 = vst [vmem:[#allocation41_spill] sm:$0xff] %v5728_v55  ;;  %7531 = vst [vmem:[#allocation42_spill] sm:$0xff] %v5731_v0 }
 0x12a   :  { %v272_v54 = vpop.f32.mrf.mxu0  ;;  %v385_v53 = vpop.f32.mrf.mxu1 }
 0x12b   :  { %v5733_v51 = vadd.f32 %v272_v54, %v177_v11  ;;  %v5736_v4 = vadd.f32 %v385_v53, %v5715_v52 }
 0x12c   :  { %v274_v1 = vpop.f32.mrf.mxu0  ;;  %v387_v63 = vpop.f32.mrf.mxu1 }
 0x12d   :  { %7532 = vst [vmem:[#allocation43_spill] sm:$0xff] %v5733_v51  ;;  %7533 = vst [vmem:[#allocation44_spill] sm:$0xff] %v5736_v4  ;;  %v5738_v20 = vadd.f32 %v274_v1, %v181_v61  ;;  %v5741_v62 = vadd.f32 %v387_v63, %v5721_v60 }
 0x12f   :  { %7534 = vst [vmem:[#allocation45_spill] sm:$0xff] %v5738_v20  ;;  %7535 = vst [vmem:[#allocation46_spill] sm:$0xff] %v5741_v62 }
 0x130   :  { %v278_v29 = vpop.f32.mrf.mxu0  ;;  %v391_v57 = vpop.f32.mrf.mxu1 }
 0x131   :  { %v5743_v58 = vadd.f32 %v278_v29, %v177_v11  ;;  %v5746_v56 = vadd.f32 %v391_v57, %v5715_v52 }
 0x132   :  { %v280_v0 = vpop.f32.mrf.mxu0  ;;  %v393_v54 = vpop.f32.mrf.mxu1 }
 0x133   :  { %7536 = vst [vmem:[#allocation47_spill] sm:$0xff] %v5743_v58  ;;  %7537 = vst [vmem:[#allocation48_spill] sm:$0xff] %v5746_v56  ;;  %v5748_v51 = vadd.f32 %v280_v0, %v181_v61  ;;  %v5751_v53 = vadd.f32 %v393_v54, %v5721_v60 }
 0x135   :  { %7538 = vst [vmem:[#allocation49_spill] sm:$0xff] %v5748_v51  ;;  %7539 = vst [vmem:[#allocation50_spill] sm:$0xff] %v5751_v53 }
 0x136   :  { %v284_v4 = vpop.f32.mrf.mxu0  ;;  %v397_v1 = vpop.f32.mrf.mxu1 }
 0x137   :  { %v5753_v20 = vadd.f32 %v284_v4, %v177_v11  ;;  %v5756_v63 = vadd.f32 %v397_v1, %v5715_v52 }
 0x138   :  { %v286_v62 = vpop.f32.mrf.mxu0  ;;  %v399_v29 = vpop.f32.mrf.mxu1 }
 0x139   :  { %7540 = vst [vmem:[#allocation51_spill] sm:$0xff] %v5753_v20  ;;  %7541 = vst [vmem:[#allocation52_spill] sm:$0xff] %v5756_v63  ;;  %v5758_v58 = vadd.f32 %v286_v62, %v181_v61  ;;  %v5761_v57 = vadd.f32 %v399_v29, %v5721_v60 }
 0x13b   :  { %7542 = vst [vmem:[#allocation53_spill] sm:$0xff] %v5758_v58  ;;  %7543 = vst [vmem:[#allocation54_spill] sm:$0xff] %v5761_v57 }
 0x13c   :  { %v290_v56 = vpop.f32.mrf.mxu0  ;;  %v403_v0 = vpop.f32.mrf.mxu1 }
 0x13d   :  { %v5763_v51 = vadd.f32 %v290_v56, %v177_v11  ;;  %v5766_v54 = vadd.f32 %v403_v0, %v5715_v52 }
 0x13e   :  { %v292_v53 = vpop.f32.mrf.mxu0  ;;  %v405_v4 = vpop.f32.mrf.mxu1 }
 0x13f   :  { %7544 = vst [vmem:[#allocation55_spill] sm:$0xff] %v5763_v51  ;;  %7545 = vst [vmem:[#allocation56_spill] sm:$0xff] %v5766_v54  ;;  %v5768_v20 = vadd.f32 %v292_v53, %v181_v61  ;;  %v5771_v1 = vadd.f32 %v405_v4, %v5721_v60 }
 0x141   :  { %7546 = vst [vmem:[#allocation57_spill] sm:$0xff] %v5768_v20  ;;  %7547 = vst [vmem:[#allocation58_spill] sm:$0xff] %v5771_v1 }
 0x142   :  { %v296_v63 = vpop.f32.mrf.mxu0  ;;  %v409_v62 = vpop.f32.mrf.mxu1 }
 0x143   :  { %v5773_v58 = vadd.f32 %v296_v63, %v177_v11  ;;  %v5776_v29 = vadd.f32 %v409_v62, %v5715_v52 }
 0x144   :  { %v298_v57 = vpop.f32.mrf.mxu0  ;;  %v411_v56 = vpop.f32.mrf.mxu1 }
 0x145   :  { %7548 = vst [vmem:[#allocation59_spill] sm:$0xff] %v5773_v58  ;;  %7549 = vst [vmem:[#allocation60_spill] sm:$0xff] %v5776_v29  ;;  %v5778_v51 = vadd.f32 %v298_v57, %v181_v61  ;;  %v5781_v0 = vadd.f32 %v411_v56, %v5721_v60  ;;  %v261_v57 = vadd.f32 %v5696_v38, %v177_v11 }
 0x146   :  { %v263_v56 = vadd.f32 %v5705_v2, %v181_v61 }
 0x147   :  { %7550 = vst [vmem:[#allocation61_spill] sm:$0xff] %v5778_v51  ;;  %7551 = vst [vmem:[#allocation62_spill] sm:$0xff] %v5781_v0 }
 0x148   :  { %v302_v54 = vpop.f32.mrf.mxu0  ;;  %v415_v53 = vpop.f32.mrf.mxu1 }
 0x149   :  { %v5783_v20 = vadd.f32 %v302_v54, %v177_v11  ;;  %v5786_v4 = vadd.f32 %v415_v53, %v5715_v52 }
 0x14a   :  { %v304_v1 = vpop.f32.mrf.mxu0  ;;  %v417_v63 = vpop.f32.mrf.mxu1 }
 0x14b   :  { %7552 = vst [vmem:[#allocation63_spill] sm:$0xff] %v5783_v20  ;;  %7553 = vst [vmem:[#allocation64_spill] sm:$0xff] %v5786_v4  ;;  %v5788_v58 = vadd.f32 %v304_v1, %v181_v61  ;;  %v5791_v62 = vadd.f32 %v417_v63, %v5721_v60  ;;  %v376_v1 = vadd.f32 %v5707_v3, %v5721_v60 }
 0x14c   :  { %v374_v63 = vadd.f32 %v5698_v47, %v5715_v52 }
 0x14d   :  { %7554 = vst [vmem:[#allocation65_spill] sm:$0xff] %v5788_v58  ;;  %7555 = vst [vmem:[#allocation66_spill] sm:$0xff] %v5791_v62 }
 0x14e   :  { %v593_v29 = vpop.f32.mrf.mxu0  ;;  %v664_v20 = vpop.f32.mrf.mxu1 }
 0x14f   :  { %v669_v0 = vadd.f32 %v593_v29, %v261_v57  ;;  %v671_v62 = vadd.f32 %v664_v20, %v374_v63 }
 0x150   :  { %v595_v51 = vpop.f32.mrf.mxu0  ;;  %v666_v4 = vpop.f32.mrf.mxu1 }
 0x151   :  { %v4828_v55 = vmul.f32 -1.442695, %v669_v0  ;;  %v670_v54 = vadd.f32 %v595_v51, %v263_v56  ;;  %v672_v58 = vadd.f32 %v666_v4, %v376_v1 }
 0x153   :  { %4940 = vpow2.f32 %v4828_v55  ;;  %v4829_v53 = vmul.f32 -1.442695, %v670_v54  ;;  %v4830_v11 = vmul.f32 -1.442695, %v672_v58 }
 0x155   :  { %4942 = vpow2.f32 %v4829_v53 }
 0x156   :  { %4944 = vpow2.f32 %v4830_v11 }
 0x160   :  { %v4941_v38 = vpop.eup %4940 }
 0x161   :  { %v676_v61 = vadd.f32 1.0, %v4941_v38 }
 0x162   :  { %v4943_v2 = vpop.eup %4942 }
 0x163   :  { %4946 = vrcp.f32 %v676_v61  ;;  %v682_v51 = vadd.f32 1.0, %v4943_v2  ;;  %v4945_v55 = vpop.eup %4944  ;;  %v5884_v2 = vld [vmem:[#allocation9 + $0x1e8] sm:$0xff] }
 0x164   :  { %4948 = vtanh.f32 %v671_v62  ;;  %v689_v56 = vadd.f32 1.0, %v4945_v55  ;;  %v5890_v55 = vld [vmem:[#allocation9 + $0x1e0] sm:$0xff] }
 0x165   :  { %4950 = vrcp.f32 %v682_v51  ;;  %v5886_v51 = vld [vmem:[#allocation9 + $0x1f8] sm:$0xff] }
 0x166   :  { %4952 = vrcp.f32 %v689_v56  ;;  %v5902_v56 = vld [vmem:[#allocation9 + $0x1c0] sm:$0xff] }
 0x170   :  { %v4947_v29 = vpop.eup %4946 }
 0x171   :  { %v4949_v0 = vpop.eup %4948 }
 0x172   :  { %v4951_v57 = vpop.eup %4950  ;;  %v693_v3 = vmul.f32 %v4949_v0, %v4947_v29  ;;  %v5892_v29 = vld [vmem:[#allocation9 + $0x1f0] sm:$0xff]  ;;  %v5896_v0 = vld [vmem:[#allocation9 + $0x1c8] sm:$0xff] }
 0x173   :  { %v692_v60 = vmul.f32 0.0, %v4951_v57  ;;  %v4953_v52 = vpop.eup %4952  ;;  %v5898_v57 = vld [vmem:[#allocation9 + $0x1d8] sm:$0xff] }
 0x175   :  { %v5799_v4 = vadd.f32 %v693_v3, %v692_v60  ;;  %v5904_v60 = vld [vmem:[#allocation9 + $0x1d0] sm:$0xff]  ;;  %v5908_v3 = vld [vmem:[#allocation9 + $0x1a8] sm:$0xff] }
 0x177   :  { %4954 = vtanh.f32 %v5799_v4 }
 0x184   :  { %v4955_v58 = vpop.eup %4954 }
 0x185   :  { %v5802_v47 = vmul.f32 %v4955_v58, %v4953_v52  ;;  %v5914_v52 = vld [vmem:[#allocation9 + $0x1a0] sm:$0xff]  ;;  %v5916_v58 = vld [vmem:[#allocation9 + $0x1b0] sm:$0xff] }
 0x187   :  { %7556 = vst [vmem:[#allocation67_spill] sm:$0xff] %v5802_v47  ;;  %838 = vmatmul.mubr.f32.vlgmr.msra.gmra.mxu0 %v5802_v47  ;;  %909 = vmatmul.mubr.f32.vlgmr.msra.gmra.mxu1 %v5802_v47  ;;  %v6062_v47 = vld [vmem:[#allocation9 + $0x18] sm:$0xff] }
 0x188   :  { %1021 = vmatpush1.msra.mxu0 %v5399_v5  ;;  %1092 = vmatpush1.msra.mxu1 %v5401_v6  ;;  %v7557_v5 = vld [vmem:[#allocation18_spill] sm:$0xff]  ;;  %v7558_v6 = vld [vmem:[#allocation19_spill] sm:$0xff] }
 0x189   :  { %1022 = vmatprep.subr.mxu0 %v5403_v7  ;;  %1093 = vmatprep.subr.mxu1 %v5405_v8  ;;  %v7559_v7 = vld [vmem:[#allocation20_spill] sm:$0xff]  ;;  %v7560_v8 = vld [vmem:[#allocation21_spill] sm:$0xff]  ;;  %7583 = vst [vmem:[#allocation19_spill] sm:$0xff] %v5884_v2 }
 0x18a   :  { %1023 = vmatpush1.msra.mxu0 %v5411_v9  ;;  %1094 = vmatpush1.msra.mxu1 %v5413_v10  ;;  %v7561_v9 = vld [vmem:[#allocation22_spill] sm:$0xff]  ;;  %v7562_v10 = vld [vmem:[#allocation23_spill] sm:$0xff]  ;;  %7584 = vst [vmem:[#allocation20_spill] sm:$0xff] %v5886_v51 }
 0x18b   :  { %1024 = vmatprep.subr.mxu0 %v5422_v12  ;;  %1095 = vmatprep.subr.mxu1 %v5424_v13  ;;  %v7563_v12 = vld [vmem:[#allocation24_spill] sm:$0xff]  ;;  %v7564_v13 = vld [vmem:[#allocation25_spill] sm:$0xff] }
 0x18c   :  { %1025 = vmatpush1.msra.mxu0 %v5428_v14  ;;  %1096 = vmatpush1.msra.mxu1 %v5430_v15  ;;  %v7565_v14 = vld [vmem:[#allocation26_spill] sm:$0xff]  ;;  %v7566_v15 = vld [vmem:[#allocation27_spill] sm:$0xff] }
 0x18d   :  { %1026 = vmatprep.subr.mxu0 %v5432_v16  ;;  %1097 = vmatprep.subr.mxu1 %v5434_v17  ;;  %v7567_v16 = vld [vmem:[#allocation28_spill] sm:$0xff]  ;;  %v7568_v17 = vld [vmem:[#allocation29_spill] sm:$0xff] }
 0x18e   :  { %1027 = vmatpush1.msra.mxu0 %v5440_v18  ;;  %1098 = vmatpush1.msra.mxu1 %v5442_v19  ;;  %v7569_v18 = vld [vmem:[#allocation30_spill] sm:$0xff]  ;;  %v7570_v19 = vld [vmem:[#allocation31_spill] sm:$0xff] }
 0x18f   :  { %1028 = vmatprep.subr.mxu0 %v5451_v21  ;;  %1099 = vmatprep.subr.mxu1 %v5453_v22  ;;  %v7571_v21 = vld [vmem:[#allocation32_spill] sm:$0xff]  ;;  %v7572_v22 = vld [vmem:[#allocation33_spill] sm:$0xff] }
 0x190   :  { %1029 = vmatpush1.msra.mxu0 %v5457_v23  ;;  %1100 = vmatpush1.msra.mxu1 %v5459_v24  ;;  %v7573_v23 = vld [vmem:[#allocation34_spill] sm:$0xff]  ;;  %v7574_v24 = vld [vmem:[#allocation35_spill] sm:$0xff] }
 0x191   :  { %1030 = vmatprep.subr.mxu0 %v5461_v25  ;;  %1101 = vmatprep.subr.mxu1 %v5463_v26  ;;  %v7575_v25 = vld [vmem:[#allocation36_spill] sm:$0xff]  ;;  %v7576_v26 = vld [vmem:[#allocation37_spill] sm:$0xff]  ;;  %7599 = vst [vmem:[#allocation35_spill] sm:$0xff] %v6062_v47 }
 0x192   :  { %1031 = vmatpush1.msra.mxu0 %v5469_v27  ;;  %1102 = vmatpush1.msra.mxu1 %v5471_v28  ;;  %v7577_v27 = vmov 0.0   ;;  %v7578_v28 = vld [vmem:[#allocation38_spill] sm:$0xff] }
 0x193   :  { %1032 = vmatprep.subr.mxu0 %v5480_v30  ;;  %1103 = vmatprep.subr.mxu1 %v5482_v31 }
 0x194   :  { %1033 = vmatpush1.msra.mxu0 %v5486_v32  ;;  %1104 = vmatpush1.msra.mxu1 %v5488_v33 }
 0x195   :  { %1034 = vmatprep.subr.mxu0 %v5490_v34  ;;  %1105 = vmatprep.subr.mxu1 %v5492_v35  ;;  %v7579_v34 = vld [vmem:[#allocation41_spill] sm:$0xff] }
 0x196   :  { %1035 = vmatpush1.msra.mxu0 %v5498_v36  ;;  %1106 = vmatpush1.msra.mxu1 %v5500_v37 }
 0x197   :  { %1036 = vmatprep.subr.mxu0 %v5509_v39  ;;  %1107 = vmatprep.subr.mxu1 %v5511_v40  ;;  %v7580_v40 = vld [vmem:[#allocation42_spill] sm:$0xff] }
 0x198   :  { %1037 = vmatpush1.msra.mxu0 %v5515_v41  ;;  %1108 = vmatpush1.msra.mxu1 %v5517_v42  ;;  %v7581_v42 = vld [vmem:[#allocation40_spill] sm:$0xff] }
 0x199   :  { %1038 = vmatprep.subr.mxu0 %v5519_v43  ;;  %1109 = vmatprep.subr.mxu1 %v5521_v44 }
 0x19a   :  { %1039 = vmatpush1.msra.mxu0 %v5527_v45  ;;  %1110 = vmatpush1.msra.mxu1 %v5529_v46 }
 0x19b   :  { %1040 = vmatprep.subr.mxu0 %v5538_v48  ;;  %1111 = vmatprep.subr.mxu1 %v5540_v49 }
 0x19c   :  { %1041 = vmatpush1.msra.mxu0 %v5544_v50  ;;  %1112 = vmatpush1.msra.mxu1 %v7557_v5  ;;  %v5920_v5 = vld [vmem:[#allocation9 + $0x188] sm:$0xff] }
 0x19d   :  { %1042 = vmatprep.subr.mxu0 %v7558_v6  ;;  %1113 = vmatprep.subr.mxu1 %v7559_v7  ;;  %v5922_v6 = vld [vmem:[#allocation9 + $0x198] sm:$0xff]  ;;  %v5926_v7 = vld [vmem:[#allocation9 + $0x180] sm:$0xff] }
 0x19e   :  { %1043 = vmatpush1.msra.mxu0 %v7560_v8  ;;  %1114 = vmatpush1.msra.mxu1 %v7561_v9  ;;  %v5928_v8 = vld [vmem:[#allocation9 + $0x190] sm:$0xff]  ;;  %v5932_v9 = vld [vmem:[#allocation9 + $0x168] sm:$0xff] }
 0x19f   :  { %1044 = vmatprep.subr.mxu0 %v7562_v10  ;;  %1115 = vmatprep.subr.mxu1 %v7563_v12  ;;  %v5934_v10 = vld [vmem:[#allocation9 + $0x178] sm:$0xff]  ;;  %v5938_v12 = vld [vmem:[#allocation9 + $0x160] sm:$0xff] }
 0x1a0   :  { %1045 = vmatpush1.msra.mxu0 %v7564_v13  ;;  %1116 = vmatpush1.msra.mxu1 %v7565_v14  ;;  %v5940_v13 = vld [vmem:[#allocation9 + $0x170] sm:$0xff]  ;;  %v5944_v14 = vld [vmem:[#allocation9 + $0x148] sm:$0xff] }
 0x1a1   :  { %1046 = vmatprep.subr.mxu0 %v7566_v15  ;;  %1117 = vmatprep.subr.mxu1 %v7567_v16  ;;  %v5946_v15 = vld [vmem:[#allocation9 + $0x158] sm:$0xff]  ;;  %v5950_v16 = vld [vmem:[#allocation9 + $0x140] sm:$0xff] }
 0x1a2   :  { %1047 = vmatpush1.msra.mxu0 %v7568_v17  ;;  %1118 = vmatpush1.msra.mxu1 %v7569_v18  ;;  %v5952_v17 = vld [vmem:[#allocation9 + $0x150] sm:$0xff]  ;;  %v5956_v18 = vld [vmem:[#allocation9 + $0x128] sm:$0xff] }
 0x1a3   :  { %1048 = vmatprep.subr.mxu0 %v7570_v19  ;;  %1119 = vmatprep.subr.mxu1 %v7571_v21  ;;  %v5958_v19 = vld [vmem:[#allocation9 + $0x138] sm:$0xff]  ;;  %v5962_v21 = vld [vmem:[#allocation9 + $0x120] sm:$0xff] }
 0x1a4   :  { %1049 = vmatpush1.msra.mxu0 %v7572_v22  ;;  %1120 = vmatpush1.msra.mxu1 %v7573_v23  ;;  %v5964_v22 = vld [vmem:[#allocation9 + $0x130] sm:$0xff]  ;;  %v5968_v23 = vld [vmem:[#allocation9 + $0x108] sm:$0xff] }
 0x1a5   :  { %1050 = vmatprep.subr.mxu0 %v7574_v24  ;;  %1121 = vmatprep.subr.mxu1 %v7575_v25  ;;  %v5970_v24 = vld [vmem:[#allocation9 + $0x118] sm:$0xff]  ;;  %v5972_v25 = vld [vmem:[#allocation9 + $0x100] sm:$0xff] }
 0x1a6   :  { %1051 = vmatpush1.msra.mxu0 %v7576_v26  ;;  %1084 = vmatprep.mubr.f32.mxu0 %v7577_v27  ;;  %v5976_v26 = vld [vmem:[#allocation9 + $0x110] sm:$0xff] }
 0x1a7   :  { %1122 = vmatpush1.msra.mxu1 %v7578_v28  ;;  %1155 = vmatprep.mubr.f32.mxu1 %v7577_v27  ;;  %v5978_v28 = vld [vmem:[#allocation9 + $0xe8] sm:$0xff] }
 0x1a8   :  { %1267 = vmatprep.subr.mxu0 %v5884_v2  ;;  %1338 = vmatprep.subr.mxu1 %v5886_v51 }
 0x247   :  { %v839_v30 = vpop.f32.mrf.mxu0  ;;  %v910_v36 = vpop.f32.mrf.mxu1 }
 0x248   :  { %v915_v31 = vadd.f32 %v839_v30, %v5723_v59  ;;  %v917_v43 = vadd.f32 %v910_v36, %v7581_v42  ;;  %v5980_v30 = vld [vmem:[#allocation9 + $0xf8] sm:$0xff]  ;;  %v5996_v36 = vld [vmem:[#allocation9 + $0xd0] sm:$0xff]  ;;  %v6012_v42 = vld [vmem:[#allocation9 + $0x88] sm:$0xff] }
 0x249   :  { %v841_v32 = vpop.f32.mrf.mxu0  ;;  %v912_v39 = vpop.f32.mrf.mxu1 }
 0x24a   :  { %v4831_v33 = vmul.f32 -1.442695, %v915_v31  ;;  %v916_v35 = vadd.f32 %v841_v32, %v7579_v34  ;;  %v918_v41 = vadd.f32 %v912_v39, %v7580_v40  ;;  %v5984_v31 = vld [vmem:[#allocation9 + $0xe0] sm:$0xff]  ;;  %v5986_v32 = vld [vmem:[#allocation9 + $0xf0] sm:$0xff]  ;;  %v5992_v34 = vld [vmem:[#allocation9 + $0xd8] sm:$0xff] }
 0x24b   :  { %v6002_v39 = vld [vmem:[#allocation9 + $0xb8] sm:$0xff]  ;;  %v6006_v40 = vld [vmem:[#allocation9 + $0xa0] sm:$0xff] }
 0x24c   :  { %4956 = vpow2.f32 %v4831_v33  ;;  %v4832_v37 = vmul.f32 -1.442695, %v916_v35  ;;  %v4833_v44 = vmul.f32 -1.442695, %v918_v41  ;;  %v5988_v33 = vld [vmem:[#allocation9 + $0xc8] sm:$0xff]  ;;  %v5994_v35 = vld [vmem:[#allocation9 + $0xc0] sm:$0xff] }
 0x24d   :  { %v6008_v41 = vld [vmem:[#allocation9 + $0xb0] sm:$0xff] }
 0x24e   :  { %4958 = vpow2.f32 %v4832_v37  ;;  %v6000_v37 = vld [vmem:[#allocation9 + $0xa8] sm:$0xff] }
 0x24f   :  { %4960 = vtanh.f32 %v917_v43  ;;  %v6014_v43 = vld [vmem:[#allocation9 + $0x98] sm:$0xff] }
 0x250   :  { %4962 = vpow2.f32 %v4833_v44  ;;  %v6018_v44 = vld [vmem:[#allocation9 + $0x80] sm:$0xff] }
 0x259   :  { %v4957_v45 = vpop.eup %4956 }
 0x25a   :  { %v922_v46 = vadd.f32 1.0, %v4957_v45  ;;  %v6020_v45 = vld [vmem:[#allocation9 + $0x90] sm:$0xff] }
 0x25b   :  { %v4959_v48 = vpop.eup %4958  ;;  %7585 = vst [vmem:[#allocation21_spill] sm:$0xff] %v6020_v45 }
 0x25c   :  { %4964 = vrcp.f32 %v922_v46  ;;  %v928_v49 = vadd.f32 1.0, %v4959_v48  ;;  %v4961_v50 = vpop.eup %4960  ;;  %v6024_v46 = vld [vmem:[#allocation9 + $0x68] sm:$0xff]  ;;  %v6026_v48 = vld [vmem:[#allocation9 + $0x78] sm:$0xff] }
 0x25d   :  { %v4963_v59 = vpop.eup %4962  ;;  %7586 = vst [vmem:[#allocation22_spill] sm:$0xff] %v6024_v46  ;;  %7587 = vst [vmem:[#allocation23_spill] sm:$0xff] %v6026_v48 }
 0x25e   :  { %4966 = vrcp.f32 %v928_v49  ;;  %v935_v53 = vadd.f32 1.0, %v4963_v59  ;;  %v6030_v49 = vld [vmem:[#allocation9 + $0x60] sm:$0xff]  ;;  %v6036_v59 = vld [vmem:[#allocation9 + $0x48] sm:$0xff] }
 0x25f   :  { %7588 = vst [vmem:[#allocation24_spill] sm:$0xff] %v6030_v49  ;;  %7590 = vst [vmem:[#allocation26_spill] sm:$0xff] %v6036_v59 }
 0x260   :  { %4968 = vrcp.f32 %v935_v53  ;;  %v6048_v53 = vld [vmem:[#allocation9 + $0x28] sm:$0xff] }
 0x261   :  { %7594 = vst [vmem:[#allocation30_spill] sm:$0xff] %v6048_v53 }
 0x269   :  { %v4965_v20 = vpop.eup %4964 }
 0x26a   :  { %v939_v62 = vmul.f32 %v4965_v20, %v4961_v50  ;;  %v6032_v50 = vld [vmem:[#allocation9 + $0x70] sm:$0xff]  ;;  %v6038_v20 = vld [vmem:[#allocation9 + $0x58] sm:$0xff] }
 0x26b   :  { %v4967_v54 = vpop.eup %4966  ;;  %7589 = vst [vmem:[#allocation25_spill] sm:$0xff] %v6032_v50  ;;  %7591 = vst [vmem:[#allocation27_spill] sm:$0xff] %v6038_v20 }
 0x26c   :  { %v938_v1 = vmul.f32 %v4967_v54, %v5799_v4  ;;  %v5910_v4 = vld [vmem:[#allocation9 + $0x1b8] sm:$0xff]  ;;  %v6044_v54 = vld [vmem:[#allocation9 + $0x50] sm:$0xff] }
 0x26d   :  { %v4969_v11 = vpop.eup %4968  ;;  %7593 = vst [vmem:[#allocation29_spill] sm:$0xff] %v6044_v54 }
 0x26e   :  { %v5875_v63 = vadd.f32 %v939_v62, %v938_v1  ;;  %v6042_v62 = vld [vmem:[#allocation9 + $0x40] sm:$0xff]  ;;  %v6050_v1 = vld [vmem:[#allocation9 + $0x38] sm:$0xff] }
 0x26f   :  { %7592 = vst [vmem:[#allocation28_spill] sm:$0xff] %v6042_v62  ;;  %7595 = vst [vmem:[#allocation31_spill] sm:$0xff] %v6050_v1 }
 0x270   :  { %4970 = vtanh.f32 %v5875_v63 }
 0x27d   :  { %v4971_v38 = vpop.eup %4970 }
 0x27e   :  { %v5878_v61 = vmul.f32 %v4971_v38, %v4969_v11  ;;  %v6054_v11 = vld [vmem:[#allocation9 + $0x20] sm:$0xff]  ;;  %v6056_v38 = vld [vmem:[#allocation9 + $0x30] sm:$0xff] }
 0x27f   :  { %7596 = vst [vmem:[#allocation32_spill] sm:$0xff] %v6054_v11  ;;  %7597 = vst [vmem:[#allocation33_spill] sm:$0xff] %v6056_v38 }
 0x280   :  { %7582 = vst [vmem:[#allocation18_spill] sm:$0xff] %v5878_v61  ;;  %1085 = vmatmul.mubr.f32.vlgmr.msra.gmra.mxu0 %v5878_v61  ;;  %1156 = vmatmul.mubr.f32.vlgmr.msra.gmra.mxu1 %v5878_v61  ;;  %v6060_v61 = vld [vmem:[#allocation9 + $0x8] sm:$0xff] }
 0x281   :  { %1331 = vmatprep.mubr.f32.mxu0 %v7577_v27  ;;  %1402 = vmatprep.mubr.f32.mxu1 %v7577_v27  ;;  %7598 = vst [vmem:[#allocation34_spill] sm:$0xff] %v6060_v61  ;;  %v6066_v27 = vld [vmem:[#allocation9] sm:$0xff] }
 0x282   :  { %1268 = vmatpush1.msra.mxu0 %v5890_v55  ;;  %1339 = vmatpush1.msra.mxu1 %v5892_v29  ;;  %7600 = vst [vmem:[#allocation36_spill] sm:$0xff] %v6066_v27 }
 0x283   :  { %1269 = vmatprep.subr.mxu0 %v5896_v0  ;;  %1340 = vmatprep.subr.mxu1 %v5898_v57 }
 0x284   :  { %1270 = vmatpush1.msra.mxu0 %v5902_v56  ;;  %1341 = vmatpush1.msra.mxu1 %v5904_v60 }
 0x285   :  { %1271 = vmatprep.subr.mxu0 %v5908_v3  ;;  %1342 = vmatprep.subr.mxu1 %v5910_v4 }
 0x286   :  { %1272 = vmatpush1.msra.mxu0 %v5914_v52  ;;  %1343 = vmatpush1.msra.mxu1 %v5916_v58 }
 0x287   :  { %1273 = vmatprep.subr.mxu0 %v5920_v5  ;;  %1344 = vmatprep.subr.mxu1 %v5922_v6 }
 0x288   :  { %1274 = vmatpush1.msra.mxu0 %v5926_v7  ;;  %1345 = vmatpush1.msra.mxu1 %v5928_v8 }
 0x289   :  { %1275 = vmatprep.subr.mxu0 %v5932_v9  ;;  %1346 = vmatprep.subr.mxu1 %v5934_v10 }
 0x28a   :  { %1276 = vmatpush1.msra.mxu0 %v5938_v12  ;;  %1347 = vmatpush1.msra.mxu1 %v5940_v13 }
 0x28b   :  { %1277 = vmatprep.subr.mxu0 %v5944_v14  ;;  %1348 = vmatprep.subr.mxu1 %v5946_v15 }
 0x28c   :  { %1278 = vmatpush1.msra.mxu0 %v5950_v16  ;;  %1349 = vmatpush1.msra.mxu1 %v5952_v17 }
 0x28d   :  { %1279 = vmatprep.subr.mxu0 %v5956_v18  ;;  %1350 = vmatprep.subr.mxu1 %v5958_v19 }
 0x28e   :  { %1280 = vmatpush1.msra.mxu0 %v5962_v21  ;;  %1351 = vmatpush1.msra.mxu1 %v5964_v22 }
 0x28f   :  { %1281 = vmatprep.subr.mxu0 %v5968_v23  ;;  %1352 = vmatprep.subr.mxu1 %v5970_v24 }
 0x290   :  { %1282 = vmatpush1.msra.mxu0 %v5972_v25  ;;  %1353 = vmatpush1.msra.mxu1 %v5976_v26 }
 0x291   :  { %1283 = vmatprep.subr.mxu0 %v5978_v28  ;;  %1354 = vmatprep.subr.mxu1 %v5980_v30 }
 0x292   :  { %1284 = vmatpush1.msra.mxu0 %v5984_v31  ;;  %1355 = vmatpush1.msra.mxu1 %v5986_v32 }
 0x293   :  { %1285 = vmatprep.subr.mxu0 %v5988_v33  ;;  %1356 = vmatprep.subr.mxu1 %v5992_v34 }
 0x294   :  { %1286 = vmatpush1.msra.mxu0 %v5994_v35  ;;  %1357 = vmatpush1.msra.mxu1 %v5996_v36 }
 0x295   :  { %1287 = vmatprep.subr.mxu0 %v6000_v37  ;;  %1358 = vmatprep.subr.mxu1 %v6002_v39 }
 0x296   :  { %1288 = vmatpush1.msra.mxu0 %v6006_v40  ;;  %1359 = vmatpush1.msra.mxu1 %v6008_v41 }
 0x297   :  { %1289 = vmatprep.subr.mxu0 %v6012_v42  ;;  %1360 = vmatprep.subr.mxu1 %v6014_v43 }
 0x298   :  { %1290 = vmatpush1.msra.mxu0 %v6018_v44  ;;  %1361 = vmatpush1.msra.mxu1 %v6020_v45 }
 0x299   :  { %1291 = vmatprep.subr.mxu0 %v6024_v46  ;;  %1362 = vmatprep.subr.mxu1 %v6026_v48  ;;  %v7605_v48 = vld [vmem:[#allocation44_spill] sm:$0xff] }
 0x29a   :  { %1292 = vmatpush1.msra.mxu0 %v6030_v49  ;;  %1363 = vmatpush1.msra.mxu1 %v6032_v50  ;;  %v7604_v49 = vld [vmem:[#allocation46_spill] sm:$0xff] }
 0x29b   :  { %1293 = vmatprep.subr.mxu0 %v6036_v59  ;;  %1364 = vmatprep.subr.mxu1 %v6038_v20  ;;  %v6068_v59 = vld [vmem:[#allocation9 + $0x10] sm:$0xff] }
 0x29c   :  { %1294 = vmatpush1.msra.mxu0 %v6042_v62  ;;  %1365 = vmatpush1.msra.mxu1 %v6044_v54  ;;  %7601 = vst [vmem:[#allocation37_spill] sm:$0xff] %v6068_v59 }
 0x29d   :  { %1295 = vmatprep.subr.mxu0 %v6048_v53  ;;  %1366 = vmatprep.subr.mxu1 %v6050_v1  ;;  %v7602_v53 = vld [vmem:[#allocation43_spill] sm:$0xff] }
 0x29e   :  { %1296 = vmatpush1.msra.mxu0 %v6054_v11  ;;  %1367 = vmatpush1.msra.mxu1 %v6056_v38  ;;  %v7603_v11 = vld [vmem:[#allocation45_spill] sm:$0xff] }
 0x29f   :  { %1297 = vmatprep.subr.mxu0 %v6060_v61  ;;  %1368 = vmatprep.subr.mxu1 %v6062_v47 }
 0x2a0   :  { %1298 = vmatpush1.msra.mxu0 %v6066_v27  ;;  %1369 = vmatpush1.msra.mxu1 %v6068_v59 }
 0x2a1   :  { %1514 = vmatprep.subr.mxu0 %v5884_v2  ;;  %1585 = vmatprep.subr.mxu1 %v5886_v51 }
 0x340   :  { %v1086_v1 = vpop.f32.mrf.mxu0  ;;  %v1157_v38 = vpop.f32.mrf.mxu1 }
 0x341   :  { %v1162_v54 = vadd.f32 %v1086_v1, %v7602_v53  ;;  %v1164_v59 = vadd.f32 %v1157_v38, %v7605_v48  ;;  %v7613_v38 = vld [vmem:[#allocation27_spill] sm:$0xff] }
 0x342   :  { %v1088_v62 = vpop.f32.mrf.mxu0  ;;  %v1159_v47 = vpop.f32.mrf.mxu1 }
 0x343   :  { %v4834_v20 = vmul.f32 -1.442695, %v1162_v54  ;;  %v1163_v50 = vadd.f32 %v1088_v62, %v7603_v11  ;;  %v1165_v27 = vadd.f32 %v1159_v47, %v7604_v49  ;;  %v7611_v49 = vld [vmem:[#allocation25_spill] sm:$0xff] }
 0x345   :  { %4972 = vpow2.f32 %v4834_v20  ;;  %v4835_v61 = vmul.f32 -1.442695, %v1163_v50  ;;  %v4836_v46 = vmul.f32 -1.442695, %v1165_v27 }
 0x347   :  { %4974 = vpow2.f32 %v4835_v61 }
 0x348   :  { %4976 = vtanh.f32 %v1164_v59  ;;  %v7612_v59 = vld [vmem:[#allocation26_spill] sm:$0xff] }
 0x349   :  { %4978 = vpow2.f32 %v4836_v46  ;;  %v7610_v46 = vld [vmem:[#allocation24_spill] sm:$0xff] }
 0x352   :  { %v4973_v2 = vpop.eup %4972 }
 0x353   :  { %v1169_v45 = vadd.f32 1.0, %v4973_v2 }
 0x354   :  { %v4975_v51 = vpop.eup %4974 }
 0x355   :  { %4980 = vrcp.f32 %v1169_v45  ;;  %v1175_v53 = vadd.f32 1.0, %v4975_v51  ;;  %v4977_v54 = vpop.eup %4976  ;;  %v7608_v51 = vld [vmem:[#allocation22_spill] sm:$0xff]  ;;  %v7609_v45 = vld [vmem:[#allocation23_spill] sm:$0xff] }
 0x356   :  { %v4979_v62 = vpop.eup %4978 }
 0x357   :  { %4982 = vrcp.f32 %v1175_v53  ;;  %v1182_v61 = vadd.f32 1.0, %v4979_v62  ;;  %v7614_v53 = vld [vmem:[#allocation28_spill] sm:$0xff]  ;;  %v7616_v62 = vld [vmem:[#allocation30_spill] sm:$0xff] }
 0x359   :  { %4984 = vrcp.f32 %v1182_v61  ;;  %v7620_v61 = vld [vmem:[#allocation34_spill] sm:$0xff] }
 0x362   :  { %v4981_v20 = vpop.eup %4980 }
 0x363   :  { %v1186_v1 = vmul.f32 %v4981_v20, %v4977_v54  ;;  %v7615_v54 = vld [vmem:[#allocation29_spill] sm:$0xff]  ;;  %v7617_v20 = vld [vmem:[#allocation31_spill] sm:$0xff] }
 0x364   :  { %v4983_v50 = vpop.eup %4982 }
 0x365   :  { %v1185_v11 = vmul.f32 %v4983_v50, %v5875_v63  ;;  %v7607_v63 = vld [vmem:[#allocation21_spill] sm:$0xff] }
 0x366   :  { %v4985_v27 = vpop.eup %4984  ;;  %v7619_v50 = vld [vmem:[#allocation33_spill] sm:$0xff] }
 0x367   :  { %v6083_v47 = vadd.f32 %v1186_v1, %v1185_v11  ;;  %v7618_v1 = vld [vmem:[#allocation32_spill] sm:$0xff]  ;;  %v7621_v11 = vld [vmem:[#allocation35_spill] sm:$0xff] }
 0x369   :  { %4986 = vtanh.f32 %v6083_v47 }
 0x376   :  { %v4987_v2 = vpop.eup %4986 }
 0x377   :  { %v6086_v48 = vmul.f32 %v4987_v2, %v4985_v27  ;;  %v7622_v27 = vld [vmem:[#allocation36_spill] sm:$0xff]  ;;  %v7623_v2 = vmov 0.0  }
 0x379   :  { %7606 = vst [vmem:[#allocation38_spill] sm:$0xff] %v6086_v48  ;;  %1332 = vmatmul.mubr.f32.vlgmr.msra.gmra.mxu0 %v6086_v48  ;;  %1403 = vmatmul.mubr.f32.vlgmr.msra.gmra.mxu1 %v6086_v48  ;;  %v7624_v48 = vld [vmem:[#allocation37_spill] sm:$0xff] }
 0x37a   :  { %1515 = vmatpush1.msra.mxu0 %v5890_v55  ;;  %1586 = vmatpush1.msra.mxu1 %v5892_v29 }
 0x37b   :  { %1516 = vmatprep.subr.mxu0 %v5896_v0  ;;  %1587 = vmatprep.subr.mxu1 %v5898_v57 }
 0x37c   :  { %1517 = vmatpush1.msra.mxu0 %v5902_v56  ;;  %1588 = vmatpush1.msra.mxu1 %v5904_v60 }
 0x37d   :  { %1518 = vmatprep.subr.mxu0 %v5908_v3  ;;  %1589 = vmatprep.subr.mxu1 %v5910_v4 }
 0x37e   :  { %1519 = vmatpush1.msra.mxu0 %v5914_v52  ;;  %1590 = vmatpush1.msra.mxu1 %v5916_v58 }
 0x37f   :  { %1520 = vmatprep.subr.mxu0 %v5920_v5  ;;  %1591 = vmatprep.subr.mxu1 %v5922_v6 }
 0x380   :  { %1521 = vmatpush1.msra.mxu0 %v5926_v7  ;;  %1592 = vmatpush1.msra.mxu1 %v5928_v8 }
 0x381   :  { %1522 = vmatprep.subr.mxu0 %v5932_v9  ;;  %1593 = vmatprep.subr.mxu1 %v5934_v10 }
 0x382   :  { %1523 = vmatpush1.msra.mxu0 %v5938_v12  ;;  %1594 = vmatpush1.msra.mxu1 %v5940_v13 }
 0x383   :  { %1524 = vmatprep.subr.mxu0 %v5944_v14  ;;  %1595 = vmatprep.subr.mxu1 %v5946_v15 }
 0x384   :  { %1525 = vmatpush1.msra.mxu0 %v5950_v16  ;;  %1596 = vmatpush1.msra.mxu1 %v5952_v17 }
 0x385   :  { %1526 = vmatprep.subr.mxu0 %v5956_v18  ;;  %1597 = vmatprep.subr.mxu1 %v5958_v19 }
 0x386   :  { %1527 = vmatpush1.msra.mxu0 %v5962_v21  ;;  %1598 = vmatpush1.msra.mxu1 %v5964_v22 }
 0x387   :  { %1528 = vmatprep.subr.mxu0 %v5968_v23  ;;  %1599 = vmatprep.subr.mxu1 %v5970_v24 }
 0x388   :  { %1529 = vmatpush1.msra.mxu0 %v5972_v25  ;;  %1600 = vmatpush1.msra.mxu1 %v5976_v26 }
 0x389   :  { %1530 = vmatprep.subr.mxu0 %v5978_v28  ;;  %1601 = vmatprep.subr.mxu1 %v5980_v30 }
 0x38a   :  { %1531 = vmatpush1.msra.mxu0 %v5984_v31  ;;  %1602 = vmatpush1.msra.mxu1 %v5986_v32 }
 0x38b   :  { %1532 = vmatprep.subr.mxu0 %v5988_v33  ;;  %1603 = vmatprep.subr.mxu1 %v5992_v34 }
 0x38c   :  { %1533 = vmatpush1.msra.mxu0 %v5994_v35  ;;  %1604 = vmatpush1.msra.mxu1 %v5996_v36 }
 0x38d   :  { %1534 = vmatprep.subr.mxu0 %v6000_v37  ;;  %1605 = vmatprep.subr.mxu1 %v6002_v39 }
 0x38e   :  { %1535 = vmatpush1.msra.mxu0 %v6006_v40  ;;  %1606 = vmatpush1.msra.mxu1 %v6008_v41 }
 0x38f   :  { %1536 = vmatprep.subr.mxu0 %v6012_v42  ;;  %1607 = vmatprep.subr.mxu1 %v6014_v43 }
 0x390   :  { %1537 = vmatpush1.msra.mxu0 %v6018_v44  ;;  %1608 = vmatpush1.msra.mxu1 %v7607_v63 }
 0x391   :  { %1538 = vmatprep.subr.mxu0 %v7608_v51  ;;  %1609 = vmatprep.subr.mxu1 %v7609_v45  ;;  %v7630_v45 = vld [vmem:[#allocation48_spill] sm:$0xff] }
 0x392   :  { %1539 = vmatpush1.msra.mxu0 %v7610_v46  ;;  %1610 = vmatpush1.msra.mxu1 %v7611_v49  ;;  %v7629_v46 = vld [vmem:[#allocation50_spill] sm:$0xff] }
 0x393   :  { %1540 = vmatprep.subr.mxu0 %v7612_v59  ;;  %1611 = vmatprep.subr.mxu1 %v7613_v38 }
 0x394   :  { %1541 = vmatpush1.msra.mxu0 %v7614_v53  ;;  %1612 = vmatpush1.msra.mxu1 %v7615_v54  ;;  %v7625_v54 = vld [vmem:[#allocation19_spill] sm:$0xff] }
 0x395   :  { %1542 = vmatprep.subr.mxu0 %v7616_v62  ;;  %1613 = vmatprep.subr.mxu1 %v7617_v20  ;;  %v7626_v62 = vld [vmem:[#allocation20_spill] sm:$0xff] }
 0x396   :  { %1543 = vmatpush1.msra.mxu0 %v7618_v1  ;;  %1614 = vmatpush1.msra.mxu1 %v7619_v50  ;;  %v7627_v1 = vld [vmem:[#allocation47_spill] sm:$0xff] }
 0x397   :  { %1544 = vmatprep.subr.mxu0 %v7620_v61  ;;  %1615 = vmatprep.subr.mxu1 %v7621_v11  ;;  %v7628_v61 = vld [vmem:[#allocation49_spill] sm:$0xff] }
 0x398   :  { %1545 = vmatpush1.msra.mxu0 %v7622_v27  ;;  %1578 = vmatprep.mubr.f32.mxu0 %v7623_v2 }
 0x399   :  { %1616 = vmatpush1.msra.mxu1 %v7624_v48  ;;  %1649 = vmatprep.mubr.f32.mxu1 %v7623_v2 }
 0x39a   :  { %1761 = vmatprep.subr.mxu0 %v7625_v54  ;;  %1832 = vmatprep.subr.mxu1 %v7626_v62 }
 0x439   :  { %v1333_v20 = vpop.f32.mrf.mxu0  ;;  %v1404_v11 = vpop.f32.mrf.mxu1 }
 0x43a   :  { %v1409_v53 = vadd.f32 %v1333_v20, %v7627_v1  ;;  %v1411_v2 = vadd.f32 %v1404_v11, %v7630_v45  ;;  %v7637_v11 = vld [vmem:[#allocation26_spill] sm:$0xff] }
 0x43b   :  { %v1335_v50 = vpop.f32.mrf.mxu0  ;;  %v1406_v49 = vpop.f32.mrf.mxu1 }
 0x43c   :  { %v4837_v38 = vmul.f32 -1.442695, %v1409_v53  ;;  %v1410_v59 = vadd.f32 %v1335_v50, %v7628_v61  ;;  %v1412_v48 = vadd.f32 %v1406_v49, %v7629_v46 }
 0x43e   :  { %4988 = vpow2.f32 %v4837_v38  ;;  %v4838_v27 = vmul.f32 -1.442695, %v1410_v59  ;;  %v4839_v51 = vmul.f32 -1.442695, %v1412_v48 }
 0x440   :  { %4990 = vpow2.f32 %v4838_v27 }
 0x441   :  { %4992 = vtanh.f32 %v1411_v2  ;;  %v7638_v2 = vld [vmem:[#allocation27_spill] sm:$0xff] }
 0x442   :  { %4994 = vpow2.f32 %v4839_v51  ;;  %v7634_v51 = vld [vmem:[#allocation23_spill] sm:$0xff] }
 0x44b   :  { %v4989_v54 = vpop.eup %4988 }
 0x44c   :  { %v1416_v63 = vadd.f32 1.0, %v4989_v54  ;;  %v7635_v54 = vld [vmem:[#allocation24_spill] sm:$0xff] }
 0x44d   :  { %v4991_v62 = vpop.eup %4990 }
 0x44e   :  { %4996 = vrcp.f32 %v1416_v63  ;;  %v1422_v20 = vadd.f32 1.0, %v4991_v62  ;;  %v4993_v53 = vpop.eup %4992  ;;  %v7633_v63 = vld [vmem:[#allocation22_spill] sm:$0xff]  ;;  %v7636_v62 = vld [vmem:[#allocation25_spill] sm:$0xff] }
 0x44f   :  { %v4995_v1 = vpop.eup %4994 }
 0x450   :  { %4998 = vrcp.f32 %v1422_v20  ;;  %v1429_v61 = vadd.f32 1.0, %v4995_v1  ;;  %v7639_v20 = vld [vmem:[#allocation28_spill] sm:$0xff]  ;;  %v7641_v1 = vld [vmem:[#allocation30_spill] sm:$0xff] }
 0x452   :  { %5000 = vrcp.f32 %v1429_v61  ;;  %v7645_v61 = vld [vmem:[#allocation34_spill] sm:$0xff] }
 0x45b   :  { %v4997_v38 = vpop.eup %4996 }
 0x45c   :  { %v1433_v50 = vmul.f32 %v4997_v38, %v4993_v53  ;;  %v7640_v53 = vld [vmem:[#allocation29_spill] sm:$0xff]  ;;  %v7642_v38 = vld [vmem:[#allocation31_spill] sm:$0xff] }
 0x45d   :  { %v4999_v59 = vpop.eup %4998 }
 0x45e   :  { %v1432_v27 = vmul.f32 %v4999_v59, %v6083_v47  ;;  %v7632_v47 = vld [vmem:[#allocation21_spill] sm:$0xff] }
 0x45f   :  { %v5001_v48 = vpop.eup %5000  ;;  %v7644_v59 = vld [vmem:[#allocation33_spill] sm:$0xff] }
 0x460   :  { %v6161_v46 = vadd.f32 %v1433_v50, %v1432_v27  ;;  %v7643_v50 = vld [vmem:[#allocation32_spill] sm:$0xff]  ;;  %v7646_v27 = vld [vmem:[#allocation35_spill] sm:$0xff] }
 0x462   :  { %5002 = vtanh.f32 %v6161_v46 }
 0x46f   :  { %v5003_v45 = vpop.eup %5002 }
 0x470   :  { %v6164_v49 = vmul.f32 %v5003_v45, %v5001_v48  ;;  %v7647_v48 = vld [vmem:[#allocation36_spill] sm:$0xff]  ;;  %v7648_v45 = vmov 0.0  }
 0x472   :  { %7631 = vst [vmem:[#allocation41_spill] sm:$0xff] %v6164_v49  ;;  %1579 = vmatmul.mubr.f32.vlgmr.msra.gmra.mxu0 %v6164_v49  ;;  %1650 = vmatmul.mubr.f32.vlgmr.msra.gmra.mxu1 %v6164_v49  ;;  %v7649_v49 = vld [vmem:[#allocation37_spill] sm:$0xff] }
 0x473   :  { %1762 = vmatpush1.msra.mxu0 %v5890_v55  ;;  %1833 = vmatpush1.msra.mxu1 %v5892_v29 }
 0x474   :  { %1763 = vmatprep.subr.mxu0 %v5896_v0  ;;  %1834 = vmatprep.subr.mxu1 %v5898_v57 }
 0x475   :  { %1764 = vmatpush1.msra.mxu0 %v5902_v56  ;;  %1835 = vmatpush1.msra.mxu1 %v5904_v60 }
 0x476   :  { %1765 = vmatprep.subr.mxu0 %v5908_v3  ;;  %1836 = vmatprep.subr.mxu1 %v5910_v4 }
 0x477   :  { %1766 = vmatpush1.msra.mxu0 %v5914_v52  ;;  %1837 = vmatpush1.msra.mxu1 %v5916_v58 }
 0x478   :  { %1767 = vmatprep.subr.mxu0 %v5920_v5  ;;  %1838 = vmatprep.subr.mxu1 %v5922_v6 }
 0x479   :  { %1768 = vmatpush1.msra.mxu0 %v5926_v7  ;;  %1839 = vmatpush1.msra.mxu1 %v5928_v8 }
 0x47a   :  { %1769 = vmatprep.subr.mxu0 %v5932_v9  ;;  %1840 = vmatprep.subr.mxu1 %v5934_v10 }
 0x47b   :  { %1770 = vmatpush1.msra.mxu0 %v5938_v12  ;;  %1841 = vmatpush1.msra.mxu1 %v5940_v13 }
 0x47c   :  { %1771 = vmatprep.subr.mxu0 %v5944_v14  ;;  %1842 = vmatprep.subr.mxu1 %v5946_v15 }
 0x47d   :  { %1772 = vmatpush1.msra.mxu0 %v5950_v16  ;;  %1843 = vmatpush1.msra.mxu1 %v5952_v17 }
 0x47e   :  { %1773 = vmatprep.subr.mxu0 %v5956_v18  ;;  %1844 = vmatprep.subr.mxu1 %v5958_v19 }
 0x47f   :  { %1774 = vmatpush1.msra.mxu0 %v5962_v21  ;;  %1845 = vmatpush1.msra.mxu1 %v5964_v22 }
 0x480   :  { %1775 = vmatprep.subr.mxu0 %v5968_v23  ;;  %1846 = vmatprep.subr.mxu1 %v5970_v24 }
 0x481   :  { %1776 = vmatpush1.msra.mxu0 %v5972_v25  ;;  %1847 = vmatpush1.msra.mxu1 %v5976_v26 }
 0x482   :  { %1777 = vmatprep.subr.mxu0 %v5978_v28  ;;  %1848 = vmatprep.subr.mxu1 %v5980_v30 }
 0x483   :  { %1778 = vmatpush1.msra.mxu0 %v5984_v31  ;;  %1849 = vmatpush1.msra.mxu1 %v5986_v32 }
 0x484   :  { %1779 = vmatprep.subr.mxu0 %v5988_v33  ;;  %1850 = vmatprep.subr.mxu1 %v5992_v34 }
 0x485   :  { %1780 = vmatpush1.msra.mxu0 %v5994_v35  ;;  %1851 = vmatpush1.msra.mxu1 %v5996_v36 }
 0x486   :  { %1781 = vmatprep.subr.mxu0 %v6000_v37  ;;  %1852 = vmatprep.subr.mxu1 %v6002_v39 }
 0x487   :  { %1782 = vmatpush1.msra.mxu0 %v6006_v40  ;;  %1853 = vmatpush1.msra.mxu1 %v6008_v41 }
 0x488   :  { %1783 = vmatprep.subr.mxu0 %v6012_v42  ;;  %1854 = vmatprep.subr.mxu1 %v6014_v43 }
 0x489   :  { %1784 = vmatpush1.msra.mxu0 %v6018_v44  ;;  %1855 = vmatpush1.msra.mxu1 %v7632_v47 }
 0x48a   :  { %1785 = vmatprep.subr.mxu0 %v7633_v63  ;;  %1856 = vmatprep.subr.mxu1 %v7634_v51  ;;  %v7655_v51 = vld [vmem:[#allocation52_spill] sm:$0xff] }
 0x48b   :  { %1786 = vmatpush1.msra.mxu0 %v7635_v54  ;;  %1857 = vmatpush1.msra.mxu1 %v7636_v62  ;;  %v7654_v54 = vld [vmem:[#allocation54_spill] sm:$0xff] }
 0x48c   :  { %1787 = vmatprep.subr.mxu0 %v7637_v11  ;;  %1858 = vmatprep.subr.mxu1 %v7638_v2 }
 0x48d   :  { %1788 = vmatpush1.msra.mxu0 %v7639_v20  ;;  %1859 = vmatpush1.msra.mxu1 %v7640_v53  ;;  %v7650_v53 = vld [vmem:[#allocation19_spill] sm:$0xff] }
 0x48e   :  { %1789 = vmatprep.subr.mxu0 %v7641_v1  ;;  %1860 = vmatprep.subr.mxu1 %v7642_v38  ;;  %v7651_v1 = vld [vmem:[#allocation20_spill] sm:$0xff] }
 0x48f   :  { %1790 = vmatpush1.msra.mxu0 %v7643_v50  ;;  %1861 = vmatpush1.msra.mxu1 %v7644_v59  ;;  %v7652_v50 = vld [vmem:[#allocation51_spill] sm:$0xff] }
 0x490   :  { %1791 = vmatprep.subr.mxu0 %v7645_v61  ;;  %1862 = vmatprep.subr.mxu1 %v7646_v27  ;;  %v7653_v61 = vld [vmem:[#allocation53_spill] sm:$0xff] }
 0x491   :  { %1792 = vmatpush1.msra.mxu0 %v7647_v48  ;;  %1825 = vmatprep.mubr.f32.mxu0 %v7648_v45 }
 0x492   :  { %1863 = vmatpush1.msra.mxu1 %v7649_v49  ;;  %1896 = vmatprep.mubr.f32.mxu1 %v7648_v45 }
 0x493   :  { %2008 = vmatprep.subr.mxu0 %v7650_v53  ;;  %2079 = vmatprep.subr.mxu1 %v7651_v1 }
 0x532   :  { %v1580_v38 = vpop.f32.mrf.mxu0  ;;  %v1651_v27 = vpop.f32.mrf.mxu1 }
 0x533   :  { %v1656_v20 = vadd.f32 %v1580_v38, %v7652_v50  ;;  %v1658_v45 = vadd.f32 %v1651_v27, %v7655_v51  ;;  %v2252_v27 = vld [vmem:[#allocation9 + $0x1e8] sm:$0xff] }
 0x534   :  { %v1582_v59 = vpop.f32.mrf.mxu0  ;;  %v1653_v62 = vpop.f32.mrf.mxu1 }
 0x535   :  { %v4840_v2 = vmul.f32 -1.442695, %v1656_v20  ;;  %v1657_v11 = vadd.f32 %v1582_v59, %v7653_v61  ;;  %v1659_v49 = vadd.f32 %v1653_v62, %v7654_v54 }
 0x537   :  { %5004 = vpow2.f32 %v4840_v2  ;;  %v4841_v48 = vmul.f32 -1.442695, %v1657_v11  ;;  %v4842_v63 = vmul.f32 -1.442695, %v1659_v49 }
 0x539   :  { %5006 = vpow2.f32 %v4841_v48 }
 0x53a   :  { %5008 = vtanh.f32 %v1658_v45  ;;  %v2254_v45 = vld [vmem:[#allocation9 + $0x1f8] sm:$0xff] }
 0x53b   :  { %5010 = vpow2.f32 %v4842_v63 }
 0x544   :  { %v5005_v53 = vpop.eup %5004 }
 0x545   :  { %v1663_v47 = vadd.f32 1.0, %v5005_v53  ;;  %v2251_v53 = vld [vmem:[#allocation9 + $0x1e0] sm:$0xff] }
 0x546   :  { %v5007_v1 = vpop.eup %5006 }
 0x547   :  { %5012 = vrcp.f32 %v1663_v47  ;;  %v1669_v38 = vadd.f32 1.0, %v5007_v1  ;;  %v5009_v20 = vpop.eup %5008  ;;  %v2253_v1 = vld [vmem:[#allocation9 + $0x1f0] sm:$0xff] }
 0x548   :  { %v5011_v50 = vpop.eup %5010 }
 0x549   :  { %5014 = vrcp.f32 %v1669_v38  ;;  %v1676_v61 = vadd.f32 1.0, %v5011_v50  ;;  %v2248_v38 = vld [vmem:[#allocation9 + $0x1c8] sm:$0xff]  ;;  %v2247_v50 = vld [vmem:[#allocation9 + $0x1c0] sm:$0xff] }
 0x54b   :  { %5016 = vrcp.f32 %v1676_v61  ;;  %v2243_v61 = vld [vmem:[#allocation9 + $0x1a0] sm:$0xff] }
 0x554   :  { %v5013_v2 = vpop.eup %5012 }
 0x555   :  { %v1680_v59 = vmul.f32 %v5013_v2, %v5009_v20  ;;  %v2250_v20 = vld [vmem:[#allocation9 + $0x1d8] sm:$0xff]  ;;  %v2249_v2 = vld [vmem:[#allocation9 + $0x1d0] sm:$0xff] }
 0x556   :  { %v5015_v11 = vpop.eup %5014 }
 0x557   :  { %v1679_v48 = vmul.f32 %v5015_v11, %v6161_v46  ;;  %v2246_v11 = vld [vmem:[#allocation9 + $0x1b8] sm:$0xff] }
 0x558   :  { %v5017_v49 = vpop.eup %5016 }
 0x559   :  { %v6239_v54 = vadd.f32 %v1680_v59, %v1679_v48  ;;  %v2244_v59 = vld [vmem:[#allocation9 + $0x1a8] sm:$0xff]  ;;  %v2245_v48 = vld [vmem:[#allocation9 + $0x1b0] sm:$0xff] }
 0x55b   :  { %5018 = vtanh.f32 %v6239_v54 }
 0x568   :  { %v5019_v51 = vpop.eup %5018 }
 0x569   :  { %v6242_v62 = vmul.f32 %v5019_v51, %v5017_v49  ;;  %v2242_v49 = vld [vmem:[#allocation9 + $0x198] sm:$0xff]  ;;  %v2239_v51 = vld [vmem:[#allocation9 + $0x180] sm:$0xff] }
 0x56b   :  { %1826 = vmatmul.mubr.f32.vlgmr.msra.gmra.mxu0 %v6242_v62  ;;  %1897 = vmatmul.mubr.f32.vlgmr.msra.gmra.mxu1 %v6242_v62 }
 0x56c   :  { %2009 = vmatpush1.msra.mxu0 %v5890_v55  ;;  %2080 = vmatpush1.msra.mxu1 %v5892_v29  ;;  %v7656_v55 = vld [vmem:[#allocation21_spill] sm:$0xff]  ;;  %v7657_v29 = vld [vmem:[#allocation22_spill] sm:$0xff] }
 0x56d   :  { %2010 = vmatprep.subr.mxu0 %v5896_v0  ;;  %2081 = vmatprep.subr.mxu1 %v5898_v57  ;;  %v7658_v0 = vld [vmem:[#allocation23_spill] sm:$0xff]  ;;  %v7659_v57 = vld [vmem:[#allocation24_spill] sm:$0xff] }
 0x56e   :  { %2011 = vmatpush1.msra.mxu0 %v5902_v56  ;;  %2082 = vmatpush1.msra.mxu1 %v5904_v60  ;;  %v7660_v56 = vld [vmem:[#allocation25_spill] sm:$0xff]  ;;  %v7661_v60 = vld [vmem:[#allocation26_spill] sm:$0xff] }
 0x56f   :  { %2012 = vmatprep.subr.mxu0 %v5908_v3  ;;  %2083 = vmatprep.subr.mxu1 %v5910_v4  ;;  %v7662_v3 = vld [vmem:[#allocation27_spill] sm:$0xff]  ;;  %v7663_v4 = vld [vmem:[#allocation28_spill] sm:$0xff] }
 0x570   :  { %2013 = vmatpush1.msra.mxu0 %v5914_v52  ;;  %2084 = vmatpush1.msra.mxu1 %v5916_v58  ;;  %v7664_v52 = vld [vmem:[#allocation29_spill] sm:$0xff]  ;;  %v7665_v58 = vld [vmem:[#allocation30_spill] sm:$0xff] }
 0x571   :  { %2014 = vmatprep.subr.mxu0 %v5920_v5  ;;  %2085 = vmatprep.subr.mxu1 %v5922_v6  ;;  %v7666_v5 = vld [vmem:[#allocation31_spill] sm:$0xff]  ;;  %v7667_v6 = vld [vmem:[#allocation32_spill] sm:$0xff] }
 0x572   :  { %2015 = vmatpush1.msra.mxu0 %v5926_v7  ;;  %2086 = vmatpush1.msra.mxu1 %v5928_v8  ;;  %v7668_v7 = vld [vmem:[#allocation33_spill] sm:$0xff]  ;;  %v7669_v8 = vld [vmem:[#allocation34_spill] sm:$0xff] }
 0x573   :  { %2016 = vmatprep.subr.mxu0 %v5932_v9  ;;  %2087 = vmatprep.subr.mxu1 %v5934_v10  ;;  %v7670_v9 = vld [vmem:[#allocation35_spill] sm:$0xff]  ;;  %v7671_v10 = vld [vmem:[#allocation36_spill] sm:$0xff] }
 0x574   :  { %2017 = vmatpush1.msra.mxu0 %v5938_v12  ;;  %2088 = vmatpush1.msra.mxu1 %v5940_v13  ;;  %v7672_v12 = vmov 0.0   ;;  %v7673_v13 = vld [vmem:[#allocation37_spill] sm:$0xff] }
 0x575   :  { %2018 = vmatprep.subr.mxu0 %v5944_v14  ;;  %2089 = vmatprep.subr.mxu1 %v5946_v15  ;;  %v7674_v15 = vld [vmem:[#allocation55_spill] sm:$0xff] }
 0x576   :  { %2019 = vmatpush1.msra.mxu0 %v5950_v16  ;;  %2090 = vmatpush1.msra.mxu1 %v5952_v17 }
 0x577   :  { %2020 = vmatprep.subr.mxu0 %v5956_v18  ;;  %2091 = vmatprep.subr.mxu1 %v5958_v19  ;;  %v7675_v19 = vld [vmem:[#allocation57_spill] sm:$0xff] }
 0x578   :  { %2021 = vmatpush1.msra.mxu0 %v5962_v21  ;;  %2092 = vmatpush1.msra.mxu1 %v5964_v22 }
 0x579   :  { %2022 = vmatprep.subr.mxu0 %v5968_v23  ;;  %2093 = vmatprep.subr.mxu1 %v5970_v24 }
 0x57a   :  { %2023 = vmatpush1.msra.mxu0 %v5972_v25  ;;  %2094 = vmatpush1.msra.mxu1 %v5976_v26  ;;  %v7676_v25 = vld [vmem:[#allocation58_spill] sm:$0xff] }
 0x57b   :  { %2024 = vmatprep.subr.mxu0 %v5978_v28  ;;  %2095 = vmatprep.subr.mxu1 %v5980_v30  ;;  %v7677_v28 = vld [vmem:[#allocation56_spill] sm:$0xff] }
 0x57c   :  { %2025 = vmatpush1.msra.mxu0 %v5984_v31  ;;  %2096 = vmatpush1.msra.mxu1 %v5986_v32 }
 0x57d   :  { %2026 = vmatprep.subr.mxu0 %v5988_v33  ;;  %2097 = vmatprep.subr.mxu1 %v5992_v34 }
 0x57e   :  { %2027 = vmatpush1.msra.mxu0 %v5994_v35  ;;  %2098 = vmatpush1.msra.mxu1 %v5996_v36 }
 0x57f   :  { %2028 = vmatprep.subr.mxu0 %v6000_v37  ;;  %2099 = vmatprep.subr.mxu1 %v6002_v39 }
 0x580   :  { %2029 = vmatpush1.msra.mxu0 %v6006_v40  ;;  %2100 = vmatpush1.msra.mxu1 %v6008_v41 }
 0x581   :  { %2030 = vmatprep.subr.mxu0 %v6012_v42  ;;  %2101 = vmatprep.subr.mxu1 %v6014_v43 }
 0x582   :  { %2031 = vmatpush1.msra.mxu0 %v6018_v44  ;;  %2102 = vmatpush1.msra.mxu1 %v7656_v55  ;;  %v2241_v55 = vld [vmem:[#allocation9 + $0x190] sm:$0xff] }
 0x583   :  { %2032 = vmatprep.subr.mxu0 %v7657_v29  ;;  %2103 = vmatprep.subr.mxu1 %v7658_v0  ;;  %v2236_v29 = vld [vmem:[#allocation9 + $0x168] sm:$0xff]  ;;  %v2238_v0 = vld [vmem:[#allocation9 + $0x178] sm:$0xff] }
 0x584   :  { %2033 = vmatpush1.msra.mxu0 %v7659_v57  ;;  %2104 = vmatpush1.msra.mxu1 %v7660_v56  ;;  %v2235_v57 = vld [vmem:[#allocation9 + $0x160] sm:$0xff]  ;;  %v2237_v56 = vld [vmem:[#allocation9 + $0x170] sm:$0xff] }
 0x585   :  { %2034 = vmatprep.subr.mxu0 %v7661_v60  ;;  %2105 = vmatprep.subr.mxu1 %v7662_v3  ;;  %v2232_v60 = vld [vmem:[#allocation9 + $0x148] sm:$0xff]  ;;  %v2234_v3 = vld [vmem:[#allocation9 + $0x158] sm:$0xff] }
 0x586   :  { %2035 = vmatpush1.msra.mxu0 %v7663_v4  ;;  %2106 = vmatpush1.msra.mxu1 %v7664_v52  ;;  %v2231_v4 = vld [vmem:[#allocation9 + $0x140] sm:$0xff]  ;;  %v2233_v52 = vld [vmem:[#allocation9 + $0x150] sm:$0xff] }
 0x587   :  { %2036 = vmatprep.subr.mxu0 %v7665_v58  ;;  %2107 = vmatprep.subr.mxu1 %v7666_v5  ;;  %v2228_v58 = vld [vmem:[#allocation9 + $0x128] sm:$0xff]  ;;  %v2230_v5 = vld [vmem:[#allocation9 + $0x138] sm:$0xff] }
 0x588   :  { %2037 = vmatpush1.msra.mxu0 %v7667_v6  ;;  %2108 = vmatpush1.msra.mxu1 %v7668_v7  ;;  %v2227_v6 = vld [vmem:[#allocation9 + $0x120] sm:$0xff]  ;;  %v2229_v7 = vld [vmem:[#allocation9 + $0x130] sm:$0xff] }
 0x589   :  { %2038 = vmatprep.subr.mxu0 %v7669_v8  ;;  %2109 = vmatprep.subr.mxu1 %v7670_v9  ;;  %v2224_v8 = vld [vmem:[#allocation9 + $0x108] sm:$0xff]  ;;  %v2226_v9 = vld [vmem:[#allocation9 + $0x118] sm:$0xff] }
 0x58a   :  { %2039 = vmatpush1.msra.mxu0 %v7671_v10  ;;  %2072 = vmatprep.mubr.f32.mxu0 %v7672_v12  ;;  %v2223_v10 = vld [vmem:[#allocation9 + $0x100] sm:$0xff] }
 0x58b   :  { %2110 = vmatpush1.msra.mxu1 %v7673_v13  ;;  %2143 = vmatprep.mubr.f32.mxu1 %v7672_v12  ;;  %v2225_v13 = vld [vmem:[#allocation9 + $0x110] sm:$0xff] }
 0x58c   :  { %2255 = vmatprep.subr.mxu0 %v2252_v27  ;;  %2326 = vmatprep.subr.mxu1 %v2254_v45  ;;  %v2192_v27 = vld [vmem:[#allocation9 + $0x8] sm:$0xff]  ;;  %v2194_v45 = vld [vmem:[#allocation9 + $0x18] sm:$0xff] }
 0x62b   :  { %v1827_v14 = vpop.f32.mrf.mxu0  ;;  %v1898_v22 = vpop.f32.mrf.mxu1 }
 0x62c   :  { %v1903_v16 = vadd.f32 %v1827_v14, %v7674_v15  ;;  %v1905_v30 = vadd.f32 %v1898_v22, %v7677_v28  ;;  %v2220_v14 = vld [vmem:[#allocation9 + $0xe8] sm:$0xff]  ;;  %v2222_v15 = vld [vmem:[#allocation9 + $0xf8] sm:$0xff]  ;;  %v2217_v22 = vld [vmem:[#allocation9 + $0xd0] sm:$0xff] }
 0x62d   :  { %v1829_v17 = vpop.f32.mrf.mxu0  ;;  %v1900_v24 = vpop.f32.mrf.mxu1  ;;  %v2208_v28 = vld [vmem:[#allocation9 + $0x88] sm:$0xff] }
 0x62e   :  { %v4843_v18 = vmul.f32 -1.442695, %v1903_v16  ;;  %v1904_v21 = vadd.f32 %v1829_v17, %v7675_v19  ;;  %v1906_v26 = vadd.f32 %v1900_v24, %v7676_v25  ;;  %v2219_v16 = vld [vmem:[#allocation9 + $0xe0] sm:$0xff]  ;;  %v2221_v17 = vld [vmem:[#allocation9 + $0xf0] sm:$0xff]  ;;  %v2218_v19 = vld [vmem:[#allocation9 + $0xd8] sm:$0xff] }
 0x62f   :  { %v2214_v24 = vld [vmem:[#allocation9 + $0xb8] sm:$0xff]  ;;  %v2211_v25 = vld [vmem:[#allocation9 + $0xa0] sm:$0xff] }
 0x630   :  { %5020 = vpow2.f32 %v4843_v18  ;;  %v4844_v23 = vmul.f32 -1.442695, %v1904_v21  ;;  %v4845_v31 = vmul.f32 -1.442695, %v1906_v26  ;;  %v2216_v18 = vld [vmem:[#allocation9 + $0xc8] sm:$0xff]  ;;  %v2215_v21 = vld [vmem:[#allocation9 + $0xc0] sm:$0xff] }
 0x631   :  { %v2213_v26 = vld [vmem:[#allocation9 + $0xb0] sm:$0xff] }
 0x632   :  { %5022 = vpow2.f32 %v4844_v23  ;;  %v2212_v23 = vld [vmem:[#allocation9 + $0xa8] sm:$0xff] }
 0x633   :  { %5024 = vtanh.f32 %v1905_v30  ;;  %v2210_v30 = vld [vmem:[#allocation9 + $0x98] sm:$0xff] }
 0x634   :  { %5026 = vpow2.f32 %v4845_v31  ;;  %v2207_v31 = vld [vmem:[#allocation9 + $0x80] sm:$0xff] }
 0x63d   :  { %v5021_v32 = vpop.eup %5020 }
 0x63e   :  { %v1910_v33 = vadd.f32 1.0, %v5021_v32  ;;  %v2209_v32 = vld [vmem:[#allocation9 + $0x90] sm:$0xff] }
 0x63f   :  { %v5023_v34 = vpop.eup %5022 }
 0x640   :  { %5028 = vrcp.f32 %v1910_v33  ;;  %v1916_v35 = vadd.f32 1.0, %v5023_v34  ;;  %v5025_v36 = vpop.eup %5024  ;;  %v2204_v33 = vld [vmem:[#allocation9 + $0x68] sm:$0xff]  ;;  %v2206_v34 = vld [vmem:[#allocation9 + $0x78] sm:$0xff] }
 0x641   :  { %v5027_v37 = vpop.eup %5026 }
 0x642   :  { %5030 = vrcp.f32 %v1916_v35  ;;  %v1923_v42 = vadd.f32 1.0, %v5027_v37  ;;  %v2203_v35 = vld [vmem:[#allocation9 + $0x60] sm:$0xff]  ;;  %v2200_v37 = vld [vmem:[#allocation9 + $0x48] sm:$0xff] }
 0x644   :  { %5032 = vrcp.f32 %v1923_v42  ;;  %v2196_v42 = vld [vmem:[#allocation9 + $0x28] sm:$0xff] }
 0x64d   :  { %v5029_v39 = vpop.eup %5028 }
 0x64e   :  { %v1927_v40 = vmul.f32 %v5029_v39, %v5025_v36  ;;  %v2205_v36 = vld [vmem:[#allocation9 + $0x70] sm:$0xff]  ;;  %v2202_v39 = vld [vmem:[#allocation9 + $0x58] sm:$0xff] }
 0x64f   :  { %v5031_v41 = vpop.eup %5030 }
 0x650   :  { %v1926_v43 = vmul.f32 %v5031_v41, %v6239_v54  ;;  %v2240_v54 = vld [vmem:[#allocation9 + $0x188] sm:$0xff]  ;;  %v2201_v41 = vld [vmem:[#allocation9 + $0x50] sm:$0xff] }
 0x651   :  { %v5033_v46 = vpop.eup %5032 }
 0x652   :  { %v6315_v44 = vadd.f32 %v1927_v40, %v1926_v43  ;;  %v2199_v40 = vld [vmem:[#allocation9 + $0x40] sm:$0xff]  ;;  %v2198_v43 = vld [vmem:[#allocation9 + $0x38] sm:$0xff] }
 0x654   :  { %5034 = vtanh.f32 %v6315_v44 }
 0x661   :  { %v5035_v47 = vpop.eup %5034 }
 0x662   :  { %v6318_v63 = vmul.f32 %v5035_v47, %v5033_v46  ;;  %v2195_v46 = vld [vmem:[#allocation9 + $0x20] sm:$0xff]  ;;  %v2197_v47 = vld [vmem:[#allocation9 + $0x30] sm:$0xff] }
 0x664   :  { %2073 = vmatmul.mubr.f32.vlgmr.msra.gmra.mxu0 %v6318_v63  ;;  %2144 = vmatmul.mubr.f32.vlgmr.msra.gmra.mxu1 %v6318_v63 }
 0x665   :  { %2319 = vmatprep.mubr.f32.mxu0 %v7672_v12  ;;  %2390 = vmatprep.mubr.f32.mxu1 %v7672_v12 }
 0x666   :  { %2256 = vmatpush1.msra.mxu0 %v2251_v53  ;;  %2327 = vmatpush1.msra.mxu1 %v2253_v1  ;;  %v2191_v53 = vld [vmem:[#allocation9] sm:$0xff]  ;;  %v2193_v1 = vld [vmem:[#allocation9 + $0x10] sm:$0xff] }
 0x667   :  { %2257 = vmatprep.subr.mxu0 %v2248_v38  ;;  %2328 = vmatprep.subr.mxu1 %v2250_v20  ;;  %v2498_v38 = vld [vmem:[#allocation11 + $0x1e8] sm:$0xff]  ;;  %v2500_v20 = vld [vmem:[#allocation11 + $0x1f8] sm:$0xff] }
 0x668   :  { %2258 = vmatpush1.msra.mxu0 %v2247_v50  ;;  %2329 = vmatpush1.msra.mxu1 %v2249_v2  ;;  %v7678_v2 = vld [vmem:[#allocation59_spill] sm:$0xff] }
 0x669   :  { %2259 = vmatprep.subr.mxu0 %v2244_v59  ;;  %2330 = vmatprep.subr.mxu1 %v2246_v11 }
 0x66a   :  { %2260 = vmatpush1.msra.mxu0 %v2243_v61  ;;  %2331 = vmatpush1.msra.mxu1 %v2245_v48  ;;  %v7679_v48 = vld [vmem:[#allocation61_spill] sm:$0xff] }
 0x66b   :  { %2261 = vmatprep.subr.mxu0 %v2240_v54  ;;  %2332 = vmatprep.subr.mxu1 %v2242_v49 }
 0x66c   :  { %2262 = vmatpush1.msra.mxu0 %v2239_v51  ;;  %2333 = vmatpush1.msra.mxu1 %v2241_v55 }
 0x66d   :  { %2263 = vmatprep.subr.mxu0 %v2236_v29  ;;  %2334 = vmatprep.subr.mxu1 %v2238_v0  ;;  %v7680_v29 = vld [vmem:[#allocation62_spill] sm:$0xff] }
 0x66e   :  { %2264 = vmatpush1.msra.mxu0 %v2235_v57  ;;  %2335 = vmatpush1.msra.mxu1 %v2237_v56  ;;  %v7681_v57 = vld [vmem:[#allocation60_spill] sm:$0xff] }
 0x66f   :  { %2265 = vmatprep.subr.mxu0 %v2232_v60  ;;  %2336 = vmatprep.subr.mxu1 %v2234_v3 }
 0x670   :  { %2266 = vmatpush1.msra.mxu0 %v2231_v4  ;;  %2337 = vmatpush1.msra.mxu1 %v2233_v52 }
 0x671   :  { %2267 = vmatprep.subr.mxu0 %v2228_v58  ;;  %2338 = vmatprep.subr.mxu1 %v2230_v5 }
 0x672   :  { %2268 = vmatpush1.msra.mxu0 %v2227_v6  ;;  %2339 = vmatpush1.msra.mxu1 %v2229_v7 }
 0x673   :  { %2269 = vmatprep.subr.mxu0 %v2224_v8  ;;  %2340 = vmatprep.subr.mxu1 %v2226_v9 }
 0x674   :  { %2270 = vmatpush1.msra.mxu0 %v2223_v10  ;;  %2341 = vmatpush1.msra.mxu1 %v2225_v13 }
 0x675   :  { %2271 = vmatprep.subr.mxu0 %v2220_v14  ;;  %2342 = vmatprep.subr.mxu1 %v2222_v15 }
 0x676   :  { %2272 = vmatpush1.msra.mxu0 %v2219_v16  ;;  %2343 = vmatpush1.msra.mxu1 %v2221_v17 }
 0x677   :  { %2273 = vmatprep.subr.mxu0 %v2216_v18  ;;  %2344 = vmatprep.subr.mxu1 %v2218_v19  ;;  %v2497_v18 = vld [vmem:[#allocation11 + $0x1e0] sm:$0xff]  ;;  %v2499_v19 = vld [vmem:[#allocation11 + $0x1f0] sm:$0xff] }
 0x678   :  { %2274 = vmatpush1.msra.mxu0 %v2215_v21  ;;  %2345 = vmatpush1.msra.mxu1 %v2217_v22  ;;  %v2494_v21 = vld [vmem:[#allocation11 + $0x1c8] sm:$0xff]  ;;  %v2496_v22 = vld [vmem:[#allocation11 + $0x1d8] sm:$0xff] }
 0x679   :  { %2275 = vmatprep.subr.mxu0 %v2212_v23  ;;  %2346 = vmatprep.subr.mxu1 %v2214_v24  ;;  %v2493_v23 = vld [vmem:[#allocation11 + $0x1c0] sm:$0xff]  ;;  %v2495_v24 = vld [vmem:[#allocation11 + $0x1d0] sm:$0xff] }
 0x67a   :  { %2276 = vmatpush1.msra.mxu0 %v2211_v25  ;;  %2347 = vmatpush1.msra.mxu1 %v2213_v26  ;;  %v2492_v25 = vld [vmem:[#allocation11 + $0x1b8] sm:$0xff]  ;;  %v2489_v26 = vld [vmem:[#allocation11 + $0x1a0] sm:$0xff] }
 0x67b   :  { %2277 = vmatprep.subr.mxu0 %v2208_v28  ;;  %2348 = vmatprep.subr.mxu1 %v2210_v30  ;;  %v2491_v28 = vld [vmem:[#allocation11 + $0x1b0] sm:$0xff]  ;;  %v2486_v30 = vld [vmem:[#allocation11 + $0x188] sm:$0xff] }
 0x67c   :  { %2278 = vmatpush1.msra.mxu0 %v2207_v31  ;;  %2349 = vmatpush1.msra.mxu1 %v2209_v32  ;;  %v2488_v31 = vld [vmem:[#allocation11 + $0x198] sm:$0xff]  ;;  %v2485_v32 = vld [vmem:[#allocation11 + $0x180] sm:$0xff] }
 0x67d   :  { %2279 = vmatprep.subr.mxu0 %v2204_v33  ;;  %2350 = vmatprep.subr.mxu1 %v2206_v34  ;;  %v2487_v33 = vld [vmem:[#allocation11 + $0x190] sm:$0xff]  ;;  %v2482_v34 = vld [vmem:[#allocation11 + $0x168] sm:$0xff] }
 0x67e   :  { %2280 = vmatpush1.msra.mxu0 %v2203_v35  ;;  %2351 = vmatpush1.msra.mxu1 %v2205_v36  ;;  %v2484_v35 = vld [vmem:[#allocation11 + $0x178] sm:$0xff]  ;;  %v2481_v36 = vld [vmem:[#allocation11 + $0x160] sm:$0xff] }
 0x67f   :  { %2281 = vmatprep.subr.mxu0 %v2200_v37  ;;  %2352 = vmatprep.subr.mxu1 %v2202_v39  ;;  %v2483_v37 = vld [vmem:[#allocation11 + $0x170] sm:$0xff]  ;;  %v2478_v39 = vld [vmem:[#allocation11 + $0x148] sm:$0xff] }
 0x680   :  { %2282 = vmatpush1.msra.mxu0 %v2199_v40  ;;  %2353 = vmatpush1.msra.mxu1 %v2201_v41  ;;  %v2480_v40 = vld [vmem:[#allocation11 + $0x158] sm:$0xff]  ;;  %v2477_v41 = vld [vmem:[#allocation11 + $0x140] sm:$0xff] }
 0x681   :  { %2283 = vmatprep.subr.mxu0 %v2196_v42  ;;  %2354 = vmatprep.subr.mxu1 %v2198_v43  ;;  %v2479_v42 = vld [vmem:[#allocation11 + $0x150] sm:$0xff]  ;;  %v2474_v43 = vld [vmem:[#allocation11 + $0x128] sm:$0xff] }
 0x682   :  { %2284 = vmatpush1.msra.mxu0 %v2195_v46  ;;  %2355 = vmatpush1.msra.mxu1 %v2197_v47  ;;  %v2476_v46 = vld [vmem:[#allocation11 + $0x138] sm:$0xff]  ;;  %v2473_v47 = vld [vmem:[#allocation11 + $0x120] sm:$0xff] }
 0x683   :  { %2285 = vmatprep.subr.mxu0 %v2192_v27  ;;  %2356 = vmatprep.subr.mxu1 %v2194_v45  ;;  %v2475_v27 = vld [vmem:[#allocation11 + $0x130] sm:$0xff]  ;;  %v2470_v45 = vld [vmem:[#allocation11 + $0x108] sm:$0xff] }
 0x684   :  { %2286 = vmatpush1.msra.mxu0 %v2191_v53  ;;  %2357 = vmatpush1.msra.mxu1 %v2193_v1  ;;  %v2472_v53 = vld [vmem:[#allocation11 + $0x118] sm:$0xff]  ;;  %v2469_v1 = vld [vmem:[#allocation11 + $0x100] sm:$0xff] }
 0x685   :  { %2523 = vmatprep.subr.mxu0 %v2498_v38  ;;  %2636 = vmatprep.subr.mxu1 %v2500_v20  ;;  %v2471_v38 = vld [vmem:[#allocation11 + $0x110] sm:$0xff]  ;;  %v2466_v20 = vld [vmem:[#allocation11 + $0xe8] sm:$0xff] }
 0x724   :  { %v2074_v50 = vpop.f32.mrf.mxu0  ;;  %v2145_v49 = vpop.f32.mrf.mxu1 }
 0x725   :  { %v2150_v59 = vadd.f32 %v2074_v50, %v7678_v2  ;;  %v2152_v56 = vadd.f32 %v2145_v49, %v7681_v57  ;;  %v2468_v50 = vld [vmem:[#allocation11 + $0xf8] sm:$0xff]  ;;  %v2465_v2 = vld [vmem:[#allocation11 + $0xe0] sm:$0xff]  ;;  %v2458_v49 = vld [vmem:[#allocation11 + $0xa8] sm:$0xff] }
 0x726   :  { %v2076_v11 = vpop.f32.mrf.mxu0  ;;  %v2147_v55 = vpop.f32.mrf.mxu1  ;;  %v2456_v57 = vld [vmem:[#allocation11 + $0x98] sm:$0xff] }
 0x727   :  { %v4846_v61 = vmul.f32 -1.442695, %v2150_v59  ;;  %v2151_v54 = vadd.f32 %v2076_v11, %v7679_v48  ;;  %v2153_v0 = vadd.f32 %v2147_v55, %v7680_v29  ;;  %v2467_v59 = vld [vmem:[#allocation11 + $0xf0] sm:$0xff]  ;;  %v2462_v11 = vld [vmem:[#allocation11 + $0xc8] sm:$0xff]  ;;  %v2461_v48 = vld [vmem:[#allocation11 + $0xc0] sm:$0xff] }
 0x728   :  { %v2457_v55 = vld [vmem:[#allocation11 + $0xa0] sm:$0xff]  ;;  %v2459_v29 = vld [vmem:[#allocation11 + $0xb0] sm:$0xff] }
 0x729   :  { %5036 = vpow2.f32 %v4846_v61  ;;  %v4847_v51 = vmul.f32 -1.442695, %v2151_v54  ;;  %v4848_v60 = vmul.f32 -1.442695, %v2153_v0  ;;  %v2464_v61 = vld [vmem:[#allocation11 + $0xd8] sm:$0xff]  ;;  %v2463_v54 = vld [vmem:[#allocation11 + $0xd0] sm:$0xff] }
 0x72a   :  { %v2454_v0 = vld [vmem:[#allocation11 + $0x88] sm:$0xff] }
 0x72b   :  { %5038 = vpow2.f32 %v4847_v51  ;;  %v2460_v51 = vld [vmem:[#allocation11 + $0xb8] sm:$0xff] }
 0x72c   :  { %5040 = vtanh.f32 %v2152_v56  ;;  %v2453_v56 = vld [vmem:[#allocation11 + $0x80] sm:$0xff] }
 0x72d   :  { %5042 = vpow2.f32 %v4848_v60  ;;  %v2455_v60 = vld [vmem:[#allocation11 + $0x90] sm:$0xff] }
 0x736   :  { %v5037_v3 = vpop.eup %5036 }
 0x737   :  { %v2157_v4 = vadd.f32 1.0, %v5037_v3  ;;  %v2450_v3 = vld [vmem:[#allocation11 + $0x68] sm:$0xff] }
 0x738   :  { %v5039_v52 = vpop.eup %5038 }
 0x739   :  { %5044 = vrcp.f32 %v2157_v4  ;;  %v2163_v58 = vadd.f32 1.0, %v5039_v52  ;;  %v5041_v5 = vpop.eup %5040  ;;  %v2452_v4 = vld [vmem:[#allocation11 + $0x78] sm:$0xff]  ;;  %v2449_v52 = vld [vmem:[#allocation11 + $0x60] sm:$0xff] }
 0x73a   :  { %v5043_v6 = vpop.eup %5042 }
 0x73b   :  { %5046 = vrcp.f32 %v2163_v58  ;;  %v2170_v10 = vadd.f32 1.0, %v5043_v6  ;;  %v2451_v58 = vld [vmem:[#allocation11 + $0x70] sm:$0xff]  ;;  %v2448_v6 = vld [vmem:[#allocation11 + $0x58] sm:$0xff] }
 0x73d   :  { %5048 = vrcp.f32 %v2170_v10  ;;  %v2444_v10 = vld [vmem:[#allocation11 + $0x38] sm:$0xff] }
 0x746   :  { %v5045_v7 = vpop.eup %5044 }
 0x747   :  { %v2174_v8 = vmul.f32 %v5045_v7, %v5041_v5  ;;  %v2446_v5 = vld [vmem:[#allocation11 + $0x48] sm:$0xff]  ;;  %v2445_v7 = vld [vmem:[#allocation11 + $0x40] sm:$0xff] }
 0x748   :  { %v5047_v9 = vpop.eup %5046 }
 0x749   :  { %v2173_v13 = vmul.f32 %v5047_v9, %v6315_v44  ;;  %v2490_v44 = vld [vmem:[#allocation11 + $0x1a8] sm:$0xff] }
 0x74a   :  { %v5049_v15 = vpop.eup %5048  ;;  %v2442_v9 = vld [vmem:[#allocation11 + $0x28] sm:$0xff] }
 0x74b   :  { %v6329_v14 = vadd.f32 %v2174_v8, %v2173_v13  ;;  %v2447_v8 = vld [vmem:[#allocation11 + $0x50] sm:$0xff]  ;;  %v2441_v13 = vld [vmem:[#allocation11 + $0x20] sm:$0xff] }
 0x74d   :  { %5050 = vtanh.f32 %v6329_v14 }
 0x75a   :  { %v5051_v16 = vpop.eup %5050 }
 0x75b   :  { %v6332_v17 = vmul.f32 %v5051_v16, %v5049_v15  ;;  %v2443_v15 = vld [vmem:[#allocation11 + $0x30] sm:$0xff]  ;;  %v2438_v16 = vld [vmem:[#allocation11 + $0x8] sm:$0xff] }
 0x75d   :  { %2320 = vmatmul.mubr.f32.vlgmr.msra.gmra.mxu0 %v6332_v17  ;;  %2391 = vmatmul.mubr.f32.vlgmr.msra.gmra.mxu1 %v6332_v17 }
 0x75e   :  { %2524 = vmatpush1.msra.mxu0 %v2497_v18  ;;  %2637 = vmatpush1.msra.mxu1 %v2499_v19  ;;  %v2440_v18 = vld [vmem:[#allocation11 + $0x18] sm:$0xff]  ;;  %v2437_v19 = vld [vmem:[#allocation11] sm:$0xff] }
 0x75f   :  { %2525 = vmatprep.subr.mxu0 %v2494_v21  ;;  %2638 = vmatprep.subr.mxu1 %v2496_v22  ;;  %v2439_v21 = vld [vmem:[#allocation11 + $0x10] sm:$0xff]  ;;  %v7682_v22 = vld [vmem:[#allocation67_spill] sm:$0xff] }
 0x760   :  { %2526 = vmatpush1.msra.mxu0 %v2493_v23  ;;  %2639 = vmatpush1.msra.mxu1 %v2495_v24  ;;  %v7683_v23 = vld [vmem:[#allocation18_spill] sm:$0xff] }
 0x761   :  { %2527 = vmatprep.subr.mxu0 %v2490_v44  ;;  %2640 = vmatprep.subr.mxu1 %v2492_v25  ;;  %v7684_v24 = vld [vmem:[#allocation38_spill] sm:$0xff]  ;;  %v7685_v44 = vld [vmem:[#allocation41_spill] sm:$0xff] }
 0x762   :  { %2528 = vmatpush1.msra.mxu0 %v2489_v26  ;;  %2641 = vmatpush1.msra.mxu1 %v2491_v28  ;;  %v6368_v25 = vld [vmem:[#allocation12 + $0x1f8] sm:$0xff]  ;;  %v6374_v26 = vld [vmem:[#allocation12 + $0x1f0] sm:$0xff] }
 0x763   :  { %2529 = vmatprep.subr.mxu0 %v2486_v30  ;;  %2642 = vmatprep.subr.mxu1 %v2488_v31  ;;  %7687 = vst [vmem:[#allocation40_spill] sm:$0xff] %v6368_v25  ;;  %v6380_v28 = vld [vmem:[#allocation12 + $0x1d8] sm:$0xff]  ;;  %v6384_v30 = vld [vmem:[#allocation12 + $0x1c0] sm:$0xff]  ;;  %v6386_v31 = vld [vmem:[#allocation12 + $0x1d0] sm:$0xff] }
 0x764   :  { %2530 = vmatpush1.msra.mxu0 %v2485_v32  ;;  %2643 = vmatpush1.msra.mxu1 %v2487_v33  ;;  %v6390_v32 = vld [vmem:[#allocation12 + $0x1a8] sm:$0xff]  ;;  %v6392_v33 = vld [vmem:[#allocation12 + $0x1b8] sm:$0xff] }
 0x765   :  { %2531 = vmatprep.subr.mxu0 %v2482_v34  ;;  %2644 = vmatprep.subr.mxu1 %v2484_v35  ;;  %v6396_v34 = vld [vmem:[#allocation12 + $0x1a0] sm:$0xff]  ;;  %v6398_v35 = vld [vmem:[#allocation12 + $0x1b0] sm:$0xff] }
 0x766   :  { %2532 = vmatpush1.msra.mxu0 %v2481_v36  ;;  %2645 = vmatpush1.msra.mxu1 %v2483_v37  ;;  %v6402_v36 = vld [vmem:[#allocation12 + $0x188] sm:$0xff]  ;;  %v6404_v37 = vld [vmem:[#allocation12 + $0x198] sm:$0xff] }
 0x767   :  { %2533 = vmatprep.subr.mxu0 %v2478_v39  ;;  %2646 = vmatprep.subr.mxu1 %v2480_v40  ;;  %v6408_v39 = vld [vmem:[#allocation12 + $0x180] sm:$0xff]  ;;  %v6410_v40 = vld [vmem:[#allocation12 + $0x190] sm:$0xff] }
 0x768   :  { %2534 = vmatpush1.msra.mxu0 %v2477_v41  ;;  %2647 = vmatpush1.msra.mxu1 %v2479_v42  ;;  %v6414_v41 = vld [vmem:[#allocation12 + $0x168] sm:$0xff]  ;;  %v6416_v42 = vld [vmem:[#allocation12 + $0x178] sm:$0xff] }
 0x769   :  { %2535 = vmatprep.subr.mxu0 %v2474_v43  ;;  %2648 = vmatprep.subr.mxu1 %v2476_v46  ;;  %v6420_v43 = vld [vmem:[#allocation12 + $0x160] sm:$0xff]  ;;  %v6422_v46 = vld [vmem:[#allocation12 + $0x170] sm:$0xff] }
 0x76a   :  { %2536 = vmatpush1.msra.mxu0 %v2473_v47  ;;  %2649 = vmatpush1.msra.mxu1 %v2475_v27  ;;  %v6426_v47 = vld [vmem:[#allocation12 + $0x148] sm:$0xff]  ;;  %v6428_v27 = vld [vmem:[#allocation12 + $0x158] sm:$0xff] }
 0x76b   :  { %2537 = vmatprep.subr.mxu0 %v2470_v45  ;;  %2650 = vmatprep.subr.mxu1 %v2472_v53  ;;  %v6432_v45 = vld [vmem:[#allocation12 + $0x140] sm:$0xff]  ;;  %v6434_v53 = vld [vmem:[#allocation12 + $0x150] sm:$0xff] }
 0x76c   :  { %2538 = vmatpush1.msra.mxu0 %v2469_v1  ;;  %2651 = vmatpush1.msra.mxu1 %v2471_v38  ;;  %v6438_v1 = vld [vmem:[#allocation12 + $0x128] sm:$0xff]  ;;  %v6440_v38 = vld [vmem:[#allocation12 + $0x138] sm:$0xff] }
 0x76d   :  { %2539 = vmatprep.subr.mxu0 %v2466_v20  ;;  %2652 = vmatprep.subr.mxu1 %v2468_v50  ;;  %v6444_v20 = vld [vmem:[#allocation12 + $0x120] sm:$0xff]  ;;  %v6446_v50 = vld [vmem:[#allocation12 + $0x130] sm:$0xff] }
 0x76e   :  { %2540 = vmatpush1.msra.mxu0 %v2465_v2  ;;  %2653 = vmatpush1.msra.mxu1 %v2467_v59  ;;  %v6450_v2 = vld [vmem:[#allocation12 + $0x108] sm:$0xff]  ;;  %v6452_v59 = vld [vmem:[#allocation12 + $0x118] sm:$0xff] }
 0x76f   :  { %2541 = vmatprep.subr.mxu0 %v2462_v11  ;;  %2654 = vmatprep.subr.mxu1 %v2464_v61  ;;  %v6456_v11 = vld [vmem:[#allocation12 + $0x100] sm:$0xff]  ;;  %v6458_v61 = vld [vmem:[#allocation12 + $0x110] sm:$0xff] }
 0x770   :  { %2542 = vmatpush1.msra.mxu0 %v2461_v48  ;;  %2655 = vmatpush1.msra.mxu1 %v2463_v54  ;;  %v6462_v48 = vld [vmem:[#allocation12 + $0xe8] sm:$0xff]  ;;  %v6464_v54 = vld [vmem:[#allocation12 + $0xf8] sm:$0xff] }
 0x771   :  { %2543 = vmatprep.subr.mxu0 %v2458_v49  ;;  %2656 = vmatprep.subr.mxu1 %v2460_v51  ;;  %v6468_v49 = vld [vmem:[#allocation12 + $0xe0] sm:$0xff]  ;;  %v6470_v51 = vld [vmem:[#allocation12 + $0xf0] sm:$0xff] }
 0x772   :  { %2544 = vmatpush1.msra.mxu0 %v2457_v55  ;;  %2657 = vmatpush1.msra.mxu1 %v2459_v29  ;;  %v6474_v55 = vld [vmem:[#allocation12 + $0xc8] sm:$0xff]  ;;  %v6476_v29 = vld [vmem:[#allocation12 + $0xd8] sm:$0xff] }
 0x773   :  { %2545 = vmatprep.subr.mxu0 %v2454_v0  ;;  %2658 = vmatprep.subr.mxu1 %v2456_v57  ;;  %v6480_v0 = vld [vmem:[#allocation12 + $0xc0] sm:$0xff]  ;;  %v6482_v57 = vld [vmem:[#allocation12 + $0xd0] sm:$0xff] }
 0x774   :  { %2546 = vmatpush1.msra.mxu0 %v2453_v56  ;;  %2659 = vmatpush1.msra.mxu1 %v2455_v60  ;;  %v6486_v56 = vld [vmem:[#allocation12 + $0xa8] sm:$0xff]  ;;  %v6488_v60 = vld [vmem:[#allocation12 + $0xb8] sm:$0xff] }
 0x775   :  { %2547 = vmatprep.subr.mxu0 %v2450_v3  ;;  %2660 = vmatprep.subr.mxu1 %v2452_v4  ;;  %v6492_v3 = vld [vmem:[#allocation12 + $0xa0] sm:$0xff]  ;;  %v6494_v4 = vld [vmem:[#allocation12 + $0xb0] sm:$0xff] }
 0x776   :  { %2548 = vmatpush1.msra.mxu0 %v2449_v52  ;;  %2661 = vmatpush1.msra.mxu1 %v2451_v58  ;;  %v6498_v52 = vld [vmem:[#allocation12 + $0x88] sm:$0xff]  ;;  %v6500_v58 = vld [vmem:[#allocation12 + $0x98] sm:$0xff] }
 0x777   :  { %2549 = vmatprep.subr.mxu0 %v2446_v5  ;;  %2662 = vmatprep.subr.mxu1 %v2448_v6  ;;  %7688 = vst [vmem:[#allocation43_spill] sm:$0xff] %v6498_v52  ;;  %7689 = vst [vmem:[#allocation45_spill] sm:$0xff] %v6500_v58  ;;  %v6504_v5 = vld [vmem:[#allocation12 + $0x80] sm:$0xff]  ;;  %v6506_v6 = vld [vmem:[#allocation12 + $0x90] sm:$0xff] }
 0x778   :  { %2550 = vmatpush1.msra.mxu0 %v2445_v7  ;;  %2663 = vmatpush1.msra.mxu1 %v2447_v8  ;;  %7690 = vst [vmem:[#allocation46_spill] sm:$0xff] %v6504_v5  ;;  %7691 = vst [vmem:[#allocation44_spill] sm:$0xff] %v6506_v6  ;;  %v6510_v7 = vld [vmem:[#allocation12 + $0x68] sm:$0xff]  ;;  %v6512_v8 = vld [vmem:[#allocation12 + $0x78] sm:$0xff] }
 0x779   :  { %2551 = vmatprep.subr.mxu0 %v2442_v9  ;;  %2664 = vmatprep.subr.mxu1 %v2444_v10  ;;  %7692 = vst [vmem:[#allocation47_spill] sm:$0xff] %v6510_v7  ;;  %7693 = vst [vmem:[#allocation49_spill] sm:$0xff] %v6512_v8  ;;  %v6516_v9 = vld [vmem:[#allocation12 + $0x60] sm:$0xff]  ;;  %v6518_v10 = vld [vmem:[#allocation12 + $0x70] sm:$0xff] }
 0x77a   :  { %2552 = vmatpush1.msra.mxu0 %v2441_v13  ;;  %2665 = vmatpush1.msra.mxu1 %v2443_v15  ;;  %7694 = vst [vmem:[#allocation50_spill] sm:$0xff] %v6516_v9  ;;  %7695 = vst [vmem:[#allocation48_spill] sm:$0xff] %v6518_v10  ;;  %v6522_v13 = vld [vmem:[#allocation12 + $0x48] sm:$0xff]  ;;  %v6524_v15 = vld [vmem:[#allocation12 + $0x58] sm:$0xff] }
 0x77b   :  { %2553 = vmatprep.subr.mxu0 %v2438_v16  ;;  %2666 = vmatprep.subr.mxu1 %v2440_v18  ;;  %7696 = vst [vmem:[#allocation19_spill] sm:$0xff] %v6522_v13  ;;  %7697 = vst [vmem:[#allocation20_spill] sm:$0xff] %v6524_v15  ;;  %v6528_v16 = vld [vmem:[#allocation12 + $0x40] sm:$0xff]  ;;  %v6530_v18 = vld [vmem:[#allocation12 + $0x50] sm:$0xff] }
 0x77c   :  { %2554 = vmatpush1.msra.mxu0 %v2437_v19  ;;  %2587 = vmatprep.mubr.f32.mxu0 %v7672_v12  ;;  %7698 = vst [vmem:[#allocation51_spill] sm:$0xff] %v6528_v16  ;;  %7699 = vst [vmem:[#allocation53_spill] sm:$0xff] %v6530_v18  ;;  %v6534_v19 = vld [vmem:[#allocation12 + $0x28] sm:$0xff] }
 0x77d   :  { %2667 = vmatpush1.msra.mxu1 %v2439_v21  ;;  %2700 = vmatprep.mubr.f32.mxu1 %v7672_v12  ;;  %7700 = vst [vmem:[#allocation54_spill] sm:$0xff] %v6534_v19  ;;  %v6536_v21 = vld [vmem:[#allocation12 + $0x38] sm:$0xff] }
 0x77e   :  { %2588 = vmatmul.mubr.f32.vlgmr.msra.gmra.mxu0 %v7682_v22  ;;  %2701 = vmatmul.mubr.f32.vlgmr.msra.gmra.mxu1 %v7682_v22  ;;  %7701 = vst [vmem:[#allocation52_spill] sm:$0xff] %v6536_v21  ;;  %v6540_v22 = vld [vmem:[#allocation12 + $0x20] sm:$0xff] }
 0x77f   :  { %2593 = vmatprep.mubr.f32.mxu0 %v7672_v12  ;;  %2706 = vmatprep.mubr.f32.mxu1 %v7672_v12  ;;  %7702 = vst [vmem:[#allocation21_spill] sm:$0xff] %v6540_v22 }
 0x780   :  { %2924 = vmatprep.subr.mxu1 %v6368_v25 }
 0x781   :  { %2925 = vmatpush1.msra.mxu1 %v6374_v26 }
 0x782   :  { %2594 = vmatmul.mubr.f32.gmra.mxu0 %v7683_v23  ;;  %2707 = vmatmul.mubr.f32.gmra.mxu1 %v7683_v23  ;;  %v6542_v23 = vld [vmem:[#allocation12 + $0x30] sm:$0xff] }
 0x783   :  { %2599 = vmatprep.mubr.f32.mxu0 %v7672_v12  ;;  %2712 = vmatprep.mubr.f32.mxu1 %v7672_v12  ;;  %7703 = vst [vmem:[#allocation22_spill] sm:$0xff] %v6542_v23 }
 0x784   :  { %2926 = vmatprep.subr.mxu1 %v6380_v28 }
 0x785   :  { %2927 = vmatpush1.msra.mxu1 %v6386_v31 }
 0x786   :  { %2600 = vmatmul.mubr.f32.gmra.mxu0 %v7684_v24  ;;  %2713 = vmatmul.mubr.f32.gmra.mxu1 %v7684_v24  ;;  %v6546_v24 = vld [vmem:[#allocation12 + $0x8] sm:$0xff] }
 0x787   :  { %2605 = vmatprep.mubr.f32.mxu0 %v7672_v12  ;;  %2718 = vmatprep.mubr.f32.mxu1 %v7672_v12  ;;  %7704 = vst [vmem:[#allocation23_spill] sm:$0xff] %v6546_v24 }
 0x788   :  { %2928 = vmatprep.subr.mxu1 %v6392_v33 }
 0x789   :  { %2929 = vmatpush1.msra.mxu1 %v6398_v35 }
 0x78a   :  { %2606 = vmatmul.mubr.f32.gmra.mxu0 %v7685_v44  ;;  %2719 = vmatmul.mubr.f32.gmra.mxu1 %v7685_v44  ;;  %v6548_v44 = vld [vmem:[#allocation12 + $0x18] sm:$0xff] }
 0x78b   :  { %2611 = vmatprep.mubr.f32.mxu0 %v7672_v12  ;;  %2724 = vmatprep.mubr.f32.mxu1 %v7672_v12  ;;  %7705 = vst [vmem:[#allocation24_spill] sm:$0xff] %v6548_v44 }
 0x78c   :  { %2930 = vmatprep.subr.mxu1 %v6404_v37 }
 0x78d   :  { %2931 = vmatpush1.msra.mxu1 %v6410_v40 }
 0x78e   :  { %2612 = vmatmul.mubr.f32.gmra.mxu0 %v6242_v62  ;;  %2725 = vmatmul.mubr.f32.gmra.mxu1 %v6242_v62  ;;  %v6366_v62 = vld [vmem:[#allocation12 + $0x1e8] sm:$0xff] }
 0x78f   :  { %2617 = vmatprep.mubr.f32.mxu0 %v7672_v12  ;;  %2730 = vmatprep.mubr.f32.mxu1 %v7672_v12  ;;  %7686 = vst [vmem:[#allocation42_spill] sm:$0xff] %v6366_v62 }
 0x790   :  { %2853 = vmatprep.subr.mxu0 %v6366_v62  ;;  %2932 = vmatprep.subr.mxu1 %v6416_v42 }
 0x791   :  { %2933 = vmatpush1.msra.mxu1 %v6422_v46 }
 0x792   :  { %2618 = vmatmul.mubr.f32.gmra.mxu0 %v6318_v63  ;;  %2731 = vmatmul.mubr.f32.gmra.mxu1 %v6318_v63  ;;  %v6372_v63 = vld [vmem:[#allocation12 + $0x1e0] sm:$0xff] }
 0x793   :  { %2623 = vmatprep.mubr.f32.mxu0 %v7672_v12  ;;  %2736 = vmatprep.mubr.f32.mxu1 %v7672_v12 }
 0x794   :  { %2854 = vmatpush1.msra.mxu0 %v6372_v63  ;;  %2934 = vmatprep.subr.mxu1 %v6428_v27 }
 0x795   :  { %2935 = vmatpush1.msra.mxu1 %v6434_v53 }
 0x796   :  { %2624 = vmatmul.mubr.f32.gmra.mxu0 %v6332_v17  ;;  %2737 = vmatmul.mubr.f32.gmra.mxu1 %v6332_v17  ;;  %v6378_v17 = vld [vmem:[#allocation12 + $0x1c8] sm:$0xff] }
 0x797   :  { %2629 = vmatprep.mubr.f32.mxu0 %v7672_v12  ;;  %2742 = vmatprep.mubr.f32.mxu1 %v7672_v12 }
 0x798   :  { %2855 = vmatprep.subr.mxu0 %v6378_v17  ;;  %2936 = vmatprep.subr.mxu1 %v6440_v38 }
 0x799   :  { %2856 = vmatpush1.msra.mxu0 %v6384_v30  ;;  %2937 = vmatpush1.msra.mxu1 %v6446_v50 }
 0x79a   :  { %2857 = vmatprep.subr.mxu0 %v6390_v32  ;;  %2938 = vmatprep.subr.mxu1 %v6452_v59 }
 0x79b   :  { %2858 = vmatpush1.msra.mxu0 %v6396_v34  ;;  %2939 = vmatpush1.msra.mxu1 %v6458_v61 }
 0x79c   :  { %2859 = vmatprep.subr.mxu0 %v6402_v36  ;;  %2940 = vmatprep.subr.mxu1 %v6464_v54 }
 0x79d   :  { %2860 = vmatpush1.msra.mxu0 %v6408_v39  ;;  %2941 = vmatpush1.msra.mxu1 %v6470_v51 }
 0x79e   :  { %2861 = vmatprep.subr.mxu0 %v6414_v41  ;;  %2942 = vmatprep.subr.mxu1 %v6476_v29 }
 0x79f   :  { %2862 = vmatpush1.msra.mxu0 %v6420_v43  ;;  %2943 = vmatpush1.msra.mxu1 %v6482_v57 }
 0x7a0   :  { %2863 = vmatprep.subr.mxu0 %v6426_v47  ;;  %2944 = vmatprep.subr.mxu1 %v6488_v60 }
 0x7a1   :  { %2864 = vmatpush1.msra.mxu0 %v6432_v45  ;;  %2945 = vmatpush1.msra.mxu1 %v6494_v4 }
 0x7a2   :  { %2865 = vmatprep.subr.mxu0 %v6438_v1  ;;  %2946 = vmatprep.subr.mxu1 %v6500_v58 }
 0x7a3   :  { %2866 = vmatpush1.msra.mxu0 %v6444_v20  ;;  %2947 = vmatpush1.msra.mxu1 %v6506_v6 }
 0x7a4   :  { %2867 = vmatprep.subr.mxu0 %v6450_v2  ;;  %2948 = vmatprep.subr.mxu1 %v6512_v8  ;;  %v7710_v8 = vld [vmem:[#allocation66_spill] sm:$0xff] }
 0x7a5   :  { %2868 = vmatpush1.msra.mxu0 %v6456_v11  ;;  %2949 = vmatpush1.msra.mxu1 %v6518_v10 }
 0x7a6   :  { %2869 = vmatprep.subr.mxu0 %v6462_v48  ;;  %2950 = vmatprep.subr.mxu1 %v6524_v15 }
 0x7a7   :  { %2870 = vmatpush1.msra.mxu0 %v6468_v49  ;;  %2951 = vmatpush1.msra.mxu1 %v6530_v18  ;;  %v6550_v18 = vld [vmem:[#allocation12] sm:$0xff] }
 0x7a8   :  { %2871 = vmatprep.subr.mxu0 %v6474_v55  ;;  %2952 = vmatprep.subr.mxu1 %v6536_v21  ;;  %7706 = vst [vmem:[#allocation25_spill] sm:$0xff] %v6550_v18 }
 0x7a9   :  { %2872 = vmatpush1.msra.mxu0 %v6480_v0  ;;  %2953 = vmatpush1.msra.mxu1 %v6542_v23 }
 0x7aa   :  { %2873 = vmatprep.subr.mxu0 %v6486_v56  ;;  %2954 = vmatprep.subr.mxu1 %v6548_v44 }
 0x7ab   :  { %2874 = vmatpush1.msra.mxu0 %v6492_v3 }
 0x7ac   :  { %2875 = vmatprep.subr.mxu0 %v6498_v52 }
 0x7ad   :  { %2876 = vmatpush1.msra.mxu0 %v6504_v5 }
 0x7ae   :  { %2877 = vmatprep.subr.mxu0 %v6510_v7  ;;  %v7711_v7 = vld [vmem:[#allocation64_spill] sm:$0xff] }
 0x7af   :  { %2878 = vmatpush1.msra.mxu0 %v6516_v9 }
 0x7b0   :  { %2879 = vmatprep.subr.mxu0 %v6522_v13  ;;  %v7709_v13 = vld [vmem:[#allocation65_spill] sm:$0xff] }
 0x7b1   :  { %2880 = vmatpush1.msra.mxu0 %v6528_v16 }
 0x7b2   :  { %2881 = vmatprep.subr.mxu0 %v6534_v19  ;;  %v6554_v19 = vld [vmem:[#allocation12 + $0x10] sm:$0xff] }
 0x7b3   :  { %2882 = vmatpush1.msra.mxu0 %v6540_v22  ;;  %7707 = vst [vmem:[#allocation26_spill] sm:$0xff] %v6554_v19  ;;  %2955 = vmatpush1.msra.mxu1 %v6554_v19  ;;  %v7708_v22 = vld [vmem:[#allocation63_spill] sm:$0xff] }
 0x7b4   :  { %2883 = vmatprep.subr.mxu0 %v6546_v24  ;;  %3166 = vmatprep.subr.mxu1 %v6368_v25 }
 0x7b5   :  { %2884 = vmatpush1.msra.mxu0 %v6550_v18 }
 0x7b6   :  { %3095 = vmatprep.subr.mxu0 %v6366_v62 }
 0x81d   :  { %v2321_v23 = vpop.f32.mrf.mxu0  ;;  %v2392_v24 = vpop.f32.mrf.mxu1 }
 0x81e   :  { %v2397_v21 = vadd.f32 %v2321_v23, %v7708_v22  ;;  %v2399_v19 = vadd.f32 %v2392_v24, %v7711_v7  ;;  %v7718_v24 = vld [vmem:[#allocation19_spill] sm:$0xff] }
 0x81f   :  { %v2323_v16 = vpop.f32.mrf.mxu0  ;;  %v2394_v9 = vpop.f32.mrf.mxu1 }
 0x820   :  { %v4849_v15 = vmul.f32 -1.442695, %v2397_v21  ;;  %v2398_v10 = vadd.f32 %v2323_v16, %v7709_v13  ;;  %v2400_v18 = vadd.f32 %v2394_v9, %v7710_v8 }
 0x822   :  { %5052 = vpow2.f32 %v4849_v15  ;;  %v4850_v44 = vmul.f32 -1.442695, %v2398_v10  ;;  %v4851_v6 = vmul.f32 -1.442695, %v2400_v18  ;;  %v7716_v18 = vld [vmem:[#allocation50_spill] sm:$0xff] }
 0x824   :  { %5054 = vpow2.f32 %v4850_v44 }
 0x825   :  { %5056 = vtanh.f32 %v2399_v19  ;;  %v7717_v19 = vld [vmem:[#allocation48_spill] sm:$0xff] }
 0x826   :  { %5058 = vpow2.f32 %v4851_v6  ;;  %v7715_v6 = vld [vmem:[#allocation49_spill] sm:$0xff] }
 0x82f   :  { %v5053_v62 = vpop.eup %5052 }
 0x830   :  { %v2404_v5 = vadd.f32 1.0, %v5053_v62 }
 0x831   :  { %v5055_v25 = vpop.eup %5054 }
 0x832   :  { %5060 = vrcp.f32 %v2404_v5  ;;  %v2410_v22 = vadd.f32 1.0, %v5055_v25  ;;  %v5057_v21 = vpop.eup %5056  ;;  %v7713_v25 = vld [vmem:[#allocation44_spill] sm:$0xff]  ;;  %v7714_v5 = vld [vmem:[#allocation47_spill] sm:$0xff] }
 0x833   :  { %v5059_v13 = vpop.eup %5058 }
 0x834   :  { %5062 = vrcp.f32 %v2410_v22  ;;  %v2417_v23 = vadd.f32 1.0, %v5059_v13  ;;  %v7719_v22 = vld [vmem:[#allocation20_spill] sm:$0xff]  ;;  %v7721_v13 = vld [vmem:[#allocation53_spill] sm:$0xff] }
 0x836   :  { %5064 = vrcp.f32 %v2417_v23  ;;  %v7725_v23 = vld [vmem:[#allocation22_spill] sm:$0xff] }
 0x83f   :  { %v5061_v15 = vpop.eup %5060 }
 0x840   :  { %v2421_v16 = vmul.f32 %v5061_v15, %v5057_v21  ;;  %v7720_v21 = vld [vmem:[#allocation51_spill] sm:$0xff]  ;;  %v7722_v15 = vld [vmem:[#allocation54_spill] sm:$0xff] }
 0x841   :  { %v5063_v10 = vpop.eup %5062 }
 0x842   :  { %v2420_v44 = vmul.f32 %v5063_v10, %v6329_v14  ;;  %v7712_v14 = vld [vmem:[#allocation46_spill] sm:$0xff]  ;;  %v7724_v10 = vld [vmem:[#allocation21_spill] sm:$0xff] }
 0x843   :  { %v5065_v7 = vpop.eup %5064 }
 0x844   :  { %v2422_v8 = vadd.f32 %v2421_v16, %v2420_v44  ;;  %v7723_v16 = vld [vmem:[#allocation52_spill] sm:$0xff]  ;;  %v7726_v44 = vld [vmem:[#allocation23_spill] sm:$0xff] }
 0x846   :  { %5066 = vtanh.f32 %v2422_v8  ;;  %v7727_v8 = vld [vmem:[#allocation24_spill] sm:$0xff] }
 0x853   :  { %v5067_v9 = vpop.eup %5066 }
 0x854   :  { %v2424_v62 = vmul.f32 %v5067_v9, %v5065_v7  ;;  %v7728_v7 = vld [vmem:[#allocation25_spill] sm:$0xff]  ;;  %v7729_v9 = vld [vmem:[#allocation26_spill] sm:$0xff] }
 0x856   :  { %2630 = vmatmul.mubr.f32.gmra.mxu0 %v2424_v62  ;;  %2743 = vmatmul.mubr.f32.gmra.mxu1 %v2424_v62  ;;  %v7730_v62 = vld [vmem:[#allocation42_spill] sm:$0xff] }
 0x857   :  { %2917 = vmatprep.mubr.f32.mxu0 %v7672_v12  ;;  %2988 = vmatprep.mubr.f32.mxu1 %v7672_v12 }
 0x85a   :  { %2918 = vmatmul.mubr.f32.vlgmr.msra.gmra.mxu0 %v7672_v12  ;;  %2989 = vmatmul.mubr.f32.vlgmr.msra.gmra.mxu1 %v7672_v12 }
 0x85b   :  { %3096 = vmatpush1.msra.mxu0 %v6372_v63  ;;  %3167 = vmatpush1.msra.mxu1 %v6374_v26 }
 0x85c   :  { %3097 = vmatprep.subr.mxu0 %v6378_v17  ;;  %3168 = vmatprep.subr.mxu1 %v6380_v28 }
 0x85d   :  { %3098 = vmatpush1.msra.mxu0 %v6384_v30  ;;  %3169 = vmatpush1.msra.mxu1 %v6386_v31 }
 0x85e   :  { %3099 = vmatprep.subr.mxu0 %v6390_v32  ;;  %3170 = vmatprep.subr.mxu1 %v6392_v33 }
 0x85f   :  { %3100 = vmatpush1.msra.mxu0 %v6396_v34  ;;  %3171 = vmatpush1.msra.mxu1 %v6398_v35 }
 0x860   :  { %3101 = vmatprep.subr.mxu0 %v6402_v36  ;;  %3172 = vmatprep.subr.mxu1 %v6404_v37 }
 0x861   :  { %3102 = vmatpush1.msra.mxu0 %v6408_v39  ;;  %3173 = vmatpush1.msra.mxu1 %v6410_v40 }
 0x862   :  { %3103 = vmatprep.subr.mxu0 %v6414_v41  ;;  %3174 = vmatprep.subr.mxu1 %v6416_v42 }
 0x863   :  { %3104 = vmatpush1.msra.mxu0 %v6420_v43  ;;  %3175 = vmatpush1.msra.mxu1 %v6422_v46 }
 0x864   :  { %3105 = vmatprep.subr.mxu0 %v6426_v47  ;;  %3176 = vmatprep.subr.mxu1 %v6428_v27 }
 0x865   :  { %3106 = vmatpush1.msra.mxu0 %v6432_v45  ;;  %3177 = vmatpush1.msra.mxu1 %v6434_v53 }
 0x866   :  { %3107 = vmatprep.subr.mxu0 %v6438_v1  ;;  %3178 = vmatprep.subr.mxu1 %v6440_v38 }
 0x867   :  { %3108 = vmatpush1.msra.mxu0 %v6444_v20  ;;  %3179 = vmatpush1.msra.mxu1 %v6446_v50 }
 0x868   :  { %3109 = vmatprep.subr.mxu0 %v6450_v2  ;;  %3180 = vmatprep.subr.mxu1 %v6452_v59 }
 0x869   :  { %3110 = vmatpush1.msra.mxu0 %v6456_v11  ;;  %3181 = vmatpush1.msra.mxu1 %v6458_v61 }
 0x86a   :  { %3111 = vmatprep.subr.mxu0 %v6462_v48  ;;  %3182 = vmatprep.subr.mxu1 %v6464_v54 }
 0x86b   :  { %3112 = vmatpush1.msra.mxu0 %v6468_v49  ;;  %3183 = vmatpush1.msra.mxu1 %v6470_v51 }
 0x86c   :  { %3113 = vmatprep.subr.mxu0 %v6474_v55  ;;  %3184 = vmatprep.subr.mxu1 %v6476_v29 }
 0x86d   :  { %3114 = vmatpush1.msra.mxu0 %v6480_v0  ;;  %3185 = vmatpush1.msra.mxu1 %v6482_v57 }
 0x86e   :  { %3115 = vmatprep.subr.mxu0 %v6486_v56  ;;  %3186 = vmatprep.subr.mxu1 %v6488_v60 }
 0x86f   :  { %3116 = vmatpush1.msra.mxu0 %v6492_v3  ;;  %3187 = vmatpush1.msra.mxu1 %v6494_v4 }
 0x870   :  { %3117 = vmatprep.subr.mxu0 %v6498_v52  ;;  %3188 = vmatprep.subr.mxu1 %v6500_v58 }
 0x871   :  { %3118 = vmatpush1.msra.mxu0 %v7712_v14  ;;  %3189 = vmatpush1.msra.mxu1 %v7713_v25 }
 0x872   :  { %3119 = vmatprep.subr.mxu0 %v7714_v5  ;;  %3190 = vmatprep.subr.mxu1 %v7715_v6 }
 0x873   :  { %3120 = vmatpush1.msra.mxu0 %v7716_v18  ;;  %3191 = vmatpush1.msra.mxu1 %v7717_v19 }
 0x874   :  { %3121 = vmatprep.subr.mxu0 %v7718_v24  ;;  %3192 = vmatprep.subr.mxu1 %v7719_v22 }
 0x875   :  { %3122 = vmatpush1.msra.mxu0 %v7720_v21  ;;  %3193 = vmatpush1.msra.mxu1 %v7721_v13 }
 0x876   :  { %3123 = vmatprep.subr.mxu0 %v7722_v15  ;;  %3194 = vmatprep.subr.mxu1 %v7723_v16  ;;  %v7731_v15 = vld [vmem:[#allocation40_spill] sm:$0xff]  ;;  %v2589_v16 = vpop.f32.mrf.mxu0 }
 0x877   :  { %3124 = vmatpush1.msra.mxu0 %v7724_v10  ;;  %3195 = vmatpush1.msra.mxu1 %v7725_v23  ;;  %v2702_v10 = vpop.f32.mrf.mxu1 }
 0x878   :  { %3125 = vmatprep.subr.mxu0 %v7726_v44  ;;  %3196 = vmatprep.subr.mxu1 %v7727_v8  ;;  %v2591_v13 = vpop.f32.mrf.mxu0 }
 0x879   :  { %3126 = vmatpush1.msra.mxu0 %v7728_v7  ;;  %3159 = vmatprep.mubr.f32.mxu0 %v7672_v12  ;;  %v2704_v23 = vpop.f32.mrf.mxu1 }
 0x87a   :  { %3197 = vmatpush1.msra.mxu1 %v7729_v9  ;;  %3230 = vmatprep.mubr.f32.mxu1 %v7672_v12  ;;  %v6635_v21 = vpop.f32.mrf.mxu0 }
 0x87b   :  { %3337 = vmatprep.subr.mxu0 %v7730_v62  ;;  %3408 = vmatprep.subr.mxu1 %v7731_v15  ;;  %7732 = vst [vmem:[#allocation27_spill] sm:$0xff] %v6635_v21  ;;  %v6637_v44 = vpop.f32.mrf.mxu1 }
 0x87c   :  { %7733 = vst [vmem:[#allocation28_spill] sm:$0xff] %v6637_v44  ;;  %v6639_v8 = vpop.f32.mrf.mxu0 }
 0x87d   :  { %7734 = vst [vmem:[#allocation29_spill] sm:$0xff] %v6639_v8  ;;  %v6641_v7 = vpop.f32.mrf.mxu1 }
 0x87e   :  { %7735 = vst [vmem:[#allocation30_spill] sm:$0xff] %v6641_v7  ;;  %v6643_v22 = vpop.f32.mrf.mxu0 }
 0x87f   :  { %7736 = vst [vmem:[#allocation31_spill] sm:$0xff] %v6643_v22  ;;  %v6645_v9 = vpop.f32.mrf.mxu1 }
 0x880   :  { %7737 = vst [vmem:[#allocation32_spill] sm:$0xff] %v6645_v9  ;;  %v6647_v12 = vpop.f32.mrf.mxu0 }
 0x881   :  { %7738 = vst [vmem:[#allocation33_spill] sm:$0xff] %v6647_v12  ;;  %v6649_v62 = vpop.f32.mrf.mxu1 }
 0x882   :  { %7739 = vst [vmem:[#allocation34_spill] sm:$0xff] %v6649_v62  ;;  %v6651_v15 = vpop.f32.mrf.mxu0 }
 0x883   :  { %7740 = vst [vmem:[#allocation35_spill] sm:$0xff] %v6651_v15  ;;  %v6653_v24 = vpop.f32.mrf.mxu1 }
 0x884   :  { %7741 = vst [vmem:[#allocation36_spill] sm:$0xff] %v6653_v24  ;;  %v6655_v19 = vpop.f32.mrf.mxu0 }
 0x885   :  { %7742 = vst [vmem:[#allocation37_spill] sm:$0xff] %v6655_v19  ;;  %v6657_v21 = vpop.f32.mrf.mxu1 }
 0x886   :  { %7743 = vst [vmem:[#allocation55_spill] sm:$0xff] %v6657_v21  ;;  %v6659_v44 = vpop.f32.mrf.mxu0 }
 0x887   :  { %7744 = vst [vmem:[#allocation57_spill] sm:$0xff] %v6659_v44  ;;  %v6661_v8 = vpop.f32.mrf.mxu1 }
 0x888   :  { %7745 = vst [vmem:[#allocation58_spill] sm:$0xff] %v6661_v8  ;;  %v6663_v7 = vpop.f32.mrf.mxu0  ;;  %v2501_v8 = vld [vmem:[%s7317_s6] sm:$0xf] }
 0x889   :  { %7746 = vst [vmem:[#allocation56_spill] sm:$0xff] %v6663_v7  ;;  %v6665_v22 = vpop.f32.mrf.mxu1  ;;  %v7755_v7 = vld [vmem:[#allocation39_spill] sm:$0xff] }
 0x88a   :  { %7747 = vst [vmem:[#allocation59_spill] sm:$0xff] %v6665_v22  ;;  %v6667_v9 = vpop.f32.mrf.mxu0  ;;  %v7756_v22 = vsub.s32 0, %v7755_v7 }
 0x88b   :  { %7748 = vst [vmem:[#allocation61_spill] sm:$0xff] %v6667_v9  ;;  %v6669_v12 = vpop.f32.mrf.mxu1 }
 0x88c   :  { %7749 = vst [vmem:[#allocation62_spill] sm:$0xff] %v6669_v12  ;;  %v6671_v62 = vpop.f32.mrf.mxu0  ;;  %v6686_v21 = vrot.slane %v2501_v8, %v7756_v22 }
 0x88d   :  { %7750 = vst [vmem:[#allocation60_spill] sm:$0xff] %v6671_v62  ;;  %v6673_v15 = vpop.f32.mrf.mxu1 }
 0x88e   :  { %7751 = vst [vmem:[#allocation67_spill] sm:$0xff] %v6673_v15  ;;  %v6675_v24 = vpop.f32.mrf.mxu0  ;;  %7757 = vst [vmem:[#allocation63_spill] sm:$0xff] %v6686_v21  ;;  %v7760_v15 = vsub.s32 1, %v7755_v7  ;;  %v2590_v18 = vadd.f32 %v2589_v16, %v6686_v21 }
 0x88f   :  { %7752 = vst [vmem:[#allocation18_spill] sm:$0xff] %v6675_v24  ;;  %v6677_v19 = vpop.f32.mrf.mxu1 }
 0x890   :  { %7753 = vst [vmem:[#allocation38_spill] sm:$0xff] %v6677_v19  ;;  %v6682_v44 = vpop.f32.mrf.mxu0  ;;  %v6694_v62 = vrot.slane %v2501_v8, %v7760_v15  ;;  %v7764_v15 = vsub.s32 3, %v7755_v7 }
 0x891   :  { %7754 = vst [vmem:[#allocation41_spill] sm:$0xff] %v6682_v44  ;;  %v6688_v9 = vpop.f32.mrf.mxu1 }
 0x892   :  { %7758 = vst [vmem:[#allocation65_spill] sm:$0xff] %v6688_v9  ;;  %v2592_v44 = vadd.f32 %v2591_v13, %v6694_v62  ;;  %v6706_v52 = vrot.slane %v2501_v8, %v7764_v15 }
 0x894   :  { %7765 = vst [vmem:[#allocation39_spill] sm:$0xff] %v6706_v52  ;;  %v2705_v16 = vadd.f32 %v2704_v23, %v6706_v52 }
 0x916   :  { %v6690_v12 = vpop.f32.mrf.mxu0  ;;  %v6696_v24 = vpop.f32.mrf.mxu1 }
 0x917   :  { %7759 = vst [vmem:[#allocation66_spill] sm:$0xff] %v6690_v12  ;;  %7761 = vst [vmem:[#allocation64_spill] sm:$0xff] %v6696_v24 }
 0x918   :  { %v6698_v19 = vpop.f32.mrf.mxu0  ;;  %v6702_v5 = vpop.f32.mrf.mxu1 }
 0x919   :  { %7762 = vst [vmem:[#allocation42_spill] sm:$0xff] %v6698_v19  ;;  %7763 = vst [vmem:[#allocation40_spill] sm:$0xff] %v6702_v5  ;;  %v7766_v19 = vsub.s32 2, %v7755_v7 }
 0x91a   :  { %v2919_v6 = vpop.f32.mrf.mxu0  ;;  %v2990_v12 = vpop.f32.mrf.mxu1 }
 0x91b   :  { %v2995_v22 = vadd.f32 %v2919_v6, %v2590_v18  ;;  %v6711_v13 = vrot.slane %v2501_v8, %v7766_v19 }
 0x91c   :  { %v2921_v25 = vpop.f32.mrf.mxu0  ;;  %v2992_v24 = vpop.f32.mrf.mxu1 }
 0x91d   :  { %v4852_v9 = vmul.f32 -1.442695, %v2995_v22  ;;  %v2996_v14 = vadd.f32 %v2921_v25, %v2592_v44  ;;  %v2998_v5 = vadd.f32 %v2992_v24, %v2705_v16  ;;  %v2703_v6 = vadd.f32 %v2702_v10, %v6711_v13 }
 0x91f   :  { %5068 = vpow2.f32 %v4852_v9  ;;  %v4853_v58 = vmul.f32 -1.442695, %v2996_v14  ;;  %v4854_v18 = vmul.f32 -1.442695, %v2998_v5  ;;  %v2997_v44 = vadd.f32 %v2990_v12, %v2703_v6 }
 0x921   :  { %5070 = vpow2.f32 %v4853_v58 }
 0x922   :  { %5072 = vpow2.f32 %v4854_v18  ;;  %v7790_v18 = vld [vmem:[#allocation39_spill] sm:$0xff] }
 0x92c   :  { %v5069_v25 = vpop.eup %5068 }
 0x92d   :  { %v3002_v9 = vadd.f32 1.0, %v5069_v25  ;;  %v7791_v25 = vld [vmem:[#allocation30_spill] sm:$0xff] }
 0x92e   :  { %v5071_v14 = vpop.eup %5070 }
 0x92f   :  { %5074 = vrcp.f32 %v3002_v9  ;;  %v3008_v22 = vadd.f32 1.0, %v5071_v14  ;;  %v5073_v58 = vpop.eup %5072  ;;  %v7792_v14 = vld [vmem:[#allocation28_spill] sm:$0xff] }
 0x930   :  { %5076 = vtanh.f32 %v2997_v44  ;;  %v3015_v7 = vadd.f32 1.0, %v5073_v58  ;;  %v2711_v44 = vadd.f32 %v7791_v25, %v7790_v18  ;;  %v6809_v25 = vld [vmem:[#allocation12 + $0x1d8] sm:$0xff] }
 0x931   :  { %5078 = vrcp.f32 %v3008_v22  ;;  %v2709_v22 = vadd.f32 %v7792_v14, %v6711_v13  ;;  %v6819_v14 = vld [vmem:[#allocation12 + $0x1a8] sm:$0xff] }
 0x932   :  { %5080 = vrcp.f32 %v3015_v7 }
 0x93c   :  { %v5075_v15 = vpop.eup %5074 }
 0x93d   :  { %v5077_v23 = vpop.eup %5076 }
 0x93e   :  { %v5079_v52 = vpop.eup %5078  ;;  %v3019_v8 = vmul.f32 %v5077_v23, %v5075_v15 }
 0x93f   :  { %v3018_v19 = vmul.f32 0.0, %v5079_v52  ;;  %v5081_v12 = vpop.eup %5080 }
 0x941   :  { %v6714_v24 = vadd.f32 %v3019_v8, %v3018_v19 }
 0x943   :  { %5082 = vtanh.f32 %v6714_v24 }
 0x950   :  { %v5083_v5 = vpop.eup %5082 }
 0x951   :  { %v3022_v10 = vmul.f32 %v5083_v5, %v5081_v12 }
 0x953   :  { %3160 = vmatmul.mubr.f32.vlgmr.msra.gmra.mxu0 %v3022_v10  ;;  %3231 = vmatmul.mubr.f32.vlgmr.msra.gmra.mxu1 %v3022_v10 }
 0x954   :  { %3338 = vmatpush1.msra.mxu0 %v6372_v63  ;;  %3409 = vmatpush1.msra.mxu1 %v6374_v26  ;;  %v7767_v63 = vld [vmem:[#allocation43_spill] sm:$0xff]  ;;  %v7768_v26 = vld [vmem:[#allocation45_spill] sm:$0xff] }
 0x955   :  { %3339 = vmatprep.subr.mxu0 %v6378_v17  ;;  %3410 = vmatprep.subr.mxu1 %v6380_v28  ;;  %v7769_v17 = vld [vmem:[#allocation46_spill] sm:$0xff]  ;;  %v7770_v28 = vld [vmem:[#allocation44_spill] sm:$0xff] }
 0x956   :  { %3340 = vmatpush1.msra.mxu0 %v6384_v30  ;;  %3411 = vmatpush1.msra.mxu1 %v6386_v31  ;;  %v7771_v30 = vld [vmem:[#allocation47_spill] sm:$0xff]  ;;  %v7772_v31 = vld [vmem:[#allocation49_spill] sm:$0xff] }
 0x957   :  { %3341 = vmatprep.subr.mxu0 %v6390_v32  ;;  %3412 = vmatprep.subr.mxu1 %v6392_v33  ;;  %v7773_v32 = vld [vmem:[#allocation50_spill] sm:$0xff]  ;;  %v7774_v33 = vld [vmem:[#allocation48_spill] sm:$0xff] }
 0x958   :  { %3342 = vmatpush1.msra.mxu0 %v6396_v34  ;;  %3413 = vmatpush1.msra.mxu1 %v6398_v35  ;;  %v7775_v34 = vld [vmem:[#allocation19_spill] sm:$0xff]  ;;  %v7776_v35 = vld [vmem:[#allocation20_spill] sm:$0xff] }
 0x959   :  { %3343 = vmatprep.subr.mxu0 %v6402_v36  ;;  %3414 = vmatprep.subr.mxu1 %v6404_v37  ;;  %v7777_v36 = vld [vmem:[#allocation51_spill] sm:$0xff]  ;;  %v7778_v37 = vld [vmem:[#allocation53_spill] sm:$0xff] }
 0x95a   :  { %3344 = vmatpush1.msra.mxu0 %v6408_v39  ;;  %3415 = vmatpush1.msra.mxu1 %v6410_v40  ;;  %v7779_v39 = vld [vmem:[#allocation54_spill] sm:$0xff]  ;;  %v7780_v40 = vld [vmem:[#allocation52_spill] sm:$0xff] }
 0x95b   :  { %3345 = vmatprep.subr.mxu0 %v6414_v41  ;;  %3416 = vmatprep.subr.mxu1 %v6416_v42  ;;  %v7781_v41 = vld [vmem:[#allocation21_spill] sm:$0xff]  ;;  %v7782_v42 = vld [vmem:[#allocation22_spill] sm:$0xff] }
 0x95c   :  { %3346 = vmatpush1.msra.mxu0 %v6420_v43  ;;  %3417 = vmatpush1.msra.mxu1 %v6422_v46  ;;  %v7783_v43 = vld [vmem:[#allocation23_spill] sm:$0xff]  ;;  %v7784_v46 = vld [vmem:[#allocation24_spill] sm:$0xff] }
 0x95d   :  { %3347 = vmatprep.subr.mxu0 %v6426_v47  ;;  %3418 = vmatprep.subr.mxu1 %v6428_v27  ;;  %v7785_v47 = vld [vmem:[#allocation25_spill] sm:$0xff]  ;;  %v7786_v27 = vmov 0.0  }
 0x95e   :  { %3348 = vmatpush1.msra.mxu0 %v6432_v45  ;;  %3419 = vmatpush1.msra.mxu1 %v6434_v53  ;;  %v7787_v45 = vld [vmem:[#allocation26_spill] sm:$0xff]  ;;  %v7788_v53 = vld [vmem:[#allocation27_spill] sm:$0xff] }
 0x95f   :  { %3349 = vmatprep.subr.mxu0 %v6438_v1  ;;  %3420 = vmatprep.subr.mxu1 %v6440_v38  ;;  %v2596_v1 = vadd.f32 %v7788_v53, %v6686_v21 }
 0x960   :  { %3350 = vmatpush1.msra.mxu0 %v6444_v20  ;;  %3421 = vmatpush1.msra.mxu1 %v6446_v50  ;;  %v7789_v20 = vld [vmem:[#allocation29_spill] sm:$0xff] }
 0x961   :  { %3351 = vmatprep.subr.mxu0 %v6450_v2  ;;  %3422 = vmatprep.subr.mxu1 %v6452_v59  ;;  %v2598_v50 = vadd.f32 %v7789_v20, %v6694_v62 }
 0x962   :  { %3352 = vmatpush1.msra.mxu0 %v6456_v11  ;;  %3423 = vmatpush1.msra.mxu1 %v6458_v61 }
 0x963   :  { %3353 = vmatprep.subr.mxu0 %v6462_v48  ;;  %3424 = vmatprep.subr.mxu1 %v6464_v54 }
 0x964   :  { %3354 = vmatpush1.msra.mxu0 %v6468_v49  ;;  %3425 = vmatpush1.msra.mxu1 %v6470_v51 }
 0x965   :  { %3355 = vmatprep.subr.mxu0 %v6474_v55  ;;  %3426 = vmatprep.subr.mxu1 %v6476_v29 }
 0x966   :  { %3356 = vmatpush1.msra.mxu0 %v6480_v0  ;;  %3427 = vmatpush1.msra.mxu1 %v6482_v57 }
 0x967   :  { %3357 = vmatprep.subr.mxu0 %v6486_v56  ;;  %3428 = vmatprep.subr.mxu1 %v6488_v60 }
 0x968   :  { %3358 = vmatpush1.msra.mxu0 %v6492_v3  ;;  %3429 = vmatpush1.msra.mxu1 %v6494_v4 }
 0x969   :  { %3359 = vmatprep.subr.mxu0 %v7767_v63  ;;  %3430 = vmatprep.subr.mxu1 %v7768_v26 }
 0x96a   :  { %3360 = vmatpush1.msra.mxu0 %v7769_v17  ;;  %3431 = vmatpush1.msra.mxu1 %v7770_v28 }
 0x96b   :  { %3361 = vmatprep.subr.mxu0 %v7771_v30  ;;  %3432 = vmatprep.subr.mxu1 %v7772_v31 }
 0x96c   :  { %3362 = vmatpush1.msra.mxu0 %v7773_v32  ;;  %3433 = vmatpush1.msra.mxu1 %v7774_v33 }
 0x96d   :  { %3363 = vmatprep.subr.mxu0 %v7775_v34  ;;  %3434 = vmatprep.subr.mxu1 %v7776_v35 }
 0x96e   :  { %3364 = vmatpush1.msra.mxu0 %v7777_v36  ;;  %3435 = vmatpush1.msra.mxu1 %v7778_v37 }
 0x96f   :  { %3365 = vmatprep.subr.mxu0 %v7779_v39  ;;  %3436 = vmatprep.subr.mxu1 %v7780_v40 }
 0x970   :  { %3366 = vmatpush1.msra.mxu0 %v7781_v41  ;;  %3437 = vmatpush1.msra.mxu1 %v7782_v42 }
 0x971   :  { %3367 = vmatprep.subr.mxu0 %v7783_v43  ;;  %3438 = vmatprep.subr.mxu1 %v7784_v46 }
 0x972   :  { %3368 = vmatpush1.msra.mxu0 %v7785_v47  ;;  %3401 = vmatprep.mubr.f32.mxu0 %v7786_v27 }
 0x973   :  { %3439 = vmatpush1.msra.mxu1 %v7787_v45  ;;  %3472 = vmatprep.mubr.f32.mxu1 %v7786_v27 }
 0xa13   :  { %v3161_v38 = vpop.f32.mrf.mxu0  ;;  %v3232_v52 = vpop.f32.mrf.mxu1 }
 0xa14   :  { %v3237_v2 = vadd.f32 %v3161_v38, %v2596_v1  ;;  %v3239_v58 = vadd.f32 %v3232_v52, %v2709_v22  ;;  %v6797_v52 = vld [vmem:[#allocation12 + $0x1f8] sm:$0xff] }
 0xa15   :  { %v3163_v59 = vpop.f32.mrf.mxu0  ;;  %v3234_v6 = vpop.f32.mrf.mxu1  ;;  %7794 = vst [vmem:[#allocation45_spill] sm:$0xff] %v6797_v52  ;;  %3650 = vmatprep.subr.mxu1 %v6797_v52  ;;  %v6821_v22 = vld [vmem:[#allocation12 + $0x1b8] sm:$0xff] }
 0xa16   :  { %v4855_v11 = vmul.f32 -1.442695, %v3237_v2  ;;  %v3238_v61 = vadd.f32 %v3163_v59, %v2598_v50  ;;  %v3240_v9 = vadd.f32 %v3234_v6, %v2711_v44  ;;  %v6807_v6 = vld [vmem:[#allocation12 + $0x1c8] sm:$0xff]  ;;  %v6813_v44 = vld [vmem:[#allocation12 + $0x1c0] sm:$0xff] }
 0xa18   :  { %5084 = vpow2.f32 %v4855_v11  ;;  %v4856_v16 = vmul.f32 -1.442695, %v3238_v61  ;;  %v4857_v15 = vmul.f32 -1.442695, %v3240_v9  ;;  %v6795_v61 = vld [vmem:[#allocation12 + $0x1e8] sm:$0xff]  ;;  %v6815_v9 = vld [vmem:[#allocation12 + $0x1d0] sm:$0xff] }
 0xa19   :  { %7793 = vst [vmem:[#allocation43_spill] sm:$0xff] %v6795_v61  ;;  %3579 = vmatprep.subr.mxu0 %v6795_v61 }
 0xa1a   :  { %5086 = vpow2.f32 %v4856_v16  ;;  %v6803_v16 = vld [vmem:[#allocation12 + $0x1f0] sm:$0xff] }
 0xa1b   :  { %5088 = vtanh.f32 %v3239_v58  ;;  %v6825_v58 = vld [vmem:[#allocation12 + $0x1a0] sm:$0xff] }
 0xa1c   :  { %5090 = vpow2.f32 %v4857_v15  ;;  %v6827_v15 = vld [vmem:[#allocation12 + $0x1b0] sm:$0xff] }
 0xa25   :  { %v5085_v23 = vpop.eup %5084 }
 0xa26   :  { %v3244_v7 = vadd.f32 1.0, %v5085_v23  ;;  %v6831_v23 = vld [vmem:[#allocation12 + $0x188] sm:$0xff] }
 0xa27   :  { %v5087_v19 = vpop.eup %5086 }
 0xa28   :  { %5092 = vrcp.f32 %v3244_v7  ;;  %v3250_v8 = vadd.f32 1.0, %v5087_v19  ;;  %v5089_v12 = vpop.eup %5088  ;;  %v6833_v7 = vld [vmem:[#allocation12 + $0x198] sm:$0xff]  ;;  %v6837_v19 = vld [vmem:[#allocation12 + $0x180] sm:$0xff] }
 0xa29   :  { %v5091_v5 = vpop.eup %5090 }
 0xa2a   :  { %5094 = vrcp.f32 %v3250_v8  ;;  %v3257_v38 = vadd.f32 1.0, %v5091_v5  ;;  %v6839_v8 = vld [vmem:[#allocation12 + $0x190] sm:$0xff]  ;;  %v6845_v5 = vld [vmem:[#allocation12 + $0x178] sm:$0xff] }
 0xa2c   :  { %5096 = vrcp.f32 %v3257_v38  ;;  %v6857_v38 = vld [vmem:[#allocation12 + $0x158] sm:$0xff] }
 0xa2d   :  { %7797 = vst [vmem:[#allocation47_spill] sm:$0xff] %v6857_v38 }
 0xa35   :  { %v5093_v10 = vpop.eup %5092 }
 0xa36   :  { %v3261_v53 = vmul.f32 %v5093_v10, %v5089_v12  ;;  %v6843_v12 = vld [vmem:[#allocation12 + $0x168] sm:$0xff]  ;;  %v6849_v10 = vld [vmem:[#allocation12 + $0x160] sm:$0xff] }
 0xa37   :  { %v5095_v1 = vpop.eup %5094 }
 0xa38   :  { %v3260_v20 = vmul.f32 %v5095_v1, %v6714_v24  ;;  %v6801_v24 = vld [vmem:[#allocation12 + $0x1e0] sm:$0xff]  ;;  %v6855_v1 = vld [vmem:[#allocation12 + $0x148] sm:$0xff] }
 0xa39   :  { %v5097_v2 = vpop.eup %5096  ;;  %7796 = vst [vmem:[#allocation44_spill] sm:$0xff] %v6855_v1 }
 0xa3a   :  { %v6790_v50 = vadd.f32 %v3261_v53, %v3260_v20  ;;  %v6851_v53 = vld [vmem:[#allocation12 + $0x170] sm:$0xff]  ;;  %v6861_v20 = vld [vmem:[#allocation12 + $0x140] sm:$0xff] }
 0xa3b   :  { %7795 = vst [vmem:[#allocation46_spill] sm:$0xff] %v6851_v53  ;;  %7798 = vst [vmem:[#allocation49_spill] sm:$0xff] %v6861_v20 }
 0xa3c   :  { %5098 = vtanh.f32 %v6790_v50 }
 0xa49   :  { %v5099_v59 = vpop.eup %5098 }
 0xa4a   :  { %v3264_v11 = vmul.f32 %v5099_v59, %v5097_v2  ;;  %v6863_v2 = vld [vmem:[#allocation12 + $0x150] sm:$0xff]  ;;  %v6867_v59 = vld [vmem:[#allocation12 + $0x128] sm:$0xff] }
 0xa4b   :  { %7799 = vst [vmem:[#allocation50_spill] sm:$0xff] %v6863_v2 }
 0xa4c   :  { %3402 = vmatmul.mubr.f32.vlgmr.msra.gmra.mxu0 %v3264_v11  ;;  %3473 = vmatmul.mubr.f32.vlgmr.msra.gmra.mxu1 %v3264_v11  ;;  %v6869_v11 = vld [vmem:[#allocation12 + $0x138] sm:$0xff] }
 0xa4d   :  { %3643 = vmatprep.mubr.f32.mxu0 %v7786_v27  ;;  %3714 = vmatprep.mubr.f32.mxu1 %v7786_v27  ;;  %v6873_v27 = vld [vmem:[#allocation12 + $0x120] sm:$0xff] }
 0xa4e   :  { %3580 = vmatpush1.msra.mxu0 %v6801_v24  ;;  %3651 = vmatpush1.msra.mxu1 %v6803_v16 }
 0xa4f   :  { %3581 = vmatprep.subr.mxu0 %v6807_v6  ;;  %3652 = vmatprep.subr.mxu1 %v6809_v25 }
 0xa50   :  { %3582 = vmatpush1.msra.mxu0 %v6813_v44  ;;  %3653 = vmatpush1.msra.mxu1 %v6815_v9 }
 0xa51   :  { %3583 = vmatprep.subr.mxu0 %v6819_v14  ;;  %3654 = vmatprep.subr.mxu1 %v6821_v22 }
 0xa52   :  { %3584 = vmatpush1.msra.mxu0 %v6825_v58  ;;  %3655 = vmatpush1.msra.mxu1 %v6827_v15 }
 0xa53   :  { %3585 = vmatprep.subr.mxu0 %v6831_v23  ;;  %3656 = vmatprep.subr.mxu1 %v6833_v7 }
 0xa54   :  { %3586 = vmatpush1.msra.mxu0 %v6837_v19  ;;  %3657 = vmatpush1.msra.mxu1 %v6839_v8 }
 0xa55   :  { %3587 = vmatprep.subr.mxu0 %v6843_v12  ;;  %3658 = vmatprep.subr.mxu1 %v6845_v5 }
 0xa56   :  { %3588 = vmatpush1.msra.mxu0 %v6849_v10  ;;  %3659 = vmatpush1.msra.mxu1 %v6851_v53  ;;  %v6885_v53 = vld [vmem:[#allocation12 + $0x110] sm:$0xff] }
 0xa57   :  { %3589 = vmatprep.subr.mxu0 %v6855_v1  ;;  %3660 = vmatprep.subr.mxu1 %v6857_v38  ;;  %v6875_v1 = vld [vmem:[#allocation12 + $0x130] sm:$0xff]  ;;  %v6877_v38 = vld [vmem:[#allocation12 + $0x108] sm:$0xff] }
 0xa58   :  { %3590 = vmatpush1.msra.mxu0 %v6861_v20  ;;  %3661 = vmatpush1.msra.mxu1 %v6863_v2  ;;  %v6881_v20 = vld [vmem:[#allocation12 + $0x118] sm:$0xff]  ;;  %v6883_v2 = vld [vmem:[#allocation12 + $0x100] sm:$0xff] }
 0xa59   :  { %3591 = vmatprep.subr.mxu0 %v6867_v59  ;;  %3662 = vmatprep.subr.mxu1 %v6869_v11 }
 0xa5a   :  { %3592 = vmatpush1.msra.mxu0 %v6873_v27  ;;  %3663 = vmatpush1.msra.mxu1 %v6875_v1 }
 0xa5b   :  { %3593 = vmatprep.subr.mxu0 %v6877_v38  ;;  %3664 = vmatprep.subr.mxu1 %v6881_v20 }
 0xa5c   :  { %3594 = vmatpush1.msra.mxu0 %v6883_v2  ;;  %3665 = vmatpush1.msra.mxu1 %v6885_v53 }
 0xa5d   :  { %3595 = vmatprep.subr.mxu0 %v6462_v48  ;;  %3666 = vmatprep.subr.mxu1 %v6464_v54  ;;  %v7800_v48 = vld [vmem:[#allocation31_spill] sm:$0xff] }
 0xa5e   :  { %3596 = vmatpush1.msra.mxu0 %v6468_v49  ;;  %3667 = vmatpush1.msra.mxu1 %v6470_v51  ;;  %v2602_v54 = vadd.f32 %v7800_v48, %v6686_v21  ;;  %v7801_v51 = vld [vmem:[#allocation33_spill] sm:$0xff] }
 0xa5f   :  { %3597 = vmatprep.subr.mxu0 %v6474_v55  ;;  %3668 = vmatprep.subr.mxu1 %v6476_v29  ;;  %v2604_v55 = vadd.f32 %v7801_v51, %v6694_v62  ;;  %v7806_v51 = vld [vmem:[#allocation47_spill] sm:$0xff] }
 0xa60   :  { %3598 = vmatpush1.msra.mxu0 %v6480_v0  ;;  %3669 = vmatpush1.msra.mxu1 %v6482_v57 }
 0xa61   :  { %3599 = vmatprep.subr.mxu0 %v6486_v56  ;;  %3670 = vmatprep.subr.mxu1 %v6488_v60 }
 0xa62   :  { %3600 = vmatpush1.msra.mxu0 %v6492_v3  ;;  %3671 = vmatpush1.msra.mxu1 %v6494_v4 }
 0xa63   :  { %3601 = vmatprep.subr.mxu0 %v7767_v63  ;;  %3672 = vmatprep.subr.mxu1 %v7768_v26  ;;  %v7802_v63 = vld [vmem:[#allocation34_spill] sm:$0xff] }
 0xa64   :  { %3602 = vmatpush1.msra.mxu0 %v7769_v17  ;;  %3673 = vmatpush1.msra.mxu1 %v7770_v28  ;;  %v2717_v26 = vadd.f32 %v7802_v63, %v7790_v18  ;;  %v7803_v28 = vld [vmem:[#allocation32_spill] sm:$0xff]  ;;  %v6981_v63 = vld [vmem:[#allocation12 + $0xd8] sm:$0xff] }
 0xa65   :  { %3603 = vmatprep.subr.mxu0 %v7771_v30  ;;  %3674 = vmatprep.subr.mxu1 %v7772_v31  ;;  %v2715_v30 = vadd.f32 %v7803_v28, %v6711_v13  ;;  %v6989_v28 = vld [vmem:[#allocation12 + $0xa8] sm:$0xff] }
 0xa66   :  { %3604 = vmatpush1.msra.mxu0 %v7773_v32  ;;  %3675 = vmatpush1.msra.mxu1 %v7774_v33 }
 0xa67   :  { %3605 = vmatprep.subr.mxu0 %v7775_v34  ;;  %3676 = vmatprep.subr.mxu1 %v7776_v35 }
 0xa68   :  { %3606 = vmatpush1.msra.mxu0 %v7777_v36  ;;  %3677 = vmatpush1.msra.mxu1 %v7778_v37 }
 0xa69   :  { %3607 = vmatprep.subr.mxu0 %v7779_v39  ;;  %3678 = vmatprep.subr.mxu1 %v7780_v40 }
 0xa6a   :  { %3608 = vmatpush1.msra.mxu0 %v7781_v41  ;;  %3679 = vmatpush1.msra.mxu1 %v7782_v42 }
 0xa6b   :  { %3609 = vmatprep.subr.mxu0 %v7783_v43  ;;  %3680 = vmatprep.subr.mxu1 %v7784_v46 }
 0xa6c   :  { %3610 = vmatpush1.msra.mxu0 %v7785_v47  ;;  %3681 = vmatpush1.msra.mxu1 %v7787_v45 }
 0xa6d   :  { %3821 = vmatprep.subr.mxu0 %v6795_v61  ;;  %3892 = vmatprep.subr.mxu1 %v6797_v52 }
 0xb0c   :  { %v3403_v49 = vpop.f32.mrf.mxu0  ;;  %v3474_v60 = vpop.f32.mrf.mxu1 }
 0xb0d   :  { %v3479_v29 = vadd.f32 %v3403_v49, %v2602_v54  ;;  %v3481_v31 = vadd.f32 %v3474_v60, %v2715_v30  ;;  %v7805_v49 = vld [vmem:[#allocation44_spill] sm:$0xff]  ;;  %v6973_v60 = vld [vmem:[#allocation12 + $0xe0] sm:$0xff]  ;;  %v6993_v30 = vld [vmem:[#allocation12 + $0xb8] sm:$0xff] }
 0xb0e   :  { %v3405_v0 = vpop.f32.mrf.mxu0  ;;  %v3476_v4 = vpop.f32.mrf.mxu1 }
 0xb0f   :  { %v4858_v57 = vmul.f32 -1.442695, %v3479_v29  ;;  %v3480_v56 = vadd.f32 %v3405_v0, %v2604_v55  ;;  %v3482_v17 = vadd.f32 %v3476_v4, %v2717_v26  ;;  %v7807_v55 = vld [vmem:[#allocation49_spill] sm:$0xff]  ;;  %v7808_v29 = vld [vmem:[#allocation50_spill] sm:$0xff]  ;;  %v7809_v0 = vmov 0.0   ;;  %v6979_v4 = vld [vmem:[#allocation12 + $0xc8] sm:$0xff] }
 0xb10   :  { %v6985_v26 = vld [vmem:[#allocation12 + $0xc0] sm:$0xff] }
 0xb11   :  { %5100 = vpow2.f32 %v4858_v57  ;;  %v4859_v3 = vmul.f32 -1.442695, %v3480_v56  ;;  %v4860_v32 = vmul.f32 -1.442695, %v3482_v17  ;;  %v6969_v57 = vld [vmem:[#allocation12 + $0xe8] sm:$0xff]  ;;  %v6971_v56 = vld [vmem:[#allocation12 + $0xf8] sm:$0xff] }
 0xb12   :  { %v6987_v17 = vld [vmem:[#allocation12 + $0xd0] sm:$0xff] }
 0xb13   :  { %5102 = vpow2.f32 %v4859_v3  ;;  %v6977_v3 = vld [vmem:[#allocation12 + $0xf0] sm:$0xff] }
 0xb14   :  { %5104 = vtanh.f32 %v3481_v31  ;;  %v6995_v31 = vld [vmem:[#allocation12 + $0xa0] sm:$0xff] }
 0xb15   :  { %5106 = vpow2.f32 %v4860_v32  ;;  %v6997_v32 = vld [vmem:[#allocation12 + $0xb0] sm:$0xff] }
 0xb16   :  { %7810 = vst [vmem:[#allocation48_spill] sm:$0xff] %v6997_v32 }
 0xb1e   :  { %v5101_v33 = vpop.eup %5100 }
 0xb1f   :  { %v3486_v34 = vadd.f32 1.0, %v5101_v33  ;;  %v7001_v33 = vld [vmem:[#allocation12 + $0x88] sm:$0xff] }
 0xb20   :  { %v5103_v35 = vpop.eup %5102  ;;  %7811 = vst [vmem:[#allocation19_spill] sm:$0xff] %v7001_v33 }
 0xb21   :  { %5108 = vrcp.f32 %v3486_v34  ;;  %v3492_v36 = vadd.f32 1.0, %v5103_v35  ;;  %v5105_v37 = vpop.eup %5104  ;;  %v7003_v34 = vld [vmem:[#allocation12 + $0x98] sm:$0xff]  ;;  %v7007_v35 = vld [vmem:[#allocation12 + $0x80] sm:$0xff] }
 0xb22   :  { %v5107_v39 = vpop.eup %5106  ;;  %7812 = vst [vmem:[#allocation20_spill] sm:$0xff] %v7003_v34  ;;  %7813 = vst [vmem:[#allocation51_spill] sm:$0xff] %v7007_v35 }
 0xb23   :  { %5110 = vrcp.f32 %v3492_v36  ;;  %v3499_v43 = vadd.f32 1.0, %v5107_v39  ;;  %v7009_v36 = vld [vmem:[#allocation12 + $0x90] sm:$0xff]  ;;  %v7015_v39 = vld [vmem:[#allocation12 + $0x78] sm:$0xff] }
 0xb24   :  { %7814 = vst [vmem:[#allocation53_spill] sm:$0xff] %v7009_v36  ;;  %7816 = vst [vmem:[#allocation52_spill] sm:$0xff] %v7015_v39 }
 0xb25   :  { %5112 = vrcp.f32 %v3499_v43  ;;  %v7027_v43 = vld [vmem:[#allocation12 + $0x58] sm:$0xff] }
 0xb26   :  { %7820 = vst [vmem:[#allocation24_spill] sm:$0xff] %v7027_v43 }
 0xb2e   :  { %v5109_v40 = vpop.eup %5108 }
 0xb2f   :  { %v3503_v41 = vmul.f32 %v5109_v40, %v5105_v37  ;;  %v7013_v37 = vld [vmem:[#allocation12 + $0x68] sm:$0xff]  ;;  %v7019_v40 = vld [vmem:[#allocation12 + $0x60] sm:$0xff] }
 0xb30   :  { %v5111_v42 = vpop.eup %5110  ;;  %7815 = vst [vmem:[#allocation54_spill] sm:$0xff] %v7013_v37  ;;  %7817 = vst [vmem:[#allocation21_spill] sm:$0xff] %v7019_v40 }
 0xb31   :  { %v3502_v46 = vmul.f32 %v5111_v42, %v6790_v50  ;;  %v7804_v50 = vld [vmem:[#allocation46_spill] sm:$0xff]  ;;  %v7025_v42 = vld [vmem:[#allocation12 + $0x48] sm:$0xff] }
 0xb32   :  { %v5113_v45 = vpop.eup %5112  ;;  %7819 = vst [vmem:[#allocation23_spill] sm:$0xff] %v7025_v42 }
 0xb33   :  { %v6934_v47 = vadd.f32 %v3503_v41, %v3502_v46  ;;  %v7021_v41 = vld [vmem:[#allocation12 + $0x70] sm:$0xff]  ;;  %v7031_v46 = vld [vmem:[#allocation12 + $0x40] sm:$0xff] }
 0xb34   :  { %7818 = vst [vmem:[#allocation22_spill] sm:$0xff] %v7021_v41  ;;  %7821 = vst [vmem:[#allocation25_spill] sm:$0xff] %v7031_v46 }
 0xb35   :  { %5114 = vtanh.f32 %v6934_v47 }
 0xb42   :  { %v5115_v48 = vpop.eup %5114 }
 0xb43   :  { %v3506_v54 = vmul.f32 %v5115_v48, %v5113_v45  ;;  %v7033_v45 = vld [vmem:[#allocation12 + $0x50] sm:$0xff]  ;;  %v7037_v48 = vld [vmem:[#allocation12 + $0x28] sm:$0xff] }
 0xb44   :  { %7822 = vst [vmem:[#allocation26_spill] sm:$0xff] %v7033_v45  ;;  %7823 = vst [vmem:[#allocation27_spill] sm:$0xff] %v7037_v48 }
 0xb45   :  { %3644 = vmatmul.mubr.f32.vlgmr.msra.gmra.mxu0 %v3506_v54  ;;  %3715 = vmatmul.mubr.f32.vlgmr.msra.gmra.mxu1 %v3506_v54  ;;  %v7039_v54 = vld [vmem:[#allocation12 + $0x38] sm:$0xff] }
 0xb46   :  { %3822 = vmatpush1.msra.mxu0 %v6801_v24  ;;  %3893 = vmatpush1.msra.mxu1 %v6803_v16  ;;  %7824 = vst [vmem:[#allocation29_spill] sm:$0xff] %v7039_v54 }
 0xb47   :  { %3823 = vmatprep.subr.mxu0 %v6807_v6  ;;  %3894 = vmatprep.subr.mxu1 %v6809_v25 }
 0xb48   :  { %3824 = vmatpush1.msra.mxu0 %v6813_v44  ;;  %3895 = vmatpush1.msra.mxu1 %v6815_v9 }
 0xb49   :  { %3825 = vmatprep.subr.mxu0 %v6819_v14  ;;  %3896 = vmatprep.subr.mxu1 %v6821_v22 }
 0xb4a   :  { %3826 = vmatpush1.msra.mxu0 %v6825_v58  ;;  %3897 = vmatpush1.msra.mxu1 %v6827_v15 }
 0xb4b   :  { %3827 = vmatprep.subr.mxu0 %v6831_v23  ;;  %3898 = vmatprep.subr.mxu1 %v6833_v7 }
 0xb4c   :  { %3828 = vmatpush1.msra.mxu0 %v6837_v19  ;;  %3899 = vmatpush1.msra.mxu1 %v6839_v8 }
 0xb4d   :  { %3829 = vmatprep.subr.mxu0 %v6843_v12  ;;  %3900 = vmatprep.subr.mxu1 %v6845_v5 }
 0xb4e   :  { %3830 = vmatpush1.msra.mxu0 %v6849_v10  ;;  %3901 = vmatpush1.msra.mxu1 %v7804_v50 }
 0xb4f   :  { %3831 = vmatprep.subr.mxu0 %v7805_v49  ;;  %3902 = vmatprep.subr.mxu1 %v7806_v51 }
 0xb50   :  { %3832 = vmatpush1.msra.mxu0 %v7807_v55  ;;  %3903 = vmatpush1.msra.mxu1 %v7808_v29 }
 0xb51   :  { %3833 = vmatprep.subr.mxu0 %v6867_v59  ;;  %3904 = vmatprep.subr.mxu1 %v6869_v11 }
 0xb52   :  { %3834 = vmatpush1.msra.mxu0 %v6873_v27  ;;  %3905 = vmatpush1.msra.mxu1 %v6875_v1 }
 0xb53   :  { %3835 = vmatprep.subr.mxu0 %v6877_v38  ;;  %3906 = vmatprep.subr.mxu1 %v6881_v20 }
 0xb54   :  { %3836 = vmatpush1.msra.mxu0 %v6883_v2  ;;  %3907 = vmatpush1.msra.mxu1 %v6885_v53 }
 0xb55   :  { %3885 = vmatprep.mubr.f32.mxu0 %v7809_v0  ;;  %3956 = vmatprep.mubr.f32.mxu1 %v7809_v0  ;;  %v7043_v0 = vld [vmem:[#allocation12 + $0x20] sm:$0xff] }
 0xb56   :  { %3837 = vmatprep.subr.mxu0 %v6969_v57  ;;  %3908 = vmatprep.subr.mxu1 %v6971_v56  ;;  %7825 = vst [vmem:[#allocation39_spill] sm:$0xff] %v7043_v0 }
 0xb57   :  { %3838 = vmatpush1.msra.mxu0 %v6973_v60  ;;  %3909 = vmatpush1.msra.mxu1 %v6977_v3 }
 0xb58   :  { %3839 = vmatprep.subr.mxu0 %v6979_v4  ;;  %3910 = vmatprep.subr.mxu1 %v6981_v63 }
 0xb59   :  { %3840 = vmatpush1.msra.mxu0 %v6985_v26  ;;  %3911 = vmatpush1.msra.mxu1 %v6987_v17 }
 0xb5a   :  { %3841 = vmatprep.subr.mxu0 %v6989_v28  ;;  %3912 = vmatprep.subr.mxu1 %v6993_v30 }
 0xb5b   :  { %3842 = vmatpush1.msra.mxu0 %v6995_v31  ;;  %3913 = vmatpush1.msra.mxu1 %v6997_v32 }
 0xb5c   :  { %3843 = vmatprep.subr.mxu0 %v7001_v33  ;;  %3914 = vmatprep.subr.mxu1 %v7003_v34  ;;  %v7834_v34 = vld [vmem:[#allocation36_spill] sm:$0xff] }
 0xb5d   :  { %3844 = vmatpush1.msra.mxu0 %v7007_v35  ;;  %3915 = vmatpush1.msra.mxu1 %v7009_v36 }
 0xb5e   :  { %3845 = vmatprep.subr.mxu0 %v7013_v37  ;;  %3916 = vmatprep.subr.mxu1 %v7015_v39  ;;  %v7045_v37 = vld [vmem:[#allocation12 + $0x30] sm:$0xff]  ;;  %v7049_v39 = vld [vmem:[#allocation12 + $0x8] sm:$0xff] }
 0xb5f   :  { %3846 = vmatpush1.msra.mxu0 %v7019_v40  ;;  %3917 = vmatpush1.msra.mxu1 %v7021_v41  ;;  %7826 = vst [vmem:[#allocation30_spill] sm:$0xff] %v7045_v37  ;;  %7827 = vst [vmem:[#allocation28_spill] sm:$0xff] %v7049_v39  ;;  %v7051_v40 = vld [vmem:[#allocation12 + $0x18] sm:$0xff]  ;;  %v7055_v41 = vld [vmem:[#allocation12] sm:$0xff] }
 0xb60   :  { %3847 = vmatprep.subr.mxu0 %v7025_v42  ;;  %3918 = vmatprep.subr.mxu1 %v7027_v43  ;;  %7828 = vst [vmem:[#allocation31_spill] sm:$0xff] %v7051_v40  ;;  %7829 = vst [vmem:[#allocation33_spill] sm:$0xff] %v7055_v41  ;;  %v7057_v42 = vld [vmem:[#allocation12 + $0x10] sm:$0xff] }
 0xb61   :  { %3848 = vmatpush1.msra.mxu0 %v7031_v46  ;;  %3919 = vmatpush1.msra.mxu1 %v7033_v45  ;;  %7830 = vst [vmem:[#allocation34_spill] sm:$0xff] %v7057_v42 }
 0xb62   :  { %3849 = vmatprep.subr.mxu0 %v7037_v48  ;;  %3920 = vmatprep.subr.mxu1 %v7039_v54  ;;  %v7831_v54 = vld [vmem:[#allocation35_spill] sm:$0xff] }
 0xb63   :  { %3850 = vmatpush1.msra.mxu0 %v7043_v0  ;;  %3921 = vmatpush1.msra.mxu1 %v7045_v37  ;;  %v2608_v48 = vadd.f32 %v7831_v54, %v6686_v21  ;;  %v7832_v0 = vld [vmem:[#allocation37_spill] sm:$0xff]  ;;  %v2721_v54 = vadd.f32 %v7834_v34, %v6711_v13  ;;  %v7837_v34 = vld [vmem:[#allocation20_spill] sm:$0xff] }
 0xb64   :  { %3851 = vmatprep.subr.mxu0 %v7049_v39  ;;  %3922 = vmatprep.subr.mxu1 %v7051_v40  ;;  %v2610_v46 = vadd.f32 %v7832_v0, %v6694_v62 }
 0xb65   :  { %3852 = vmatpush1.msra.mxu0 %v7055_v41  ;;  %3923 = vmatpush1.msra.mxu1 %v7057_v42 }
 0xb66   :  { %4063 = vmatprep.subr.mxu0 %v6795_v61  ;;  %4134 = vmatprep.subr.mxu1 %v6797_v52  ;;  %v7833_v61 = vld [vmem:[#allocation55_spill] sm:$0xff] }
 0xb67   :  { %v2723_v35 = vadd.f32 %v7833_v61, %v7790_v18 }
 0xc05   :  { %v3645_v45 = vpop.f32.mrf.mxu0  ;;  %v3716_v40 = vpop.f32.mrf.mxu1 }
 0xc06   :  { %v3721_v37 = vadd.f32 %v3645_v45, %v2608_v48  ;;  %v3723_v21 = vadd.f32 %v3716_v40, %v2721_v54  ;;  %v7838_v40 = vld [vmem:[#allocation51_spill] sm:$0xff]  ;;  %v7839_v48 = vld [vmem:[#allocation53_spill] sm:$0xff]  ;;  %v7840_v54 = vld [vmem:[#allocation54_spill] sm:$0xff] }
 0xc07   :  { %v3647_v43 = vpop.f32.mrf.mxu0  ;;  %v3718_v42 = vpop.f32.mrf.mxu1 }
 0xc08   :  { %v4861_v39 = vmul.f32 -1.442695, %v3721_v37  ;;  %v3722_v36 = vadd.f32 %v3647_v43, %v2610_v46  ;;  %v3724_v52 = vadd.f32 %v3718_v42, %v2723_v35 }
 0xc0a   :  { %5116 = vpow2.f32 %v4861_v39  ;;  %v4862_v41 = vmul.f32 -1.442695, %v3722_v36  ;;  %v4863_v33 = vmul.f32 -1.442695, %v3724_v52 }
 0xc0c   :  { %5118 = vpow2.f32 %v4862_v41 }
 0xc0d   :  { %5120 = vtanh.f32 %v3723_v21 }
 0xc0e   :  { %5122 = vpow2.f32 %v4863_v33  ;;  %v7836_v33 = vld [vmem:[#allocation19_spill] sm:$0xff] }
 0xc17   :  { %v5117_v32 = vpop.eup %5116 }
 0xc18   :  { %v3728_v0 = vadd.f32 1.0, %v5117_v32 }
 0xc19   :  { %v5119_v45 = vpop.eup %5118 }
 0xc1a   :  { %5124 = vrcp.f32 %v3728_v0  ;;  %v3734_v37 = vadd.f32 1.0, %v5119_v45  ;;  %v5121_v36 = vpop.eup %5120  ;;  %v7841_v0 = vld [vmem:[#allocation52_spill] sm:$0xff]  ;;  %v7842_v45 = vld [vmem:[#allocation21_spill] sm:$0xff] }
 0xc1b   :  { %v5123_v39 = vpop.eup %5122 }
 0xc1c   :  { %5126 = vrcp.f32 %v3734_v37  ;;  %v3741_v61 = vadd.f32 1.0, %v5123_v39  ;;  %v7843_v37 = vld [vmem:[#allocation22_spill] sm:$0xff]  ;;  %v7845_v39 = vld [vmem:[#allocation24_spill] sm:$0xff] }
 0xc1e   :  { %5128 = vrcp.f32 %v3741_v61  ;;  %v7849_v61 = vld [vmem:[#allocation29_spill] sm:$0xff] }
 0xc27   :  { %v5125_v41 = vpop.eup %5124 }
 0xc28   :  { %v3745_v43 = vmul.f32 %v5125_v41, %v5121_v36  ;;  %v7844_v36 = vld [vmem:[#allocation23_spill] sm:$0xff]  ;;  %v7846_v41 = vld [vmem:[#allocation25_spill] sm:$0xff] }
 0xc29   :  { %v5127_v46 = vpop.eup %5126 }
 0xc2a   :  { %v3744_v35 = vmul.f32 %v5127_v46, %v6934_v47  ;;  %v7835_v47 = vld [vmem:[#allocation48_spill] sm:$0xff]  ;;  %v7848_v46 = vld [vmem:[#allocation27_spill] sm:$0xff] }
 0xc2b   :  { %v5129_v52 = vpop.eup %5128 }
 0xc2c   :  { %v7076_v42 = vadd.f32 %v3745_v43, %v3744_v35  ;;  %v7847_v43 = vld [vmem:[#allocation26_spill] sm:$0xff]  ;;  %v7850_v35 = vld [vmem:[#allocation39_spill] sm:$0xff] }
 0xc2e   :  { %5130 = vtanh.f32 %v7076_v42 }
 0xc3b   :  { %v5131_v21 = vpop.eup %5130 }
 0xc3c   :  { %v3748_v32 = vmul.f32 %v5131_v21, %v5129_v52  ;;  %v7851_v52 = vld [vmem:[#allocation30_spill] sm:$0xff]  ;;  %v7852_v21 = vld [vmem:[#allocation28_spill] sm:$0xff] }
 0xc3e   :  { %3886 = vmatmul.mubr.f32.vlgmr.msra.gmra.mxu0 %v3748_v32  ;;  %3957 = vmatmul.mubr.f32.vlgmr.msra.gmra.mxu1 %v3748_v32  ;;  %v7853_v32 = vld [vmem:[#allocation31_spill] sm:$0xff] }
 0xc3f   :  { %4064 = vmatpush1.msra.mxu0 %v6801_v24  ;;  %4135 = vmatpush1.msra.mxu1 %v6803_v16 }
 0xc40   :  { %4065 = vmatprep.subr.mxu0 %v6807_v6  ;;  %4136 = vmatprep.subr.mxu1 %v6809_v25 }
 0xc41   :  { %4066 = vmatpush1.msra.mxu0 %v6813_v44  ;;  %4137 = vmatpush1.msra.mxu1 %v6815_v9 }
 0xc42   :  { %4067 = vmatprep.subr.mxu0 %v6819_v14  ;;  %4138 = vmatprep.subr.mxu1 %v6821_v22 }
 0xc43   :  { %4068 = vmatpush1.msra.mxu0 %v6825_v58  ;;  %4139 = vmatpush1.msra.mxu1 %v6827_v15 }
 0xc44   :  { %4069 = vmatprep.subr.mxu0 %v6831_v23  ;;  %4140 = vmatprep.subr.mxu1 %v6833_v7 }
 0xc45   :  { %4070 = vmatpush1.msra.mxu0 %v6837_v19  ;;  %4141 = vmatpush1.msra.mxu1 %v6839_v8 }
 0xc46   :  { %4071 = vmatprep.subr.mxu0 %v6843_v12  ;;  %4142 = vmatprep.subr.mxu1 %v6845_v5 }
 0xc47   :  { %4072 = vmatpush1.msra.mxu0 %v6849_v10  ;;  %4143 = vmatpush1.msra.mxu1 %v7804_v50 }
 0xc48   :  { %4073 = vmatprep.subr.mxu0 %v7805_v49  ;;  %4144 = vmatprep.subr.mxu1 %v7806_v51 }
 0xc49   :  { %4074 = vmatpush1.msra.mxu0 %v7807_v55  ;;  %4145 = vmatpush1.msra.mxu1 %v7808_v29 }
 0xc4a   :  { %4075 = vmatprep.subr.mxu0 %v6867_v59  ;;  %4146 = vmatprep.subr.mxu1 %v6869_v11 }
 0xc4b   :  { %4076 = vmatpush1.msra.mxu0 %v6873_v27  ;;  %4147 = vmatpush1.msra.mxu1 %v6875_v1 }
 0xc4c   :  { %4077 = vmatprep.subr.mxu0 %v6877_v38  ;;  %4148 = vmatprep.subr.mxu1 %v6881_v20 }
 0xc4d   :  { %4078 = vmatpush1.msra.mxu0 %v6883_v2  ;;  %4149 = vmatpush1.msra.mxu1 %v6885_v53 }
 0xc4e   :  { %4079 = vmatprep.subr.mxu0 %v6969_v57  ;;  %4150 = vmatprep.subr.mxu1 %v6971_v56 }
 0xc4f   :  { %4080 = vmatpush1.msra.mxu0 %v6973_v60  ;;  %4151 = vmatpush1.msra.mxu1 %v6977_v3 }
 0xc50   :  { %4081 = vmatprep.subr.mxu0 %v6979_v4  ;;  %4152 = vmatprep.subr.mxu1 %v6981_v63 }
 0xc51   :  { %4082 = vmatpush1.msra.mxu0 %v6985_v26  ;;  %4153 = vmatpush1.msra.mxu1 %v6987_v17 }
 0xc52   :  { %4083 = vmatprep.subr.mxu0 %v6989_v28  ;;  %4154 = vmatprep.subr.mxu1 %v6993_v30 }
 0xc53   :  { %4084 = vmatpush1.msra.mxu0 %v6995_v31  ;;  %4155 = vmatpush1.msra.mxu1 %v7835_v47 }
 0xc54   :  { %4085 = vmatprep.subr.mxu0 %v7836_v33  ;;  %4156 = vmatprep.subr.mxu1 %v7837_v34  ;;  %v7863_v34 = vld [vmem:[#allocation58_spill] sm:$0xff] }
 0xc55   :  { %4086 = vmatpush1.msra.mxu0 %v7838_v40  ;;  %4157 = vmatpush1.msra.mxu1 %v7839_v48 }
 0xc56   :  { %4087 = vmatprep.subr.mxu0 %v7840_v54  ;;  %4158 = vmatprep.subr.mxu1 %v7841_v0 }
 0xc57   :  { %4088 = vmatpush1.msra.mxu0 %v7842_v45  ;;  %4159 = vmatpush1.msra.mxu1 %v7843_v37  ;;  %v7854_v37 = vld [vmem:[#allocation33_spill] sm:$0xff] }
 0xc58   :  { %4089 = vmatprep.subr.mxu0 %v7844_v36  ;;  %4160 = vmatprep.subr.mxu1 %v7845_v39  ;;  %v7855_v36 = vmov 0.0   ;;  %v7856_v39 = vld [vmem:[#allocation34_spill] sm:$0xff] }
 0xc59   :  { %4090 = vmatpush1.msra.mxu0 %v7846_v41  ;;  %4161 = vmatpush1.msra.mxu1 %v7847_v43  ;;  %v7857_v43 = vld [vmem:[#allocation43_spill] sm:$0xff] }
 0xc5a   :  { %4091 = vmatprep.subr.mxu0 %v7848_v46  ;;  %4162 = vmatprep.subr.mxu1 %v7849_v61  ;;  %v7858_v46 = vld [vmem:[#allocation45_spill] sm:$0xff]  ;;  %v7859_v61 = vld [vmem:[#allocation63_spill] sm:$0xff] }
 0xc5b   :  { %4092 = vmatpush1.msra.mxu0 %v7850_v35  ;;  %4163 = vmatpush1.msra.mxu1 %v7851_v52  ;;  %v7860_v35 = vld [vmem:[#allocation57_spill] sm:$0xff] }
 0xc5c   :  { %4093 = vmatprep.subr.mxu0 %v7852_v21  ;;  %4164 = vmatprep.subr.mxu1 %v7853_v32  ;;  %v2614_v41 = vadd.f32 %v7860_v35, %v7859_v61  ;;  %v7861_v21 = vld [vmem:[#allocation56_spill] sm:$0xff]  ;;  %v2727_v35 = vadd.f32 %v7863_v34, %v6711_v13 }
 0xc5d   :  { %4094 = vmatpush1.msra.mxu0 %v7854_v37  ;;  %4127 = vmatprep.mubr.f32.mxu0 %v7855_v36  ;;  %v2616_v45 = vadd.f32 %v7861_v21, %v6694_v62 }
 0xc5e   :  { %4165 = vmatpush1.msra.mxu1 %v7856_v39  ;;  %4198 = vmatprep.mubr.f32.mxu1 %v7855_v36 }
 0xc5f   :  { %4305 = vmatprep.subr.mxu0 %v7857_v43  ;;  %4376 = vmatprep.subr.mxu1 %v7858_v46  ;;  %v7862_v43 = vld [vmem:[#allocation59_spill] sm:$0xff] }
 0xc60   :  { %v2729_v40 = vadd.f32 %v7862_v43, %v7790_v18 }
 0xcfe   :  { %v3887_v52 = vpop.f32.mrf.mxu0  ;;  %v3958_v48 = vpop.f32.mrf.mxu1 }
 0xcff   :  { %v3963_v32 = vadd.f32 %v3887_v52, %v2614_v41  ;;  %v3965_v61 = vadd.f32 %v3958_v48, %v2727_v35  ;;  %v7889_v35 = vld [vmem:[#allocation67_spill] sm:$0xff] }
 0xd00   :  { %v3889_v0 = vpop.f32.mrf.mxu0  ;;  %v3960_v36 = vpop.f32.mrf.mxu1 }
 0xd01   :  { %v4864_v37 = vmul.f32 -1.442695, %v3963_v32  ;;  %v3964_v54 = vadd.f32 %v3889_v0, %v2616_v45  ;;  %v3966_v46 = vadd.f32 %v3960_v36, %v2729_v40 }
 0xd03   :  { %5132 = vpow2.f32 %v4864_v37  ;;  %v4865_v39 = vmul.f32 -1.442695, %v3964_v54  ;;  %v4866_v33 = vmul.f32 -1.442695, %v3966_v46 }
 0xd05   :  { %5134 = vpow2.f32 %v4865_v39 }
 0xd06   :  { %5136 = vtanh.f32 %v3965_v61 }
 0xd07   :  { %5138 = vpow2.f32 %v4866_v33 }
 0xd10   :  { %v5133_v47 = vpop.eup %5132 }
 0xd11   :  { %v3970_v21 = vadd.f32 1.0, %v5133_v47 }
 0xd12   :  { %v5135_v41 = vpop.eup %5134 }
 0xd13   :  { %5140 = vrcp.f32 %v3970_v21  ;;  %v3976_v0 = vadd.f32 1.0, %v5135_v41  ;;  %v5137_v54 = vpop.eup %5136  ;;  %v2735_v21 = vadd.f32 %v7889_v35, %v7790_v18  ;;  %v4542_v35 = vld [vmem:[#allocation12 + $0x1d8] sm:$0xff] }
 0xd14   :  { %v5139_v45 = vpop.eup %5138 }
 0xd15   :  { %5142 = vrcp.f32 %v3976_v0  ;;  %v3983_v32 = vadd.f32 1.0, %v5139_v45  ;;  %v7890_v0 = vld [vmem:[#allocation62_spill] sm:$0xff] }
 0xd17   :  { %5144 = vrcp.f32 %v3983_v32 }
 0xd20   :  { %v5141_v37 = vpop.eup %5140 }
 0xd21   :  { %v3987_v39 = vmul.f32 %v5141_v37, %v5137_v54  ;;  %v2733_v54 = vadd.f32 %v7890_v0, %v6711_v13  ;;  %v4536_v0 = vld [vmem:[#allocation12 + $0x1a8] sm:$0xff] }
 0xd22   :  { %v5143_v52 = vpop.eup %5142 }
 0xd23   :  { %v3986_v40 = vmul.f32 %v5143_v52, %v7076_v42 }
 0xd24   :  { %v5145_v47 = vpop.eup %5144 }
 0xd25   :  { %v7154_v36 = vadd.f32 %v3987_v39, %v3986_v40 }
 0xd27   :  { %5146 = vtanh.f32 %v7154_v36 }
 0xd34   :  { %v5147_v34 = vpop.eup %5146 }
 0xd35   :  { %v3990_v48 = vmul.f32 %v5147_v34, %v5145_v47 }
 0xd37   :  { %4128 = vmatmul.mubr.f32.vlgmr.msra.gmra.mxu0 %v3990_v48  ;;  %4199 = vmatmul.mubr.f32.vlgmr.msra.gmra.mxu1 %v3990_v48 }
 0xd38   :  { %4306 = vmatpush1.msra.mxu0 %v6801_v24  ;;  %4377 = vmatpush1.msra.mxu1 %v6803_v16  ;;  %v7865_v24 = vld [vmem:[#allocation19_spill] sm:$0xff]  ;;  %v7866_v16 = vld [vmem:[#allocation20_spill] sm:$0xff] }
 0xd39   :  { %4307 = vmatprep.subr.mxu0 %v6807_v6  ;;  %4378 = vmatprep.subr.mxu1 %v6809_v25  ;;  %v7867_v6 = vld [vmem:[#allocation51_spill] sm:$0xff]  ;;  %v7868_v25 = vld [vmem:[#allocation53_spill] sm:$0xff] }
 0xd3a   :  { %4308 = vmatpush1.msra.mxu0 %v6813_v44  ;;  %4379 = vmatpush1.msra.mxu1 %v6815_v9  ;;  %v7869_v44 = vld [vmem:[#allocation54_spill] sm:$0xff]  ;;  %v7870_v9 = vld [vmem:[#allocation52_spill] sm:$0xff] }
 0xd3b   :  { %4309 = vmatprep.subr.mxu0 %v6819_v14  ;;  %4380 = vmatprep.subr.mxu1 %v6821_v22  ;;  %v7871_v14 = vld [vmem:[#allocation21_spill] sm:$0xff]  ;;  %v7872_v22 = vld [vmem:[#allocation22_spill] sm:$0xff] }
 0xd3c   :  { %4310 = vmatpush1.msra.mxu0 %v6825_v58  ;;  %4381 = vmatpush1.msra.mxu1 %v6827_v15  ;;  %v7873_v58 = vld [vmem:[#allocation23_spill] sm:$0xff]  ;;  %v7874_v15 = vld [vmem:[#allocation24_spill] sm:$0xff] }
 0xd3d   :  { %4311 = vmatprep.subr.mxu0 %v6831_v23  ;;  %4382 = vmatprep.subr.mxu1 %v6833_v7  ;;  %v7875_v23 = vld [vmem:[#allocation25_spill] sm:$0xff]  ;;  %v7876_v7 = vld [vmem:[#allocation26_spill] sm:$0xff] }
 0xd3e   :  { %4312 = vmatpush1.msra.mxu0 %v6837_v19  ;;  %4383 = vmatpush1.msra.mxu1 %v6839_v8  ;;  %v7877_v19 = vld [vmem:[#allocation27_spill] sm:$0xff]  ;;  %v7878_v8 = vld [vmem:[#allocation29_spill] sm:$0xff] }
 0xd3f   :  { %4313 = vmatprep.subr.mxu0 %v6843_v12  ;;  %4384 = vmatprep.subr.mxu1 %v6845_v5  ;;  %v7879_v12 = vld [vmem:[#allocation39_spill] sm:$0xff]  ;;  %v7880_v5 = vld [vmem:[#allocation30_spill] sm:$0xff] }
 0xd40   :  { %4314 = vmatpush1.msra.mxu0 %v6849_v10  ;;  %4385 = vmatpush1.msra.mxu1 %v7804_v50  ;;  %v7881_v10 = vld [vmem:[#allocation28_spill] sm:$0xff] }
 0xd41   :  { %4315 = vmatprep.subr.mxu0 %v7805_v49  ;;  %4386 = vmatprep.subr.mxu1 %v7806_v51  ;;  %v7888_v49 = vld [vmem:[#allocation60_spill] sm:$0xff] }
 0xd42   :  { %4316 = vmatpush1.msra.mxu0 %v7807_v55  ;;  %4387 = vmatpush1.msra.mxu1 %v7808_v29  ;;  %v2622_v51 = vadd.f32 %v7888_v49, %v6694_v62 }
 0xd43   :  { %4317 = vmatprep.subr.mxu0 %v6867_v59  ;;  %4388 = vmatprep.subr.mxu1 %v6869_v11  ;;  %v7887_v59 = vld [vmem:[#allocation61_spill] sm:$0xff] }
 0xd44   :  { %4318 = vmatpush1.msra.mxu0 %v6873_v27  ;;  %4389 = vmatpush1.msra.mxu1 %v6875_v1  ;;  %v7864_v27 = vld [vmem:[#allocation48_spill] sm:$0xff]  ;;  %v7883_v1 = vld [vmem:[#allocation33_spill] sm:$0xff] }
 0xd45   :  { %4319 = vmatprep.subr.mxu0 %v6877_v38  ;;  %4390 = vmatprep.subr.mxu1 %v6881_v20  ;;  %v7884_v38 = vmov 0.0   ;;  %v7885_v20 = vld [vmem:[#allocation34_spill] sm:$0xff] }
 0xd46   :  { %4320 = vmatpush1.msra.mxu0 %v6883_v2  ;;  %4391 = vmatpush1.msra.mxu1 %v6885_v53  ;;  %v7882_v53 = vld [vmem:[#allocation31_spill] sm:$0xff] }
 0xd47   :  { %4321 = vmatprep.subr.mxu0 %v6969_v57  ;;  %4392 = vmatprep.subr.mxu1 %v6971_v56  ;;  %v7886_v2 = vld [vmem:[#allocation63_spill] sm:$0xff] }
 0xd48   :  { %4322 = vmatpush1.msra.mxu0 %v6973_v60  ;;  %4393 = vmatpush1.msra.mxu1 %v6977_v3  ;;  %v2620_v11 = vadd.f32 %v7887_v59, %v7886_v2 }
 0xd49   :  { %4323 = vmatprep.subr.mxu0 %v6979_v4  ;;  %4394 = vmatprep.subr.mxu1 %v6981_v63 }
 0xd4a   :  { %4324 = vmatpush1.msra.mxu0 %v6985_v26  ;;  %4395 = vmatpush1.msra.mxu1 %v6987_v17 }
 0xd4b   :  { %4325 = vmatprep.subr.mxu0 %v6989_v28  ;;  %4396 = vmatprep.subr.mxu1 %v6993_v30 }
 0xd4c   :  { %4326 = vmatpush1.msra.mxu0 %v6995_v31  ;;  %4397 = vmatpush1.msra.mxu1 %v7864_v27 }
 0xd4d   :  { %4327 = vmatprep.subr.mxu0 %v7865_v24  ;;  %4398 = vmatprep.subr.mxu1 %v7866_v16 }
 0xd4e   :  { %4328 = vmatpush1.msra.mxu0 %v7867_v6  ;;  %4399 = vmatpush1.msra.mxu1 %v7868_v25 }
 0xd4f   :  { %4329 = vmatprep.subr.mxu0 %v7869_v44  ;;  %4400 = vmatprep.subr.mxu1 %v7870_v9 }
 0xd50   :  { %4330 = vmatpush1.msra.mxu0 %v7871_v14  ;;  %4401 = vmatpush1.msra.mxu1 %v7872_v22 }
 0xd51   :  { %4331 = vmatprep.subr.mxu0 %v7873_v58  ;;  %4402 = vmatprep.subr.mxu1 %v7874_v15 }
 0xd52   :  { %4332 = vmatpush1.msra.mxu0 %v7875_v23  ;;  %4403 = vmatpush1.msra.mxu1 %v7876_v7 }
 0xd53   :  { %4333 = vmatprep.subr.mxu0 %v7877_v19  ;;  %4404 = vmatprep.subr.mxu1 %v7878_v8 }
 0xd54   :  { %4334 = vmatpush1.msra.mxu0 %v7879_v12  ;;  %4405 = vmatpush1.msra.mxu1 %v7880_v5 }
 0xd55   :  { %4335 = vmatprep.subr.mxu0 %v7881_v10  ;;  %4406 = vmatprep.subr.mxu1 %v7882_v53 }
 0xd56   :  { %4336 = vmatpush1.msra.mxu0 %v7883_v1  ;;  %4369 = vmatprep.mubr.f32.mxu0 %v7884_v38 }
 0xd57   :  { %4407 = vmatpush1.msra.mxu1 %v7885_v20  ;;  %4440 = vmatprep.mubr.f32.mxu1 %v7884_v38 }
 0xdf7   :  { %v4129_v50 = vpop.f32.mrf.mxu0  ;;  %v4200_v61 = vpop.f32.mrf.mxu1 }
 0xdf8   :  { %v4205_v55 = vadd.f32 %v4129_v50, %v2620_v11  ;;  %v4207_v45 = vadd.f32 %v4200_v61, %v2733_v54  ;;  %v4546_v61 = vld [vmem:[#allocation12 + $0x1f8] sm:$0xff] }
 0xdf9   :  { %v4131_v29 = vpop.f32.mrf.mxu0  ;;  %v4202_v46 = vpop.f32.mrf.mxu1  ;;  %4618 = vmatprep.subr.mxu1 %v4546_v61  ;;  %v4538_v54 = vld [vmem:[#allocation12 + $0x1b8] sm:$0xff]  ;;  %v4521_v61 = vld [vmem:[#allocation12 + $0x130] sm:$0xff] }
 0xdfa   :  { %v4867_v42 = vmul.f32 -1.442695, %v4205_v55  ;;  %v4206_v33 = vadd.f32 %v4131_v29, %v2622_v51  ;;  %v4208_v41 = vadd.f32 %v4202_v46, %v2735_v21  ;;  %v4540_v46 = vld [vmem:[#allocation12 + $0x1c8] sm:$0xff]  ;;  %v4539_v21 = vld [vmem:[#allocation12 + $0x1c0] sm:$0xff] }
 0xdfc   :  { %5148 = vpow2.f32 %v4867_v42  ;;  %v4868_v43 = vmul.f32 -1.442695, %v4206_v33  ;;  %v4869_v37 = vmul.f32 -1.442695, %v4208_v41  ;;  %v4544_v33 = vld [vmem:[#allocation12 + $0x1e8] sm:$0xff]  ;;  %v4541_v41 = vld [vmem:[#allocation12 + $0x1d0] sm:$0xff] }
 0xdfd   :  { %4547 = vmatprep.subr.mxu0 %v4544_v33  ;;  %v4519_v33 = vld [vmem:[#allocation12 + $0x120] sm:$0xff] }
 0xdfe   :  { %5150 = vpow2.f32 %v4868_v43  ;;  %v4543_v43 = vld [vmem:[#allocation12 + $0x1e0] sm:$0xff] }
 0xdff   :  { %5152 = vtanh.f32 %v4207_v45  ;;  %v4535_v45 = vld [vmem:[#allocation12 + $0x1a0] sm:$0xff] }
 0xe00   :  { %5154 = vpow2.f32 %v4869_v37  ;;  %v4537_v37 = vld [vmem:[#allocation12 + $0x1b0] sm:$0xff] }
 0xe09   :  { %v5149_v39 = vpop.eup %5148 }
 0xe0a   :  { %v4212_v52 = vadd.f32 1.0, %v5149_v39  ;;  %v4532_v39 = vld [vmem:[#allocation12 + $0x188] sm:$0xff] }
 0xe0b   :  { %v5151_v32 = vpop.eup %5150 }
 0xe0c   :  { %5156 = vrcp.f32 %v4212_v52  ;;  %v4218_v40 = vadd.f32 1.0, %v5151_v32  ;;  %v5153_v47 = vpop.eup %5152  ;;  %v4534_v52 = vld [vmem:[#allocation12 + $0x198] sm:$0xff]  ;;  %v4531_v32 = vld [vmem:[#allocation12 + $0x180] sm:$0xff] }
 0xe0d   :  { %v5155_v34 = vpop.eup %5154 }
 0xe0e   :  { %5158 = vrcp.f32 %v4218_v40  ;;  %v4225_v50 = vadd.f32 1.0, %v5155_v34  ;;  %v4533_v40 = vld [vmem:[#allocation12 + $0x190] sm:$0xff]  ;;  %v4530_v34 = vld [vmem:[#allocation12 + $0x178] sm:$0xff] }
 0xe10   :  { %5160 = vrcp.f32 %v4225_v50  ;;  %v4526_v50 = vld [vmem:[#allocation12 + $0x158] sm:$0xff] }
 0xe19   :  { %v5157_v48 = vpop.eup %5156 }
 0xe1a   :  { %v4229_v59 = vmul.f32 %v5157_v48, %v5153_v47  ;;  %v4528_v47 = vld [vmem:[#allocation12 + $0x168] sm:$0xff]  ;;  %v4527_v48 = vld [vmem:[#allocation12 + $0x160] sm:$0xff] }
 0xe1b   :  { %v5159_v11 = vpop.eup %5158 }
 0xe1c   :  { %v4228_v49 = vmul.f32 %v5159_v11, %v7154_v36  ;;  %v4545_v36 = vld [vmem:[#allocation12 + $0x1f0] sm:$0xff]  ;;  %v4524_v11 = vld [vmem:[#allocation12 + $0x148] sm:$0xff] }
 0xe1d   :  { %v5161_v55 = vpop.eup %5160 }
 0xe1e   :  { %v7230_v51 = vadd.f32 %v4229_v59, %v4228_v49  ;;  %v4529_v59 = vld [vmem:[#allocation12 + $0x170] sm:$0xff]  ;;  %v4523_v49 = vld [vmem:[#allocation12 + $0x140] sm:$0xff] }
 0xe20   :  { %5162 = vtanh.f32 %v7230_v51 }
 0xe2d   :  { %v5163_v29 = vpop.eup %5162 }
 0xe2e   :  { %v4232_v42 = vmul.f32 %v5163_v29, %v5161_v55  ;;  %v4525_v55 = vld [vmem:[#allocation12 + $0x150] sm:$0xff]  ;;  %v4520_v29 = vld [vmem:[#allocation12 + $0x128] sm:$0xff] }
 0xe30   :  { %4370 = vmatmul.mubr.f32.vlgmr.msra.gmra.mxu0 %v4232_v42  ;;  %4441 = vmatmul.mubr.f32.vlgmr.msra.gmra.mxu1 %v4232_v42  ;;  %v4522_v42 = vld [vmem:[#allocation12 + $0x138] sm:$0xff] }
 0xe31   :  { %4611 = vmatprep.mubr.f32.mxu0 %v7884_v38  ;;  %4682 = vmatprep.mubr.f32.mxu1 %v7884_v38 }
 0xe32   :  { %4548 = vmatpush1.msra.mxu0 %v4543_v43  ;;  %4619 = vmatpush1.msra.mxu1 %v4545_v36  ;;  %v4516_v43 = vld [vmem:[#allocation12 + $0x108] sm:$0xff]  ;;  %v4518_v36 = vld [vmem:[#allocation12 + $0x118] sm:$0xff] }
 0xe33   :  { %4549 = vmatprep.subr.mxu0 %v4540_v46  ;;  %4620 = vmatprep.subr.mxu1 %v4542_v35  ;;  %v4515_v46 = vld [vmem:[#allocation12 + $0x100] sm:$0xff]  ;;  %v4517_v35 = vld [vmem:[#allocation12 + $0x110] sm:$0xff] }
 0xe34   :  { %4550 = vmatpush1.msra.mxu0 %v4539_v21  ;;  %4621 = vmatpush1.msra.mxu1 %v4541_v41 }
 0xe35   :  { %4551 = vmatprep.subr.mxu0 %v4536_v0  ;;  %4622 = vmatprep.subr.mxu1 %v4538_v54  ;;  %v4735_v0 = vld [vmem:[#allocation14 + $0x78] sm:$0xff]  ;;  %v4734_v54 = vld [vmem:[#allocation14 + $0x70] sm:$0xff] }
 0xe36   :  { %4552 = vmatpush1.msra.mxu0 %v4535_v45  ;;  %4623 = vmatpush1.msra.mxu1 %v4537_v37  ;;  %v4733_v45 = vld [vmem:[#allocation14 + $0x68] sm:$0xff]  ;;  %v4731_v37 = vld [vmem:[#allocation14 + $0x58] sm:$0xff] }
 0xe37   :  { %4553 = vmatprep.subr.mxu0 %v4532_v39  ;;  %4624 = vmatprep.subr.mxu1 %v4534_v52  ;;  %v4730_v39 = vld [vmem:[#allocation14 + $0x50] sm:$0xff]  ;;  %v4729_v52 = vld [vmem:[#allocation14 + $0x48] sm:$0xff] }
 0xe38   :  { %4554 = vmatpush1.msra.mxu0 %v4531_v32  ;;  %4625 = vmatpush1.msra.mxu1 %v4533_v40  ;;  %v4728_v32 = vld [vmem:[#allocation14 + $0x40] sm:$0xff]  ;;  %v4727_v40 = vld [vmem:[#allocation14 + $0x38] sm:$0xff] }
 0xe39   :  { %4555 = vmatprep.subr.mxu0 %v4528_v47  ;;  %4626 = vmatprep.subr.mxu1 %v4530_v34  ;;  %v4726_v47 = vld [vmem:[#allocation14 + $0x30] sm:$0xff]  ;;  %v4725_v34 = vld [vmem:[#allocation14 + $0x28] sm:$0xff] }
 0xe3a   :  { %4556 = vmatpush1.msra.mxu0 %v4527_v48  ;;  %4627 = vmatpush1.msra.mxu1 %v4529_v59  ;;  %v4724_v48 = vld [vmem:[#allocation14 + $0x20] sm:$0xff]  ;;  %v4723_v59 = vld [vmem:[#allocation14 + $0x18] sm:$0xff] }
 0xe3b   :  { %4557 = vmatprep.subr.mxu0 %v4524_v11  ;;  %4628 = vmatprep.subr.mxu1 %v4526_v50  ;;  %v4722_v11 = vld [vmem:[#allocation14 + $0x10] sm:$0xff]  ;;  %v4721_v50 = vld [vmem:[#allocation14 + $0x8] sm:$0xff] }
 0xe3c   :  { %4558 = vmatpush1.msra.mxu0 %v4523_v49  ;;  %4629 = vmatpush1.msra.mxu1 %v4525_v55  ;;  %v4720_v49 = vld [vmem:[#allocation14] sm:$0xff] }
 0xe3d   :  { %4559 = vmatprep.subr.mxu0 %v4520_v29  ;;  %4630 = vmatprep.subr.mxu1 %v4522_v42  ;;  %v7895_v55 = vld [vmem:[#allocation66_spill] sm:$0xff] }
 0xe3e   :  { %4560 = vmatpush1.msra.mxu0 %v4519_v33  ;;  %4631 = vmatpush1.msra.mxu1 %v4521_v61  ;;  %v2632_v29 = vadd.f32 %v7895_v55, %v7886_v2  ;;  %v7896_v33 = vld [vmem:[#allocation42_spill] sm:$0xff] }
 0xe3f   :  { %4561 = vmatprep.subr.mxu0 %v4516_v43  ;;  %4632 = vmatprep.subr.mxu1 %v4518_v36  ;;  %v2634_v61 = vadd.f32 %v7896_v33, %v6694_v62 }
 0xe40   :  { %4562 = vmatpush1.msra.mxu0 %v4515_v46  ;;  %4633 = vmatpush1.msra.mxu1 %v4517_v35 }
 0xe41   :  { %4563 = vmatprep.subr.mxu0 %v6969_v57  ;;  %4634 = vmatprep.subr.mxu1 %v6971_v56  ;;  %v7891_v57 = vld [vmem:[#allocation18_spill] sm:$0xff] }
 0xe42   :  { %4564 = vmatpush1.msra.mxu0 %v6973_v60  ;;  %4635 = vmatpush1.msra.mxu1 %v6977_v3  ;;  %v2626_v56 = vadd.f32 %v7891_v57, %v7886_v2  ;;  %v7892_v3 = vld [vmem:[#allocation41_spill] sm:$0xff] }
 0xe43   :  { %4565 = vmatprep.subr.mxu0 %v6979_v4  ;;  %4636 = vmatprep.subr.mxu1 %v6981_v63  ;;  %v2628_v4 = vadd.f32 %v7892_v3, %v6694_v62  ;;  %v7897_v3 = vld [vmem:[#allocation40_spill] sm:$0xff] }
 0xe44   :  { %4566 = vmatpush1.msra.mxu0 %v6985_v26  ;;  %4637 = vmatpush1.msra.mxu1 %v6987_v17 }
 0xe45   :  { %4567 = vmatprep.subr.mxu0 %v6989_v28  ;;  %4638 = vmatprep.subr.mxu1 %v6993_v30 }
 0xe46   :  { %4568 = vmatpush1.msra.mxu0 %v6995_v31  ;;  %4639 = vmatpush1.msra.mxu1 %v7864_v27 }
 0xe47   :  { %4569 = vmatprep.subr.mxu0 %v7865_v24  ;;  %4640 = vmatprep.subr.mxu1 %v7866_v16  ;;  %v7893_v24 = vld [vmem:[#allocation65_spill] sm:$0xff] }
 0xe48   :  { %4570 = vmatpush1.msra.mxu0 %v7867_v6  ;;  %4641 = vmatpush1.msra.mxu1 %v7868_v25  ;;  %v2741_v16 = vadd.f32 %v7893_v24, %v7790_v18  ;;  %v7894_v25 = vld [vmem:[#allocation38_spill] sm:$0xff] }
 0xe49   :  { %4571 = vmatprep.subr.mxu0 %v7869_v44  ;;  %4642 = vmatprep.subr.mxu1 %v7870_v9  ;;  %v2739_v44 = vadd.f32 %v7894_v25, %v6711_v13 }
 0xe4a   :  { %4572 = vmatpush1.msra.mxu0 %v7871_v14  ;;  %4643 = vmatpush1.msra.mxu1 %v7872_v22 }
 0xe4b   :  { %4573 = vmatprep.subr.mxu0 %v7873_v58  ;;  %4644 = vmatprep.subr.mxu1 %v7874_v15 }
 0xe4c   :  { %4574 = vmatpush1.msra.mxu0 %v7875_v23  ;;  %4645 = vmatpush1.msra.mxu1 %v7876_v7 }
 0xe4d   :  { %4575 = vmatprep.subr.mxu0 %v7877_v19  ;;  %4646 = vmatprep.subr.mxu1 %v7878_v8 }
 0xe4e   :  { %4576 = vmatpush1.msra.mxu0 %v7879_v12  ;;  %4647 = vmatpush1.msra.mxu1 %v7880_v5 }
 0xe4f   :  { %4577 = vmatprep.subr.mxu0 %v7881_v10  ;;  %4648 = vmatprep.subr.mxu1 %v7882_v53 }
 0xe50   :  { %4578 = vmatpush1.msra.mxu0 %v7883_v1  ;;  %4649 = vmatpush1.msra.mxu1 %v7885_v20 }
 0xe51   :  { %4894 = vmatprep.subr.mxu0 %v7884_v38 }
 0xef0   :  { %v4371_v60 = vpop.f32.mrf.mxu0  ;;  %v4442_v30 = vpop.f32.mrf.mxu1 }
 0xef1   :  { %v4447_v63 = vadd.f32 %v4371_v60, %v2626_v56  ;;  %v4449_v9 = vadd.f32 %v4442_v30, %v2739_v44 }
 0xef2   :  { %v4373_v26 = vpop.f32.mrf.mxu0  ;;  %v4444_v27 = vpop.f32.mrf.mxu1 }
 0xef3   :  { %v4870_v17 = vmul.f32 -1.442695, %v4447_v63  ;;  %v4448_v28 = vadd.f32 %v4373_v26, %v2628_v4  ;;  %v4450_v6 = vadd.f32 %v4444_v27, %v2741_v16  ;;  %v7898_v63 = vld [vmem:[#allocation64_spill] sm:$0xff] }
 0xef4   :  { %v2745_v2 = vadd.f32 %v7898_v63, %v6711_v13 }
 0xef5   :  { %5164 = vpow2.f32 %v4870_v17  ;;  %v4871_v31 = vmul.f32 -1.442695, %v4448_v28  ;;  %v4872_v14 = vmul.f32 -1.442695, %v4450_v6 }
 0xef7   :  { %5166 = vpow2.f32 %v4871_v31 }
 0xef8   :  { %5168 = vtanh.f32 %v4449_v9 }
 0xef9   :  { %5170 = vpow2.f32 %v4872_v14 }
 0xf02   :  { %v5165_v22 = vpop.eup %5164 }
 0xf03   :  { %v4454_v58 = vadd.f32 1.0, %v5165_v22 }
 0xf04   :  { %v5167_v15 = vpop.eup %5166 }
 0xf05   :  { %5172 = vrcp.f32 %v4454_v58  ;;  %v4460_v23 = vadd.f32 1.0, %v5167_v15  ;;  %v5169_v7 = vpop.eup %5168  ;;  %v4876_v58 = vld [vmem:[%s7319_s8] ss:$0 sm:$0xff] }
 0xf06   :  { %v5171_v19 = vpop.eup %5170 }
 0xf07   :  { %5174 = vrcp.f32 %v4460_v23  ;;  %v4467_v10 = vadd.f32 1.0, %v5171_v19 }
 0xf09   :  { %5176 = vrcp.f32 %v4467_v10 }
 0xf12   :  { %v5173_v8 = vpop.eup %5172 }
 0xf13   :  { %v4471_v12 = vmul.f32 %v5173_v8, %v5169_v7 }
 0xf14   :  { %v5175_v5 = vpop.eup %5174 }
 0xf15   :  { %v4470_v53 = vmul.f32 %v5175_v5, %v7230_v51  ;;  %v4732_v51 = vld [vmem:[#allocation14 + $0x60] sm:$0xff] }
 0xf16   :  { %v5177_v20 = vpop.eup %5176 }
 0xf17   :  { %v7277_v1 = vadd.f32 %v4471_v12, %v4470_v53 }
 0xf19   :  { %5178 = vtanh.f32 %v7277_v1 }
 0xf26   :  { %v5179_v21 = vpop.eup %5178 }
 0xf27   :  { %v4474_v41 = vmul.f32 %v5179_v21, %v5177_v20 }
 0xf29   :  { %4612 = vmatmul.mubr.f32.vlgmr.msra.gmra.mxu0 %v4474_v41  ;;  %4683 = vmatmul.mubr.f32.vlgmr.msra.gmra.mxu1 %v4474_v41 }
 0xf2a   :  { %4895 = vmatpush3.msra.mxu0 %v4735_v0  ;;  %4926 = vmatprep.mubr.msk.f32.mxu0 %vm5312_vm0, %v7884_v38 }
 0xf2b   :  { %4896 = vmatprep.subr.mxu0 %v7884_v38 }
 0xf2c   :  { %4897 = vmatpush3.msra.mxu0 %v4734_v54 }
 0xf2d   :  { %4898 = vmatprep.subr.mxu0 %v7884_v38 }
 0xf2e   :  { %4899 = vmatpush3.msra.mxu0 %v4733_v45 }
 0xf2f   :  { %4900 = vmatprep.subr.mxu0 %v7884_v38 }
 0xf30   :  { %4901 = vmatpush3.msra.mxu0 %v4732_v51 }
 0xf31   :  { %4902 = vmatprep.subr.mxu0 %v7884_v38 }
 0xf32   :  { %4903 = vmatpush3.msra.mxu0 %v4731_v37 }
 0xf33   :  { %4904 = vmatprep.subr.mxu0 %v7884_v38 }
 0xf34   :  { %4905 = vmatpush3.msra.mxu0 %v4730_v39 }
 0xf35   :  { %4906 = vmatprep.subr.mxu0 %v7884_v38 }
 0xf36   :  { %4907 = vmatpush3.msra.mxu0 %v4729_v52 }
 0xf37   :  { %4908 = vmatprep.subr.mxu0 %v7884_v38 }
 0xf38   :  { %4909 = vmatpush3.msra.mxu0 %v4728_v32 }
 0xf39   :  { %4910 = vmatprep.subr.mxu0 %v7884_v38 }
 0xf3a   :  { %4911 = vmatpush3.msra.mxu0 %v4727_v40 }
 0xf3b   :  { %4912 = vmatprep.subr.mxu0 %v7884_v38 }
 0xf3c   :  { %4913 = vmatpush3.msra.mxu0 %v4726_v47 }
 0xf3d   :  { %4914 = vmatprep.subr.mxu0 %v7884_v38 }
 0xf3e   :  { %4915 = vmatpush3.msra.mxu0 %v4725_v34 }
 0xf3f   :  { %4916 = vmatprep.subr.mxu0 %v7884_v38 }
 0xf40   :  { %4917 = vmatpush3.msra.mxu0 %v4724_v48 }
 0xf41   :  { %4918 = vmatprep.subr.mxu0 %v7884_v38 }
 0xf42   :  { %4919 = vmatpush3.msra.mxu0 %v4723_v59 }
 0xf43   :  { %4920 = vmatprep.subr.mxu0 %v7884_v38 }
 0xf44   :  { %4921 = vmatpush3.msra.mxu0 %v4722_v11 }
 0xf45   :  { %4922 = vmatprep.subr.mxu0 %v7884_v38 }
 0xf46   :  { %4923 = vmatpush3.msra.mxu0 %v4721_v50 }
 0xf47   :  { %4924 = vmatprep.subr.mxu0 %v7884_v38  ;;  %v2747_v38 = vadd.f32 %v7897_v3, %v7790_v18 }
 0xf48   :  { %4925 = vmatpush3.msra.mxu0 %v4720_v49 }
 0xfe9   :  { %v4613_v42 = vpop.f32.mrf.mxu0  ;;  %v4684_v57 = vpop.f32.mrf.mxu1 }
 0xfea   :  { %v4689_v43 = vadd.f32 %v4613_v42, %v2632_v29  ;;  %v4691_v26 = vadd.f32 %v4684_v57, %v2745_v2 }
 0xfeb   :  { %v4615_v36 = vpop.f32.mrf.mxu0  ;;  %v4686_v60 = vpop.f32.mrf.mxu1 }
 0xfec   :  { %v4873_v46 = vmul.f32 -1.442695, %v4689_v43  ;;  %v4690_v35 = vadd.f32 %v4615_v36, %v2634_v61  ;;  %v4692_v4 = vadd.f32 %v4686_v60, %v2747_v38 }
 0xfee   :  { %5180 = vpow2.f32 %v4873_v46  ;;  %v4874_v56 = vmul.f32 -1.442695, %v4690_v35  ;;  %v4875_v17 = vmul.f32 -1.442695, %v4692_v4 }
 0xff0   :  { %5182 = vpow2.f32 %v4874_v56 }
 0xff1   :  { %5184 = vtanh.f32 %v4691_v26 }
 0xff2   :  { %5186 = vpow2.f32 %v4875_v17 }
 0xffb   :  { %v5181_v28 = vpop.eup %5180 }
 0xffc   :  { %v4696_v62 = vadd.f32 1.0, %v5181_v28 }
 0xffd   :  { %v5183_v30 = vpop.eup %5182 }
 0xffe   :  { %5188 = vrcp.f32 %v4696_v62  ;;  %v4702_v31 = vadd.f32 1.0, %v5183_v30  ;;  %v5185_v27 = vpop.eup %5184 }
 0xfff   :  { %v5187_v24 = vpop.eup %5186 }
0x1000   :  { %5190 = vrcp.f32 %v4702_v31  ;;  %v4709_v18 = vadd.f32 1.0, %v5187_v24 }
0x1002   :  { %5192 = vrcp.f32 %v4709_v18 }
0x100b   :  { %v5189_v16 = vpop.eup %5188 }
0x100c   :  { %v4713_v6 = vmul.f32 %v5189_v16, %v5185_v27 }
0x100d   :  { %v5191_v25 = vpop.eup %5190 }
0x100e   :  { %v4712_v44 = vmul.f32 %v5191_v25, %v7277_v1 }
0x100f   :  { %v5193_v13 = vpop.eup %5192 }
0x1010   :  { %v4714_v9 = vadd.f32 %v4713_v6, %v4712_v44 }
0x1012   :  { %5194 = vtanh.f32 %v4714_v9 }
0x101f   :  { %v5195_v14 = vpop.eup %5194 }
0x1020   :  { %v4716_v22 = vmul.f32 %v5195_v14, %v5193_v13 }
0x1022   :  { %4927 = vmatmul.mubr.f32.vlgmr.msra.gmra.mxu0 %v4716_v22 }
0x10e2   :  { %v4809_v15 = vpop.f32.mrf.mxu0 }
0x10e3   :  { %v4810_v23 = vadd.f32 %v4876_v58, %v4809_v15 }
0x10e4   :  { %v4928_v7 = vpop.f32.mrf.mxu0 }
0x10e5   :  { %4813 = vst [vmem:[%s7320_s9] sm:$0xff] %v4810_v23 }
0x10e6   :  { %4818 = vsyncpa [#allocation8], 1 }
0x10e7   :  { %4819 = vsyncpa [#allocation10], 1 }
0x10e8   :  { %4820 = vsyncpa [#allocation13], 1 }

</bundles_post_ra>
